<compile_context>
chip_gen: v6e
topology: v6e:2x2x1
jax: 0.10.0
libtpu: 0.0.40
codegen_flags: <defaults>
</compile_context>

<pallas_src>
import math
from functools import partial

import jax
import jax.numpy as jnp
from jax.experimental import pallas as pl
from jax.experimental.pallas import tpu as pltpu

VMEM = pltpu.MemorySpace.VMEM
F32 = jnp.float32
BF16 = jnp.bfloat16


# ------------------------------ packing helpers ------------------------------

def _pack_rows(entries, width, dtype):
    """Stack 2-D arrays along rows into one [R, width] slab (8-aligned row offsets)."""
    offs, chunks, r = {}, [], 0
    for name, a in entries:
        nr, nc = a.shape
        assert nc <= width
        nr_pad = ((nr + 7) // 8) * 8
        chunks.append(jnp.pad(a, ((0, nr_pad - nr), (0, width - nc))))
        offs[name] = (r, nr, nc)
        r += nr_pad
    return jnp.concatenate(chunks, axis=0).astype(dtype), offs


def _pack_lanes(entries, dtype, align=128):
    """Concatenate 2-D arrays (same row count) along lanes (128-aligned column offsets)."""
    offs, chunks, c = {}, [], 0
    for name, a in entries:
        nc = a.shape[1]
        nc_pad = ((nc + align - 1) // align) * align
        chunks.append(jnp.pad(a, ((0, 0), (0, nc_pad - nc))))
        offs[name] = (c, nc, nc_pad)
        c += nc_pad
    return jnp.concatenate(chunks, axis=1).astype(dtype), offs


# -------------------------------- fused kernel --------------------------------

def _fused_kernel(x_ref, adj_ref, wA_ref, wB_ref, wC_ref, z1w_ref, fb_ref,
                  feat_ref, hz_ref, *, ks, nhid, offs):
    f32, bf = jnp.float32, jnp.bfloat16
    h = nhid
    n = adj_ref.shape[0]
    k1, k2, k3 = ks
    oA, oB, oC, oF = offs["A"], offs["B"], offs["C"], offs["F"]

    def wa(name):
        r, nr, nc = oA[name]
        return wA_ref[r:r + nr, :nc]

    def wc(name):
        r, nr, nc = oC[name]
        return wC_ref[r:r + nr, :nc]

    def fb(name):
        c, nc, _ = oF[name]
        return fb_ref[:, c:c + nc]

    def relu(v):
        return jnp.maximum(v, 0.0)

    def mm(a, b):  # bf16 MXU matmul, f32 accumulation
        return jnp.dot(a.astype(bf), b.astype(bf), preferred_element_type=f32)

    # ---------------- NormalizeFeaturesV2: x[:, :12] /= column max ----------------
    x = x_ref[...]                                              # [n, Fp] f32
    colmax = jnp.max(x, axis=0, keepdims=True)
    denom = jnp.where(colmax == 0.0, 1.0, colmax)               # guard (PyTorch would emit inf/nan)
    cidx = jax.lax.broadcasted_iota(jnp.int32, (1, x.shape[1]), 1)
    x = jnp.where(cidx < 12, x / denom, x)

    adj = adj_ref[...]                                          # [n, n] f32 counts (tgt, src)

    # --------------------------------- helpers -----------------------------------
    def sage(xin, a_eff, deg, name):
        """relu(SAGEConv mean aggr): (A_eff @ (X @ Wl))/deg + X @ Wr + b, W = [Wl|Wr]."""
        hw = mm(xin, wa(name + "_w"))                           # [m, 2h]
        inv = pl.reciprocal(deg, approx=True)                   # EUP; deg is a small integer count
        agg = mm(a_eff, hw[:, :h]) * inv
        return relu(agg + hw[:, h:] + fb(name + "_b"))

    def pool_score(xc, a_eff, name):
        """SAGPooling score = GraphConv (sum aggr): A_eff @ (x@Wrel) + x@Wroot + b."""
        sr = mm(xc, wc(name + "_w"))                            # [m, 2]  (rel | root)
        return mm(a_eff, sr[:, 0:1]) + sr[:, 1:2] + fb(name + "_b")

    def topk(score, alive, k, m):
        """Unrolled iterative arg-max over alive nodes (k static, tiny)."""
        rid = jax.lax.broadcasted_iota(jnp.int32, (m, 1), 0).astype(f32)
        cid = jax.lax.broadcasted_iota(jnp.int32, (1, m), 1).astype(f32)
        masked = jnp.where(alive > 0.0, score, -jnp.inf)
        cols, rows = [], []
        for _ in range(k):
            mval = jnp.max(masked, axis=0, keepdims=True)       # [1, 1]
            cand = jnp.where(masked == mval, rid, float(m))     # smallest index wins ties
            idx = jnp.min(cand, axis=0, keepdims=True)
            oc = (rid == idx).astype(f32)                       # [m, 1]
            orow = (cid == idx).astype(f32)                     # [1, m]
            cols.append(oc)
            rows.append(orow)
            masked = jnp.where(oc > 0.0, -jnp.inf, masked)
        return cols, rows

    def acc(lst):
        out = lst[0]
        for t in lst[1:]:
            out = out + t
        return out

    # ============================ stage 1 (n nodes) ================================
    deg1 = jnp.maximum(jnp.sum(adj, axis=1, keepdims=True), 1.0)
    xc1 = sage(x, adj, deg1, "c1")                              # [n, h]
    sc1 = pool_score(xc1, adj, "p1")                            # [n, 1]
    cols1, rows1 = topk(sc1, jnp.ones((n, 1), f32), k1, n)

    # one-hot gather matrices compacting to the k1 survivors (built with broadcasts only)
    slot_c = jax.lax.broadcasted_iota(jnp.int32, (k1, 1), 0)
    slot_r = jax.lax.broadcasted_iota(jnp.int32, (1, k1), 1)
    sel = jnp.zeros((k1, n), f32)
    selT = jnp.zeros((n, k1), f32)
    for a in range(k1):
        sel = sel + (slot_c == a).astype(f32) * rows1[a]
        selT = selT + cols1[a] * (slot_r == a).astype(f32)

    xg1 = xc1 * jnp.tanh(sc1)                                   # tanh-gated features
    x8 = mm(sel, xg1)                                           # [k1, h] compacted survivors
    adj8 = mm(mm(sel, adj), selT)                               # [k1, k1] induced sub-adjacency
    gmp1 = jnp.max(x8, axis=0, keepdims=True)
    gap1 = jnp.sum(x8, axis=0, keepdims=True) * (1.0 / k1)

    # =========================== stage 2 (k1 nodes) ================================
    deg2 = jnp.maximum(jnp.sum(adj8, axis=1, keepdims=True), 1.0)
    xc2 = sage(x8, adj8, deg2, "c2")
    sc2 = pool_score(xc2, adj8, "p2")
    cols2, rows2 = topk(sc2, jnp.ones((k1, 1), f32), k2, k1)
    alive_c2, alive_r2 = acc(cols2), acc(rows2)
    xg2 = xc2 * jnp.tanh(sc2) * alive_c2
    gmp2 = jnp.max(jnp.where(alive_c2 > 0.0, xg2, -jnp.inf), axis=0, keepdims=True)
    gap2 = jnp.sum(xg2, axis=0, keepdims=True) * (1.0 / k2)

    # ====================== stage 3 (k2 alive nodes of the k1) =====================
    a3 = adj8 * alive_r2                                        # drop edges from removed sources
    deg3 = jnp.maximum(jnp.sum(a3, axis=1, keepdims=True), 1.0)
    xc3 = sage(xg2, a3, deg3, "c3")
    sc3 = pool_score(xc3, a3, "p3")
    cols3, _ = topk(sc3, alive_c2, k3, k1)
    alive_c3 = acc(cols3)
    xg3 = xc3 * jnp.tanh(sc3) * alive_c3
    gmp3 = jnp.max(jnp.where(alive_c3 > 0.0, xg3, -jnp.inf), axis=0, keepdims=True)
    gap3 = jnp.sum(xg3, axis=0, keepdims=True) * (1.0 / k3)

    # ===================== readout + lin1/lin2 -> grph_vec =========================
    xcat = jnp.concatenate([gmp1 + gmp2 + gmp3, gap1 + gap2 + gap3], axis=1)   # [1, 2h]
    hvec = relu(mm(xcat, wc("l1_w")) + fb("l1_b"))
    v = relu(mm(hvec, wc("l2_w")) + fb("l2_b"))                 # grph_vec  [1, d]

    # ====== BilinearFusion (skip=1, use_bilinear=1, gate1=1, gate2=0), vec1=vec2=v ======
    def grp(names):  # contiguous lane range of a group inside wB
        lo = min(oB[nm][0] for nm in names)
        hi = max(oB[nm][0] + oB[nm][2] for nm in names)
        return lo, hi

    def gsl(val, name, lo):  # slice one member out of a group matmul result
        c, nc, _ = oB[name]
        return val[:, c - lo:c - lo + nc]

    lo_v, hi_v = grp(("h1_w", "o2_w", "sel_i", "sel_j"))        # everything consuming v
    vW = mm(v, wB_ref[:, lo_v:hi_v])                            # one wide [1, 2304] matmul
    h1 = relu(gsl(vW, "h1_w", lo_v) + fb("h1_b"))
    o2 = relu(gsl(vW, "o2_w", lo_v) + fb("o2_b"))
    z1in = gsl(vW, "sel_i", lo_v) * gsl(vW, "sel_j", lo_v)      # flatten(v (x) v)  [1, d*d]
    z1 = mm(z1in, z1w_ref[...]) + fb("z1_b")
    o1 = relu(mm(jax.nn.sigmoid(z1) * h1, wc("o1_w")) + fb("o1_b"))

    lo1, hi1 = grp(("sel_i1", "e2_wb"))                         # everything consuming o1
    o1W = mm(o1, wB_ref[:, lo1:hi1])
    lo2, hi2 = grp(("sel_j1", "e2_wc"))                         # everything consuming o2
    o2W = mm(o2, wB_ref[:, lo2:hi2])

    # o12 = flatten([o1,1] (x) [o2,1]); the appended 1 is folded into the one_i/one_j constants
    o12 = (gsl(o1W, "sel_i1", lo1) + fb("one_i")) * (gsl(o2W, "sel_j1", lo2) + fb("one_j"))
    e1 = relu(mm(o12, wa("e1_w")) + fb("e1_b"))                 # encoder1  [1, 256]
    out = relu(mm(e1, wc("e2_wa")) + gsl(o1W, "e2_wb", lo1) + gsl(o2W, "e2_wc", lo2)
               + fb("e2_b"))                                    # encoder2  [1, mmhid]
    feat_ref[...] = out

    hz = mm(out, wc("cls_w")) + fb("cls_b")
    hz_ref[...] = jax.nn.sigmoid(hz) * 6.0 - 3.0                # Sigmoid * output_range + shift


# --------------------------------- parameters ----------------------------------

def init_params(key, feat=1036, nhid=128, grph_dim=32, mmhid=64, label_dim=1,
                pooling_ratio=0.2):
    keys = iter(jax.random.split(key, 64))

    def unif(shape, fan_in):
        bound = 1.0 / math.sqrt(fan_in)
        return jax.random.uniform(next(keys), shape, F32, -bound, bound)

    feat_pad = ((feat + 127) // 128) * 128
    d, h = grph_dim, nhid

    conv_w, conv_b, pw, pb = {}, {}, {}, {}
    for i, fin in zip((1, 2, 3), (feat, nhid, nhid)):
        wl = unif((fin, h), fin)                     # SAGEConv.lin_l (aggregated neighbours, bias)
        bl = unif((1, h), fin)
        wr = unif((fin, h), fin)                     # SAGEConv.lin_r (root, no bias)
        w = jnp.concatenate([wl, wr], axis=1)        # [fin, 2h] fused conv weight
        if i == 1:
            w = jnp.pad(w, ((0, feat_pad - fin), (0, 0)))
        conv_w[i], conv_b[i] = w, bl
        # SAGPooling score net = GraphConv(h, 1): [lin_rel | lin_root], bias on lin_rel
        pw[i] = jnp.concatenate([unif((h, 1), h), unif((h, 1), h)], axis=1)   # [h, 2]
        pb[i] = unif((1, 1), h)

    l1_w = unif((2 * h, h), 2 * h); l1_b = unif((1, h), 2 * h)
    l2_w = unif((h, d), h);         l2_b = unif((1, d), h)
    # GraphNet.lin3 exists but GraphgraphNet discards its output -> not computed.

    # BilinearFusion (skip=1, use_bilinear=1, gate1=1, gate2=0, dim1=dim2=grph_dim)
    h1_w = unif((d, d), d); h1_b = unif((1, d), d)
    z1_w = unif((d * d, d), d); z1_b = unif((1, d), d)          # nn.Bilinear flattened [d*d, d]
    o1_w = unif((d, d), d); o1_b = unif((1, d), d)
    o2_w = unif((d, d), d); o2_b = unif((1, d), d)              # gate2=0: o2 = Linear(vec2)+ReLU
    e1_in = (d + 1) * (d + 1)
    e1_w = unif((e1_in, 256), e1_in); e1_b = unif((1, 256), e1_in)
    e2_in = 256 + 2 * (d + 1)
    w_e2 = unif((e2_in, mmhid), e2_in)
    e2_wa = w_e2[:256]
    e2_wb = w_e2[256:256 + d]
    e2_wc = w_e2[256 + d + 1:256 + 2 * d + 1]
    # the two constant "1" rows of the skip concat fold into the bias
    e2_b = (unif((1, mmhid), e2_in) + w_e2[256 + d:256 + d + 1]
            + w_e2[256 + 2 * d + 1:256 + 2 * d + 2])
    cls_w = unif((mmhid, label_dim), mmhid); cls_b = unif((1, label_dim), mmhid)

    # 0/1 selection constants for the outer products (row-major flatten: l = i*J + j)
    sub = jnp.arange(d)[:, None]
    lane = jnp.arange(d * d)[None, :]
    sel_i = (lane // d == sub).astype(F32)                      # [d, d*d]
    sel_j = (lane % d == sub).astype(F32)
    dd = d + 1
    lane2 = jnp.arange(dd * dd)[None, :]
    sel_i1 = (lane2 // dd == sub).astype(F32)                   # [d, (d+1)^2]
    sel_j1 = (lane2 % dd == sub).astype(F32)
    one_i = (lane2 // dd == d).astype(F32)                      # [1, (d+1)^2]
    one_j = (lane2 % dd == d).astype(F32)

    # ---------------------- pack everything into 5 slabs --------------------------
    wA, offA = _pack_rows([("c1_w", conv_w[1]), ("c2_w", conv_w[2]), ("c3_w", conv_w[3]),
                           ("e1_w", e1_w)], width=256, dtype=BF16)
    wB, offB = _pack_lanes([("h1_w", h1_w), ("o2_w", o2_w), ("sel_i", sel_i), ("sel_j", sel_j),
                            ("sel_i1", sel_i1), ("e2_wb", e2_wb),
                            ("sel_j1", sel_j1), ("e2_wc", e2_wc)], dtype=BF16)
    wC, offC = _pack_rows([("l1_w", l1_w), ("l2_w", l2_w), ("o1_w", o1_w),
                           ("p1_w", pw[1]), ("p2_w", pw[2]), ("p3_w", pw[3]),
                           ("e2_wa", e2_wa), ("cls_w", cls_w)], width=128, dtype=BF16)
    fbias, offF = _pack_lanes([("c1_b", conv_b[1]), ("c2_b", conv_b[2]), ("c3_b", conv_b[3]),
                               ("p1_b", pb[1]), ("p2_b", pb[2]), ("p3_b", pb[3]),
                               ("l1_b", l1_b), ("l2_b", l2_b), ("h1_b", h1_b), ("z1_b", z1_b),
                               ("o1_b", o1_b), ("o2_b", o2_b), ("e1_b", e1_b), ("e2_b", e2_b),
                               ("cls_b", cls_b), ("one_i", one_i), ("one_j", one_j)],
                              dtype=F32)

    params = dict(wA=wA, wB=wB, wC=wC, z1_w=z1_w.astype(BF16), fbias=fbias)
    offs = dict(A=offA, B=offB, C=offC, F=offF)
    cfg = dict(feat=feat, feat_pad=feat_pad, nhid=nhid, grph_dim=grph_dim, mmhid=mmhid,
               label_dim=label_dim, pooling_ratio=pooling_ratio, offs=offs)
    return params, cfg


# ----------------------------------- forward -----------------------------------

def build_forward(cfg):
    nhid, mmhid = cfg["nhid"], cfg["mmhid"]
    label_dim, feat_pad = cfg["label_dim"], cfg["feat_pad"]
    ratio, offs = cfg["pooling_ratio"], cfg["offs"]

    @jax.jit
    def forward(params, x, edge_index, edge_attr):
        # NormalizeEdgesV2 only rescales edge_attr, which nothing downstream consumes.
        del edge_attr
        n, f_in = x.shape
        x_pad = jnp.pad(x, ((0, 0), (0, feat_pad - f_in)))
        src, dst = edge_index[0], edge_index[1]
        # TODO(synk): data-dependent scatter-add for the dense count adjacency stays in XLA glue.
        adj = jnp.zeros((n, n), jnp.float32).at[dst, src].add(1.0)

        # static per-stage top-k sizes (PyG topk: k = ceil(ratio * num_nodes))
        ks, cur = [], n
        for _ in range(3):
            cur = max(math.ceil(ratio * cur), 1)
            ks.append(cur)

        kernel = partial(_fused_kernel, ks=tuple(ks), nhid=nhid, offs=offs)
        feat, hz = pl.pallas_call(
            kernel,
            out_shape=(jax.ShapeDtypeStruct((1, mmhid), jnp.float32),
                       jax.ShapeDtypeStruct((1, label_dim), jnp.float32)),
            in_specs=[pl.BlockSpec(memory_space=VMEM)] * 7,
            out_specs=(pl.BlockSpec(memory_space=VMEM),
                       pl.BlockSpec(memory_space=VMEM)),
        )(x_pad, adj, params["wA"], params["wB"], params["wC"], params["z1_w"], params["fbias"])
        return feat, hz

    return forward


# ------------------------------------- main -------------------------------------

if __name__ == "__main__":
    key = jax.random.PRNGKey(0)
    kx, ksrc, kdst, ka, kp = jax.random.split(key, 5)

    # small synthetic graph consistent with GraphNet defaults (features=1036, nhid=128)
    N, F_IN, E = 40, 1036, 160
    x = jax.random.uniform(kx, (N, F_IN), jnp.float32)
    src = jax.random.randint(ksrc, (E,), 0, N, dtype=jnp.int32)
    dst = jax.random.randint(kdst, (E,), 0, N, dtype=jnp.int32)
    edge_index = jnp.stack([src, dst], axis=0)
    edge_attr = jax.random.uniform(ka, (E, 1), jnp.float32) + 0.1

    params, cfg = init_params(kp, feat=F_IN, nhid=128, grph_dim=32, mmhid=64, label_dim=1)
    forward = build_forward(cfg)

    features, hazard = forward(params, x, edge_index, edge_attr)
    features, hazard = jax.block_until_ready((features, hazard))

    assert features.shape == (1, 64) and hazard.shape == (1, 1)
    assert bool(jnp.all(jnp.isfinite(features))) and bool(jnp.all(jnp.isfinite(hazard)))
    print("KERNEL_OK")
</pallas_src>

<mosaic_0001>
module attributes {stable_mosaic.version = 11 : i64} {
  func.func private @main(%arg0: i32) attributes {dimension_semantics = [#tpu.dimension_semantics<core_parallel>], iteration_bounds = array<i64: 2>, tpu.core_type = #tpu.core_type<sc_scalar_subcore>, window_params = []} {
    return
  }
}

module attributes {stable_mosaic.version = 11 : i64} {
  func.func private @main(%arg0: i32) attributes {dimension_semantics = [#tpu.dimension_semantics<core_parallel>], iteration_bounds = array<i64: 2>, tpu.core_type = #tpu.core_type<sc_scalar_subcore>, window_params = []} {
    return
  }
}

module attributes {stable_mosaic.version = 11 : i64} {
  func.func @_fused_kernel(%arg0: memref<40x1152xf32, #tpu.memory_space<vmem>>, %arg1: memref<40x40xf32, #tpu.memory_space<vmem>>, %arg2: memref<2504x256xbf16, #tpu.memory_space<vmem>>, %arg3: memref<32x4864xbf16, #tpu.memory_space<vmem>>, %arg4: memref<1120x128xbf16, #tpu.memory_space<vmem>>, %arg5: memref<1024x32xbf16, #tpu.memory_space<vmem>>, %arg6: memref<1x4352xf32, #tpu.memory_space<vmem>>, %arg7: memref<1x64xf32, #tpu.memory_space<vmem>>, %arg8: memref<1x1xf32, #tpu.memory_space<vmem>>) attributes {dimension_semantics = [], scalar_prefetch = 0 : i64, scratch_operands = 0 : i64, tpu.core_type = #tpu.core_type<tc>} {
    %c0 = arith.constant 0 : index
    %c0_0 = arith.constant 0 : index
    %0 = vector.load %arg0[%c0, %c0_0] : memref<40x1152xf32, #tpu.memory_space<vmem>>, vector<40x1152xf32>
    %cst = arith.constant dense<0xFF800000> : vector<1152xf32>
    %1 = vector.multi_reduction <maximumf>, %0, %cst [0] : vector<40x1152xf32> to vector<1152xf32>
    %2 = vector.shape_cast %1 : vector<1152xf32> to vector<1x1152xf32>
    %cst_1 = arith.constant 0.000000e+00 : f32
    %3 = vector.broadcast %cst_1 : f32 to vector<1x1152xf32>
    %4 = arith.cmpf oeq, %2, %3 : vector<1x1152xf32>
    %cst_2 = arith.constant 1.000000e+00 : f32
    %5 = vector.broadcast %cst_2 : f32 to vector<1x1152xf32>
    %6 = arith.select %4, %5, %2 : vector<1x1152xi1>, vector<1x1152xf32>
    %7 = tpu.iota {dimensions = array<i32: 1>} : vector<1x1152xi32>
    %c12_i32 = arith.constant 12 : i32
    %8 = vector.broadcast %c12_i32 : i32 to vector<1x1152xi32>
    %9 = arith.cmpi slt, %7, %8 : vector<1x1152xi32>
    %10 = vector.broadcast %6 : vector<1x1152xf32> to vector<40x1152xf32>
    %11 = arith.divf %0, %10 : vector<40x1152xf32>
    %12 = vector.shape_cast %9 : vector<1x1152xi1> to vector<1x1152xi1>
    %13 = vector.broadcast %12 : vector<1x1152xi1> to vector<40x1152xi1>
    %14 = arith.select %13, %11, %0 : vector<40x1152xi1>, vector<40x1152xf32>
    %c0_3 = arith.constant 0 : index
    %c0_4 = arith.constant 0 : index
    %15 = vector.load %arg1[%c0_3, %c0_4] : memref<40x40xf32, #tpu.memory_space<vmem>>, vector<40x40xf32>
    %cst_5 = arith.constant dense<0.000000e+00> : vector<40xf32>
    %16 = vector.multi_reduction <add>, %15, %cst_5 [1] : vector<40x40xf32> to vector<40xf32>
    %17 = vector.shape_cast %16 : vector<40xf32> to vector<40x1xf32>
    %cst_6 = arith.constant 1.000000e+00 : f32
    %18 = vector.broadcast %cst_6 : f32 to vector<40x1xf32>
    %19 = arith.maximumf %17, %18 : vector<40x1xf32>
    %c0_7 = arith.constant 0 : index
    %c0_8 = arith.constant 0 : index
    %20 = vector.load %arg2[%c0_7, %c0_8] : memref<2504x256xbf16, #tpu.memory_space<vmem>>, vector<1152x256xbf16>
    %21 = arith.truncf %14 : vector<40x1152xf32> to vector<40x1152xbf16>
    %cst_9 = arith.constant dense<0.000000e+00> : vector<40x256xf32>
    %22 = tpu.matmul %21, %20, %cst_9 {dimension_numbers = #tpu.dot_dimension_numbers<[1], [0], [0], [1], [0, 0, 1, 1], [], []>} : vector<40x1152xbf16>, vector<1152x256xbf16>, vector<40x256xf32> -> vector<40x256xf32>
    %23 = tpu.reciprocal %19 {approx = true} : vector<40x1xf32> -> vector<40x1xf32>
    %24 = vector.extract_strided_slice %22 {offsets = [0, 0], sizes = [40, 128], strides = [1, 1]} : vector<40x256xf32> to vector<40x128xf32>
    %25 = arith.truncf %15 : vector<40x40xf32> to vector<40x40xbf16>
    %26 = arith.truncf %24 : vector<40x128xf32> to vector<40x128xbf16>
    %cst_10 = arith.constant dense<0.000000e+00> : vector<40x128xf32>
    %27 = tpu.matmul %25, %26, %cst_10 {dimension_numbers = #tpu.dot_dimension_numbers<[1], [0], [0], [1], [0, 0, 1, 1], [], []>} : vector<40x40xbf16>, vector<40x128xbf16>, vector<40x128xf32> -> vector<40x128xf32>
    %28 = vector.broadcast %23 : vector<40x1xf32> to vector<40x128xf32>
    %29 = arith.mulf %27, %28 : vector<40x128xf32>
    %30 = vector.extract_strided_slice %22 {offsets = [0, 128], sizes = [40, 128], strides = [1, 1]} : vector<40x256xf32> to vector<40x128xf32>
    %31 = arith.addf %29, %30 : vector<40x128xf32>
    %c0_11 = arith.constant 0 : index
    %c0_12 = arith.constant 0 : index
    %32 = vector.load %arg6[%c0_11, %c0_12] : memref<1x4352xf32, #tpu.memory_space<vmem>>, vector<1x128xf32>
    %33 = vector.broadcast %32 : vector<1x128xf32> to vector<40x128xf32>
    %34 = arith.addf %31, %33 : vector<40x128xf32>
    %cst_13 = arith.constant 0.000000e+00 : f32
    %35 = vector.broadcast %cst_13 : f32 to vector<40x128xf32>
    %36 = arith.maximumf %34, %35 : vector<40x128xf32>
    %c416 = arith.constant 416 : index
    %c0_14 = arith.constant 0 : index
    %37 = vector.load %arg4[%c416, %c0_14] : memref<1120x128xbf16, #tpu.memory_space<vmem>>, vector<128x2xbf16>
    %38 = arith.truncf %36 : vector<40x128xf32> to vector<40x128xbf16>
    %cst_15 = arith.constant dense<0.000000e+00> : vector<40x2xf32>
    %39 = tpu.matmul %38, %37, %cst_15 {dimension_numbers = #tpu.dot_dimension_numbers<[1], [0], [0], [1], [0, 0, 1, 1], [], []>} : vector<40x128xbf16>, vector<128x2xbf16>, vector<40x2xf32> -> vector<40x2xf32>
    %40 = vector.extract_strided_slice %39 {offsets = [0, 0], sizes = [40, 1], strides = [1, 1]} : vector<40x2xf32> to vector<40x1xf32>
    %41 = arith.truncf %15 : vector<40x40xf32> to vector<40x40xbf16>
    %42 = arith.truncf %40 : vector<40x1xf32> to vector<40x1xbf16>
    %cst_16 = arith.constant dense<0.000000e+00> : vector<40x1xf32>
    %43 = tpu.matmul %41, %42, %cst_16 {dimension_numbers = #tpu.dot_dimension_numbers<[1], [0], [0], [1], [0, 0, 1, 1], [], []>} : vector<40x40xbf16>, vector<40x1xbf16>, vector<40x1xf32> -> vector<40x1xf32>
    %44 = vector.extract_strided_slice %39 {offsets = [0, 1], sizes = [40, 1], strides = [1, 1]} : vector<40x2xf32> to vector<40x1xf32>
    %45 = arith.addf %43, %44 : vector<40x1xf32>
    %c0_17 = arith.constant 0 : index
    %c384 = arith.constant 384 : index
    %46 = vector.load %arg6[%c0_17, %c384] : memref<1x4352xf32, #tpu.memory_space<vmem>>, vector<1x1xf32>
    %47 = vector.broadcast %46 : vector<1x1xf32> to vector<40x1xf32>
    %48 = arith.addf %45, %47 : vector<40x1xf32>
    %cst_18 = arith.constant 1.000000e+00 : f32
    %49 = vector.broadcast %cst_18 : f32 to vector<40x1xf32>
    %50 = tpu.iota {dimensions = array<i32: 0>} : vector<40x1xi32>
    %51 = arith.sitofp %50 : vector<40x1xi32> to vector<40x1xf32>
    %52 = tpu.iota {dimensions = array<i32: 1>} : vector<1x40xi32>
    %53 = arith.sitofp %52 : vector<1x40xi32> to vector<1x40xf32>
    %cst_19 = arith.constant 0.000000e+00 : f32
    %54 = vector.broadcast %cst_19 : f32 to vector<40x1xf32>
    %55 = arith.cmpf ogt, %49, %54 : vector<40x1xf32>
    %cst_20 = arith.constant 0xFF800000 : f32
    %56 = vector.broadcast %cst_20 : f32 to vector<40x1xf32>
    %57 = arith.select %55, %48, %56 : vector<40x1xi1>, vector<40x1xf32>
    %cst_21 = arith.constant dense<0xFF800000> : vector<1xf32>
    %58 = vector.multi_reduction <maximumf>, %57, %cst_21 [0] : vector<40x1xf32> to vector<1xf32>
    %59 = vector.shape_cast %58 : vector<1xf32> to vector<1x1xf32>
    %60 = vector.broadcast %59 : vector<1x1xf32> to vector<40x1xf32>
    %61 = arith.cmpf oeq, %57, %60 : vector<40x1xf32>
    %cst_22 = arith.constant 4.000000e+01 : f32
    %62 = vector.broadcast %cst_22 : f32 to vector<40x1xf32>
    %63 = arith.select %61, %51, %62 : vector<40x1xi1>, vector<40x1xf32>
    %cst_23 = arith.constant dense<0x7F800000> : vector<1xf32>
    %64 = vector.multi_reduction <minimumf>, %63, %cst_23 [0] : vector<40x1xf32> to vector<1xf32>
    %65 = vector.shape_cast %64 : vector<1xf32> to vector<1x1xf32>
    %66 = vector.broadcast %65 : vector<1x1xf32> to vector<40x1xf32>
    %67 = arith.cmpf oeq, %51, %66 : vector<40x1xf32>
    %68 = arith.extui %67 : vector<40x1xi1> to vector<40x1xi32>
    %69 = arith.sitofp %68 : vector<40x1xi32> to vector<40x1xf32>
    %70 = vector.broadcast %65 : vector<1x1xf32> to vector<1x40xf32>
    %71 = arith.cmpf oeq, %53, %70 : vector<1x40xf32>
    %72 = arith.extui %71 : vector<1x40xi1> to vector<1x40xi32>
    %73 = arith.sitofp %72 : vector<1x40xi32> to vector<1x40xf32>
    %cst_24 = arith.constant 0.000000e+00 : f32
    %74 = vector.broadcast %cst_24 : f32 to vector<40x1xf32>
    %75 = arith.cmpf ogt, %69, %74 : vector<40x1xf32>
    %cst_25 = arith.constant 0xFF800000 : f32
    %76 = vector.broadcast %cst_25 : f32 to vector<40x1xf32>
    %77 = arith.select %75, %76, %57 : vector<40x1xi1>, vector<40x1xf32>
    %cst_26 = arith.constant dense<0xFF800000> : vector<1xf32>
    %78 = vector.multi_reduction <maximumf>, %77, %cst_26 [0] : vector<40x1xf32> to vector<1xf32>
    %79 = vector.shape_cast %78 : vector<1xf32> to vector<1x1xf32>
    %80 = vector.broadcast %79 : vector<1x1xf32> to vector<40x1xf32>
    %81 = arith.cmpf oeq, %77, %80 : vector<40x1xf32>
    %cst_27 = arith.constant 4.000000e+01 : f32
    %82 = vector.broadcast %cst_27 : f32 to vector<40x1xf32>
    %83 = arith.select %81, %51, %82 : vector<40x1xi1>, vector<40x1xf32>
    %cst_28 = arith.constant dense<0x7F800000> : vector<1xf32>
    %84 = vector.multi_reduction <minimumf>, %83, %cst_28 [0] : vector<40x1xf32> to vector<1xf32>
    %85 = vector.shape_cast %84 : vector<1xf32> to vector<1x1xf32>
    %86 = vector.broadcast %85 : vector<1x1xf32> to vector<40x1xf32>
    %87 = arith.cmpf oeq, %51, %86 : vector<40x1xf32>
    %88 = arith.extui %87 : vector<40x1xi1> to vector<40x1xi32>
    %89 = arith.sitofp %88 : vector<40x1xi32> to vector<40x1xf32>
    %90 = vector.broadcast %85 : vector<1x1xf32> to vector<1x40xf32>
    %91 = arith.cmpf oeq, %53, %90 : vector<1x40xf32>
    %92 = arith.extui %91 : vector<1x40xi1> to vector<1x40xi32>
    %93 = arith.sitofp %92 : vector<1x40xi32> to vector<1x40xf32>
    %cst_29 = arith.constant 0.000000e+00 : f32
    %94 = vector.broadcast %cst_29 : f32 to vector<40x1xf32>
    %95 = arith.cmpf ogt, %89, %94 : vector<40x1xf32>
    %cst_30 = arith.constant 0xFF800000 : f32
    %96 = vector.broadcast %cst_30 : f32 to vector<40x1xf32>
    %97 = arith.select %95, %96, %77 : vector<40x1xi1>, vector<40x1xf32>
    %cst_31 = arith.constant dense<0xFF800000> : vector<1xf32>
    %98 = vector.multi_reduction <maximumf>, %97, %cst_31 [0] : vector<40x1xf32> to vector<1xf32>
    %99 = vector.shape_cast %98 : vector<1xf32> to vector<1x1xf32>
    %100 = vector.broadcast %99 : vector<1x1xf32> to vector<40x1xf32>
    %101 = arith.cmpf oeq, %97, %100 : vector<40x1xf32>
    %cst_32 = arith.constant 4.000000e+01 : f32
    %102 = vector.broadcast %cst_32 : f32 to vector<40x1xf32>
    %103 = arith.select %101, %51, %102 : vector<40x1xi1>, vector<40x1xf32>
    %cst_33 = arith.constant dense<0x7F800000> : vector<1xf32>
    %104 = vector.multi_reduction <minimumf>, %103, %cst_33 [0] : vector<40x1xf32> to vector<1xf32>
    %105 = vector.shape_cast %104 : vector<1xf32> to vector<1x1xf32>
    %106 = vector.broadcast %105 : vector<1x1xf32> to vector<40x1xf32>
    %107 = arith.cmpf oeq, %51, %106 : vector<40x1xf32>
    %108 = arith.extui %107 : vector<40x1xi1> to vector<40x1xi32>
    %109 = arith.sitofp %108 : vector<40x1xi32> to vector<40x1xf32>
    %110 = vector.broadcast %105 : vector<1x1xf32> to vector<1x40xf32>
    %111 = arith.cmpf oeq, %53, %110 : vector<1x40xf32>
    %112 = arith.extui %111 : vector<1x40xi1> to vector<1x40xi32>
    %113 = arith.sitofp %112 : vector<1x40xi32> to vector<1x40xf32>
    %cst_34 = arith.constant 0.000000e+00 : f32
    %114 = vector.broadcast %cst_34 : f32 to vector<40x1xf32>
    %115 = arith.cmpf ogt, %109, %114 : vector<40x1xf32>
    %cst_35 = arith.constant 0xFF800000 : f32
    %116 = vector.broadcast %cst_35 : f32 to vector<40x1xf32>
    %117 = arith.select %115, %116, %97 : vector<40x1xi1>, vector<40x1xf32>
    %cst_36 = arith.constant dense<0xFF800000> : vector<1xf32>
    %118 = vector.multi_reduction <maximumf>, %117, %cst_36 [0] : vector<40x1xf32> to vector<1xf32>
    %119 = vector.shape_cast %118 : vector<1xf32> to vector<1x1xf32>
    %120 = vector.broadcast %119 : vector<1x1xf32> to vector<40x1xf32>
    %121 = arith.cmpf oeq, %117, %120 : vector<40x1xf32>
    %cst_37 = arith.constant 4.000000e+01 : f32
    %122 = vector.broadcast %cst_37 : f32 to vector<40x1xf32>
    %123 = arith.select %121, %51, %122 : vector<40x1xi1>, vector<40x1xf32>
    %cst_38 = arith.constant dense<0x7F800000> : vector<1xf32>
    %124 = vector.multi_reduction <minimumf>, %123, %cst_38 [0] : vector<40x1xf32> to vector<1xf32>
    %125 = vector.shape_cast %124 : vector<1xf32> to vector<1x1xf32>
    %126 = vector.broadcast %125 : vector<1x1xf32> to vector<40x1xf32>
    %127 = arith.cmpf oeq, %51, %126 : vector<40x1xf32>
    %128 = arith.extui %127 : vector<40x1xi1> to vector<40x1xi32>
    %129 = arith.sitofp %128 : vector<40x1xi32> to vector<40x1xf32>
    %130 = vector.broadcast %125 : vector<1x1xf32> to vector<1x40xf32>
    %131 = arith.cmpf oeq, %53, %130 : vector<1x40xf32>
    %132 = arith.extui %131 : vector<1x40xi1> to vector<1x40xi32>
    %133 = arith.sitofp %132 : vector<1x40xi32> to vector<1x40xf32>
    %cst_39 = arith.constant 0.000000e+00 : f32
    %134 = vector.broadcast %cst_39 : f32 to vector<40x1xf32>
    %135 = arith.cmpf ogt, %129, %134 : vector<40x1xf32>
    %cst_40 = arith.constant 0xFF800000 : f32
    %136 = vector.broadcast %cst_40 : f32 to vector<40x1xf32>
    %137 = arith.select %135, %136, %117 : vector<40x1xi1>, vector<40x1xf32>
    %cst_41 = arith.constant dense<0xFF800000> : vector<1xf32>
    %138 = vector.multi_reduction <maximumf>, %137, %cst_41 [0] : vector<40x1xf32> to vector<1xf32>
    %139 = vector.shape_cast %138 : vector<1xf32> to vector<1x1xf32>
    %140 = vector.broadcast %139 : vector<1x1xf32> to vector<40x1xf32>
    %141 = arith.cmpf oeq, %137, %140 : vector<40x1xf32>
    %cst_42 = arith.constant 4.000000e+01 : f32
    %142 = vector.broadcast %cst_42 : f32 to vector<40x1xf32>
    %143 = arith.select %141, %51, %142 : vector<40x1xi1>, vector<40x1xf32>
    %cst_43 = arith.constant dense<0x7F800000> : vector<1xf32>
    %144 = vector.multi_reduction <minimumf>, %143, %cst_43 [0] : vector<40x1xf32> to vector<1xf32>
    %145 = vector.shape_cast %144 : vector<1xf32> to vector<1x1xf32>
    %146 = vector.broadcast %145 : vector<1x1xf32> to vector<40x1xf32>
    %147 = arith.cmpf oeq, %51, %146 : vector<40x1xf32>
    %148 = arith.extui %147 : vector<40x1xi1> to vector<40x1xi32>
    %149 = arith.sitofp %148 : vector<40x1xi32> to vector<40x1xf32>
    %150 = vector.broadcast %145 : vector<1x1xf32> to vector<1x40xf32>
    %151 = arith.cmpf oeq, %53, %150 : vector<1x40xf32>
    %152 = arith.extui %151 : vector<1x40xi1> to vector<1x40xi32>
    %153 = arith.sitofp %152 : vector<1x40xi32> to vector<1x40xf32>
    %cst_44 = arith.constant 0.000000e+00 : f32
    %154 = vector.broadcast %cst_44 : f32 to vector<40x1xf32>
    %155 = arith.cmpf ogt, %149, %154 : vector<40x1xf32>
    %cst_45 = arith.constant 0xFF800000 : f32
    %156 = vector.broadcast %cst_45 : f32 to vector<40x1xf32>
    %157 = arith.select %155, %156, %137 : vector<40x1xi1>, vector<40x1xf32>
    %cst_46 = arith.constant dense<0xFF800000> : vector<1xf32>
    %158 = vector.multi_reduction <maximumf>, %157, %cst_46 [0] : vector<40x1xf32> to vector<1xf32>
    %159 = vector.shape_cast %158 : vector<1xf32> to vector<1x1xf32>
    %160 = vector.broadcast %159 : vector<1x1xf32> to vector<40x1xf32>
    %161 = arith.cmpf oeq, %157, %160 : vector<40x1xf32>
    %cst_47 = arith.constant 4.000000e+01 : f32
    %162 = vector.broadcast %cst_47 : f32 to vector<40x1xf32>
    %163 = arith.select %161, %51, %162 : vector<40x1xi1>, vector<40x1xf32>
    %cst_48 = arith.constant dense<0x7F800000> : vector<1xf32>
    %164 = vector.multi_reduction <minimumf>, %163, %cst_48 [0] : vector<40x1xf32> to vector<1xf32>
    %165 = vector.shape_cast %164 : vector<1xf32> to vector<1x1xf32>
    %166 = vector.broadcast %165 : vector<1x1xf32> to vector<40x1xf32>
    %167 = arith.cmpf oeq, %51, %166 : vector<40x1xf32>
    %168 = arith.extui %167 : vector<40x1xi1> to vector<40x1xi32>
    %169 = arith.sitofp %168 : vector<40x1xi32> to vector<40x1xf32>
    %170 = vector.broadcast %165 : vector<1x1xf32> to vector<1x40xf32>
    %171 = arith.cmpf oeq, %53, %170 : vector<1x40xf32>
    %172 = arith.extui %171 : vector<1x40xi1> to vector<1x40xi32>
    %173 = arith.sitofp %172 : vector<1x40xi32> to vector<1x40xf32>
    %cst_49 = arith.constant 0.000000e+00 : f32
    %174 = vector.broadcast %cst_49 : f32 to vector<40x1xf32>
    %175 = arith.cmpf ogt, %169, %174 : vector<40x1xf32>
    %cst_50 = arith.constant 0xFF800000 : f32
    %176 = vector.broadcast %cst_50 : f32 to vector<40x1xf32>
    %177 = arith.select %175, %176, %157 : vector<40x1xi1>, vector<40x1xf32>
    %cst_51 = arith.constant dense<0xFF800000> : vector<1xf32>
    %178 = vector.multi_reduction <maximumf>, %177, %cst_51 [0] : vector<40x1xf32> to vector<1xf32>
    %179 = vector.shape_cast %178 : vector<1xf32> to vector<1x1xf32>
    %180 = vector.broadcast %179 : vector<1x1xf32> to vector<40x1xf32>
    %181 = arith.cmpf oeq, %177, %180 : vector<40x1xf32>
    %cst_52 = arith.constant 4.000000e+01 : f32
    %182 = vector.broadcast %cst_52 : f32 to vector<40x1xf32>
    %183 = arith.select %181, %51, %182 : vector<40x1xi1>, vector<40x1xf32>
    %cst_53 = arith.constant dense<0x7F800000> : vector<1xf32>
    %184 = vector.multi_reduction <minimumf>, %183, %cst_53 [0] : vector<40x1xf32> to vector<1xf32>
    %185 = vector.shape_cast %184 : vector<1xf32> to vector<1x1xf32>
    %186 = vector.broadcast %185 : vector<1x1xf32> to vector<40x1xf32>
    %187 = arith.cmpf oeq, %51, %186 : vector<40x1xf32>
    %188 = arith.extui %187 : vector<40x1xi1> to vector<40x1xi32>
    %189 = arith.sitofp %188 : vector<40x1xi32> to vector<40x1xf32>
    %190 = vector.broadcast %185 : vector<1x1xf32> to vector<1x40xf32>
    %191 = arith.cmpf oeq, %53, %190 : vector<1x40xf32>
    %192 = arith.extui %191 : vector<1x40xi1> to vector<1x40xi32>
    %193 = arith.sitofp %192 : vector<1x40xi32> to vector<1x40xf32>
    %cst_54 = arith.constant 0.000000e+00 : f32
    %194 = vector.broadcast %cst_54 : f32 to vector<40x1xf32>
    %195 = arith.cmpf ogt, %189, %194 : vector<40x1xf32>
    %cst_55 = arith.constant 0xFF800000 : f32
    %196 = vector.broadcast %cst_55 : f32 to vector<40x1xf32>
    %197 = arith.select %195, %196, %177 : vector<40x1xi1>, vector<40x1xf32>
    %cst_56 = arith.constant dense<0xFF800000> : vector<1xf32>
    %198 = vector.multi_reduction <maximumf>, %197, %cst_56 [0] : vector<40x1xf32> to vector<1xf32>
    %199 = vector.shape_cast %198 : vector<1xf32> to vector<1x1xf32>
    %200 = vector.broadcast %199 : vector<1x1xf32> to vector<40x1xf32>
    %201 = arith.cmpf oeq, %197, %200 : vector<40x1xf32>
    %cst_57 = arith.constant 4.000000e+01 : f32
    %202 = vector.broadcast %cst_57 : f32 to vector<40x1xf32>
    %203 = arith.select %201, %51, %202 : vector<40x1xi1>, vector<40x1xf32>
    %cst_58 = arith.constant dense<0x7F800000> : vector<1xf32>
    %204 = vector.multi_reduction <minimumf>, %203, %cst_58 [0] : vector<40x1xf32> to vector<1xf32>
    %205 = vector.shape_cast %204 : vector<1xf32> to vector<1x1xf32>
    %206 = vector.broadcast %205 : vector<1x1xf32> to vector<40x1xf32>
    %207 = arith.cmpf oeq, %51, %206 : vector<40x1xf32>
    %208 = arith.extui %207 : vector<40x1xi1> to vector<40x1xi32>
    %209 = arith.sitofp %208 : vector<40x1xi32> to vector<40x1xf32>
    %210 = vector.broadcast %205 : vector<1x1xf32> to vector<1x40xf32>
    %211 = arith.cmpf oeq, %53, %210 : vector<1x40xf32>
    %212 = arith.extui %211 : vector<1x40xi1> to vector<1x40xi32>
    %213 = arith.sitofp %212 : vector<1x40xi32> to vector<1x40xf32>
    %214 = tpu.iota {dimensions = array<i32: 0>} : vector<8x1xi32>
    %215 = tpu.iota {dimensions = array<i32: 1>} : vector<1x8xi32>
    %cst_59 = arith.constant 0.000000e+00 : f32
    %216 = vector.broadcast %cst_59 : f32 to vector<8x40xf32>
    %cst_60 = arith.constant 0.000000e+00 : f32
    %217 = vector.broadcast %cst_60 : f32 to vector<40x8xf32>
    %c0_i32 = arith.constant 0 : i32
    %218 = vector.broadcast %c0_i32 : i32 to vector<8x1xi32>
    %219 = arith.cmpi eq, %214, %218 : vector<8x1xi32>
    %220 = arith.extui %219 : vector<8x1xi1> to vector<8x1xi32>
    %221 = arith.sitofp %220 : vector<8x1xi32> to vector<8x1xf32>
    %222 = vector.broadcast %221 : vector<8x1xf32> to vector<8x40xf32>
    %223 = vector.broadcast %73 : vector<1x40xf32> to vector<8x40xf32>
    %224 = arith.mulf %222, %223 : vector<8x40xf32>
    %225 = arith.addf %216, %224 : vector<8x40xf32>
    %c0_i32_61 = arith.constant 0 : i32
    %226 = vector.broadcast %c0_i32_61 : i32 to vector<1x8xi32>
    %227 = arith.cmpi eq, %215, %226 : vector<1x8xi32>
    %228 = arith.extui %227 : vector<1x8xi1> to vector<1x8xi32>
    %229 = arith.sitofp %228 : vector<1x8xi32> to vector<1x8xf32>
    %230 = vector.broadcast %69 : vector<40x1xf32> to vector<40x8xf32>
    %231 = vector.broadcast %229 : vector<1x8xf32> to vector<40x8xf32>
    %232 = arith.mulf %230, %231 : vector<40x8xf32>
    %233 = arith.addf %217, %232 : vector<40x8xf32>
    %c1_i32 = arith.constant 1 : i32
    %234 = vector.broadcast %c1_i32 : i32 to vector<8x1xi32>
    %235 = arith.cmpi eq, %214, %234 : vector<8x1xi32>
    %236 = arith.extui %235 : vector<8x1xi1> to vector<8x1xi32>
    %237 = arith.sitofp %236 : vector<8x1xi32> to vector<8x1xf32>
    %238 = vector.broadcast %237 : vector<8x1xf32> to vector<8x40xf32>
    %239 = vector.broadcast %93 : vector<1x40xf32> to vector<8x40xf32>
    %240 = arith.mulf %238, %239 : vector<8x40xf32>
    %241 = arith.addf %225, %240 : vector<8x40xf32>
    %c1_i32_62 = arith.constant 1 : i32
    %242 = vector.broadcast %c1_i32_62 : i32 to vector<1x8xi32>
    %243 = arith.cmpi eq, %215, %242 : vector<1x8xi32>
    %244 = arith.extui %243 : vector<1x8xi1> to vector<1x8xi32>
    %245 = arith.sitofp %244 : vector<1x8xi32> to vector<1x8xf32>
    %246 = vector.broadcast %89 : vector<40x1xf32> to vector<40x8xf32>
    %247 = vector.broadcast %245 : vector<1x8xf32> to vector<40x8xf32>
    %248 = arith.mulf %246, %247 : vector<40x8xf32>
    %249 = arith.addf %233, %248 : vector<40x8xf32>
    %c2_i32 = arith.constant 2 : i32
    %250 = vector.broadcast %c2_i32 : i32 to vector<8x1xi32>
    %251 = arith.cmpi eq, %214, %250 : vector<8x1xi32>
    %252 = arith.extui %251 : vector<8x1xi1> to vector<8x1xi32>
    %253 = arith.sitofp %252 : vector<8x1xi32> to vector<8x1xf32>
    %254 = vector.broadcast %253 : vector<8x1xf32> to vector<8x40xf32>
    %255 = vector.broadcast %113 : vector<1x40xf32> to vector<8x40xf32>
    %256 = arith.mulf %254, %255 : vector<8x40xf32>
    %257 = arith.addf %241, %256 : vector<8x40xf32>
    %c2_i32_63 = arith.constant 2 : i32
    %258 = vector.broadcast %c2_i32_63 : i32 to vector<1x8xi32>
    %259 = arith.cmpi eq, %215, %258 : vector<1x8xi32>
    %260 = arith.extui %259 : vector<1x8xi1> to vector<1x8xi32>
    %261 = arith.sitofp %260 : vector<1x8xi32> to vector<1x8xf32>
    %262 = vector.broadcast %109 : vector<40x1xf32> to vector<40x8xf32>
    %263 = vector.broadcast %261 : vector<1x8xf32> to vector<40x8xf32>
    %264 = arith.mulf %262, %263 : vector<40x8xf32>
    %265 = arith.addf %249, %264 : vector<40x8xf32>
    %c3_i32 = arith.constant 3 : i32
    %266 = vector.broadcast %c3_i32 : i32 to vector<8x1xi32>
    %267 = arith.cmpi eq, %214, %266 : vector<8x1xi32>
    %268 = arith.extui %267 : vector<8x1xi1> to vector<8x1xi32>
    %269 = arith.sitofp %268 : vector<8x1xi32> to vector<8x1xf32>
    %270 = vector.broadcast %269 : vector<8x1xf32> to vector<8x40xf32>
    %271 = vector.broadcast %133 : vector<1x40xf32> to vector<8x40xf32>
    %272 = arith.mulf %270, %271 : vector<8x40xf32>
    %273 = arith.addf %257, %272 : vector<8x40xf32>
    %c3_i32_64 = arith.constant 3 : i32
    %274 = vector.broadcast %c3_i32_64 : i32 to vector<1x8xi32>
    %275 = arith.cmpi eq, %215, %274 : vector<1x8xi32>
    %276 = arith.extui %275 : vector<1x8xi1> to vector<1x8xi32>
    %277 = arith.sitofp %276 : vector<1x8xi32> to vector<1x8xf32>
    %278 = vector.broadcast %129 : vector<40x1xf32> to vector<40x8xf32>
    %279 = vector.broadcast %277 : vector<1x8xf32> to vector<40x8xf32>
    %280 = arith.mulf %278, %279 : vector<40x8xf32>
    %281 = arith.addf %265, %280 : vector<40x8xf32>
    %c4_i32 = arith.constant 4 : i32
    %282 = vector.broadcast %c4_i32 : i32 to vector<8x1xi32>
    %283 = arith.cmpi eq, %214, %282 : vector<8x1xi32>
    %284 = arith.extui %283 : vector<8x1xi1> to vector<8x1xi32>
    %285 = arith.sitofp %284 : vector<8x1xi32> to vector<8x1xf32>
    %286 = vector.broadcast %285 : vector<8x1xf32> to vector<8x40xf32>
    %287 = vector.broadcast %153 : vector<1x40xf32> to vector<8x40xf32>
    %288 = arith.mulf %286, %287 : vector<8x40xf32>
    %289 = arith.addf %273, %288 : vector<8x40xf32>
    %c4_i32_65 = arith.constant 4 : i32
    %290 = vector.broadcast %c4_i32_65 : i32 to vector<1x8xi32>
    %291 = arith.cmpi eq, %215, %290 : vector<1x8xi32>
    %292 = arith.extui %291 : vector<1x8xi1> to vector<1x8xi32>
    %293 = arith.sitofp %292 : vector<1x8xi32> to vector<1x8xf32>
    %294 = vector.broadcast %149 : vector<40x1xf32> to vector<40x8xf32>
    %295 = vector.broadcast %293 : vector<1x8xf32> to vector<40x8xf32>
    %296 = arith.mulf %294, %295 : vector<40x8xf32>
    %297 = arith.addf %281, %296 : vector<40x8xf32>
    %c5_i32 = arith.constant 5 : i32
    %298 = vector.broadcast %c5_i32 : i32 to vector<8x1xi32>
    %299 = arith.cmpi eq, %214, %298 : vector<8x1xi32>
    %300 = arith.extui %299 : vector<8x1xi1> to vector<8x1xi32>
    %301 = arith.sitofp %300 : vector<8x1xi32> to vector<8x1xf32>
    %302 = vector.broadcast %301 : vector<8x1xf32> to vector<8x40xf32>
    %303 = vector.broadcast %173 : vector<1x40xf32> to vector<8x40xf32>
    %304 = arith.mulf %302, %303 : vector<8x40xf32>
    %305 = arith.addf %289, %304 : vector<8x40xf32>
    %c5_i32_66 = arith.constant 5 : i32
    %306 = vector.broadcast %c5_i32_66 : i32 to vector<1x8xi32>
    %307 = arith.cmpi eq, %215, %306 : vector<1x8xi32>
    %308 = arith.extui %307 : vector<1x8xi1> to vector<1x8xi32>
    %309 = arith.sitofp %308 : vector<1x8xi32> to vector<1x8xf32>
    %310 = vector.broadcast %169 : vector<40x1xf32> to vector<40x8xf32>
    %311 = vector.broadcast %309 : vector<1x8xf32> to vector<40x8xf32>
    %312 = arith.mulf %310, %311 : vector<40x8xf32>
    %313 = arith.addf %297, %312 : vector<40x8xf32>
    %c6_i32 = arith.constant 6 : i32
    %314 = vector.broadcast %c6_i32 : i32 to vector<8x1xi32>
    %315 = arith.cmpi eq, %214, %314 : vector<8x1xi32>
    %316 = arith.extui %315 : vector<8x1xi1> to vector<8x1xi32>
    %317 = arith.sitofp %316 : vector<8x1xi32> to vector<8x1xf32>
    %318 = vector.broadcast %317 : vector<8x1xf32> to vector<8x40xf32>
    %319 = vector.broadcast %193 : vector<1x40xf32> to vector<8x40xf32>
    %320 = arith.mulf %318, %319 : vector<8x40xf32>
    %321 = arith.addf %305, %320 : vector<8x40xf32>
    %c6_i32_67 = arith.constant 6 : i32
    %322 = vector.broadcast %c6_i32_67 : i32 to vector<1x8xi32>
    %323 = arith.cmpi eq, %215, %322 : vector<1x8xi32>
    %324 = arith.extui %323 : vector<1x8xi1> to vector<1x8xi32>
    %325 = arith.sitofp %324 : vector<1x8xi32> to vector<1x8xf32>
    %326 = vector.broadcast %189 : vector<40x1xf32> to vector<40x8xf32>
    %327 = vector.broadcast %325 : vector<1x8xf32> to vector<40x8xf32>
    %328 = arith.mulf %326, %327 : vector<40x8xf32>
    %329 = arith.addf %313, %328 : vector<40x8xf32>
    %c7_i32 = arith.constant 7 : i32
    %330 = vector.broadcast %c7_i32 : i32 to vector<8x1xi32>
    %331 = arith.cmpi eq, %214, %330 : vector<8x1xi32>
    %332 = arith.extui %331 : vector<8x1xi1> to vector<8x1xi32>
    %333 = arith.sitofp %332 : vector<8x1xi32> to vector<8x1xf32>
    %334 = vector.broadcast %333 : vector<8x1xf32> to vector<8x40xf32>
    %335 = vector.broadcast %213 : vector<1x40xf32> to vector<8x40xf32>
    %336 = arith.mulf %334, %335 : vector<8x40xf32>
    %337 = arith.addf %321, %336 : vector<8x40xf32>
    %c7_i32_68 = arith.constant 7 : i32
    %338 = vector.broadcast %c7_i32_68 : i32 to vector<1x8xi32>
    %339 = arith.cmpi eq, %215, %338 : vector<1x8xi32>
    %340 = arith.extui %339 : vector<1x8xi1> to vector<1x8xi32>
    %341 = arith.sitofp %340 : vector<1x8xi32> to vector<1x8xf32>
    %342 = vector.broadcast %209 : vector<40x1xf32> to vector<40x8xf32>
    %343 = vector.broadcast %341 : vector<1x8xf32> to vector<40x8xf32>
    %344 = arith.mulf %342, %343 : vector<40x8xf32>
    %345 = arith.addf %329, %344 : vector<40x8xf32>
    %346 = math.tanh %48 : vector<40x1xf32>
    %347 = vector.broadcast %346 : vector<40x1xf32> to vector<40x128xf32>
    %348 = arith.mulf %36, %347 : vector<40x128xf32>
    %349 = arith.truncf %337 : vector<8x40xf32> to vector<8x40xbf16>
    %350 = arith.truncf %348 : vector<40x128xf32> to vector<40x128xbf16>
    %cst_69 = arith.constant dense<0.000000e+00> : vector<8x128xf32>
    %351 = tpu.matmul %349, %350, %cst_69 {dimension_numbers = #tpu.dot_dimension_numbers<[1], [0], [0], [1], [0, 0, 1, 1], [], []>} : vector<8x40xbf16>, vector<40x128xbf16>, vector<8x128xf32> -> vector<8x128xf32>
    %352 = arith.truncf %337 : vector<8x40xf32> to vector<8x40xbf16>
    %353 = arith.truncf %15 : vector<40x40xf32> to vector<40x40xbf16>
    %cst_70 = arith.constant dense<0.000000e+00> : vector<8x40xf32>
    %354 = tpu.matmul %352, %353, %cst_70 {dimension_numbers = #tpu.dot_dimension_numbers<[1], [0], [0], [1], [0, 0, 1, 1], [], []>} : vector<8x40xbf16>, vector<40x40xbf16>, vector<8x40xf32> -> vector<8x40xf32>
    %355 = arith.truncf %354 : vector<8x40xf32> to vector<8x40xbf16>
    %356 = arith.truncf %345 : vector<40x8xf32> to vector<40x8xbf16>
    %cst_71 = arith.constant dense<0.000000e+00> : vector<8x8xf32>
    %357 = tpu.matmul %355, %356, %cst_71 {dimension_numbers = #tpu.dot_dimension_numbers<[1], [0], [0], [1], [0, 0, 1, 1], [], []>} : vector<8x40xbf16>, vector<40x8xbf16>, vector<8x8xf32> -> vector<8x8xf32>
    %cst_72 = arith.constant dense<0xFF800000> : vector<128xf32>
    %358 = vector.multi_reduction <maximumf>, %351, %cst_72 [0] : vector<8x128xf32> to vector<128xf32>
    %359 = vector.shape_cast %358 : vector<128xf32> to vector<1x128xf32>
    %cst_73 = arith.constant dense<0.000000e+00> : vector<128xf32>
    %360 = vector.multi_reduction <add>, %351, %cst_73 [0] : vector<8x128xf32> to vector<128xf32>
    %361 = vector.shape_cast %360 : vector<128xf32> to vector<1x128xf32>
    %cst_74 = arith.constant 1.250000e-01 : f32
    %362 = vector.broadcast %cst_74 : f32 to vector<1x128xf32>
    %363 = arith.mulf %361, %362 : vector<1x128xf32>
    %cst_75 = arith.constant dense<0.000000e+00> : vector<8xf32>
    %364 = vector.multi_reduction <add>, %357, %cst_75 [1] : vector<8x8xf32> to vector<8xf32>
    %365 = vector.shape_cast %364 : vector<8xf32> to vector<8x1xf32>
    %cst_76 = arith.constant 1.000000e+00 : f32
    %366 = vector.broadcast %cst_76 : f32 to vector<8x1xf32>
    %367 = arith.maximumf %365, %366 : vector<8x1xf32>
    %c1152 = arith.constant 1152 : index
    %c0_77 = arith.constant 0 : index
    %368 = vector.load %arg2[%c1152, %c0_77] : memref<2504x256xbf16, #tpu.memory_space<vmem>>, vector<128x256xbf16>
    %369 = arith.truncf %351 : vector<8x128xf32> to vector<8x128xbf16>
    %cst_78 = arith.constant dense<0.000000e+00> : vector<8x256xf32>
    %370 = tpu.matmul %369, %368, %cst_78 {dimension_numbers = #tpu.dot_dimension_numbers<[1], [0], [0], [1], [0, 0, 1, 1], [], []>} : vector<8x128xbf16>, vector<128x256xbf16>, vector<8x256xf32> -> vector<8x256xf32>
    %371 = tpu.reciprocal %367 {approx = true} : vector<8x1xf32> -> vector<8x1xf32>
    %372 = vector.extract_strided_slice %370 {offsets = [0, 0], sizes = [8, 128], strides = [1, 1]} : vector<8x256xf32> to vector<8x128xf32>
    %373 = arith.truncf %357 : vector<8x8xf32> to vector<8x8xbf16>
    %374 = arith.truncf %372 : vector<8x128xf32> to vector<8x128xbf16>
    %cst_79 = arith.constant dense<0.000000e+00> : vector<8x128xf32>
    %375 = tpu.matmul %373, %374, %cst_79 {dimension_numbers = #tpu.dot_dimension_numbers<[1], [0], [0], [1], [0, 0, 1, 1], [], []>} : vector<8x8xbf16>, vector<8x128xbf16>, vector<8x128xf32> -> vector<8x128xf32>
    %376 = vector.broadcast %371 : vector<8x1xf32> to vector<8x128xf32>
    %377 = arith.mulf %375, %376 : vector<8x128xf32>
    %378 = vector.extract_strided_slice %370 {offsets = [0, 128], sizes = [8, 128], strides = [1, 1]} : vector<8x256xf32> to vector<8x128xf32>
    %379 = arith.addf %377, %378 : vector<8x128xf32>
    %c0_80 = arith.constant 0 : index
    %c128 = arith.constant 128 : index
    %380 = vector.load %arg6[%c0_80, %c128] : memref<1x4352xf32, #tpu.memory_space<vmem>>, vector<1x128xf32>
    %381 = vector.broadcast %380 : vector<1x128xf32> to vector<8x128xf32>
    %382 = arith.addf %379, %381 : vector<8x128xf32>
    %cst_81 = arith.constant 0.000000e+00 : f32
    %383 = vector.broadcast %cst_81 : f32 to vector<8x128xf32>
    %384 = arith.maximumf %382, %383 : vector<8x128xf32>
    %c544 = arith.constant 544 : index
    %c0_82 = arith.constant 0 : index
    %385 = vector.load %arg4[%c544, %c0_82] : memref<1120x128xbf16, #tpu.memory_space<vmem>>, vector<128x2xbf16>
    %386 = arith.truncf %384 : vector<8x128xf32> to vector<8x128xbf16>
    %cst_83 = arith.constant dense<0.000000e+00> : vector<8x2xf32>
    %387 = tpu.matmul %386, %385, %cst_83 {dimension_numbers = #tpu.dot_dimension_numbers<[1], [0], [0], [1], [0, 0, 1, 1], [], []>} : vector<8x128xbf16>, vector<128x2xbf16>, vector<8x2xf32> -> vector<8x2xf32>
    %388 = vector.extract_strided_slice %387 {offsets = [0, 0], sizes = [8, 1], strides = [1, 1]} : vector<8x2xf32> to vector<8x1xf32>
    %389 = arith.truncf %357 : vector<8x8xf32> to vector<8x8xbf16>
    %390 = arith.truncf %388 : vector<8x1xf32> to vector<8x1xbf16>
    %cst_84 = arith.constant dense<0.000000e+00> : vector<8x1xf32>
    %391 = tpu.matmul %389, %390, %cst_84 {dimension_numbers = #tpu.dot_dimension_numbers<[1], [0], [0], [1], [0, 0, 1, 1], [], []>} : vector<8x8xbf16>, vector<8x1xbf16>, vector<8x1xf32> -> vector<8x1xf32>
    %392 = vector.extract_strided_slice %387 {offsets = [0, 1], sizes = [8, 1], strides = [1, 1]} : vector<8x2xf32> to vector<8x1xf32>
    %393 = arith.addf %391, %392 : vector<8x1xf32>
    %c0_85 = arith.constant 0 : index
    %c512 = arith.constant 512 : index
    %394 = vector.load %arg6[%c0_85, %c512] : memref<1x4352xf32, #tpu.memory_space<vmem>>, vector<1x1xf32>
    %395 = vector.broadcast %394 : vector<1x1xf32> to vector<8x1xf32>
    %396 = arith.addf %393, %395 : vector<8x1xf32>
    %cst_86 = arith.constant 1.000000e+00 : f32
    %397 = vector.broadcast %cst_86 : f32 to vector<8x1xf32>
    %398 = tpu.iota {dimensions = array<i32: 0>} : vector<8x1xi32>
    %399 = arith.sitofp %398 : vector<8x1xi32> to vector<8x1xf32>
    %400 = tpu.iota {dimensions = array<i32: 1>} : vector<1x8xi32>
    %401 = arith.sitofp %400 : vector<1x8xi32> to vector<1x8xf32>
    %cst_87 = arith.constant 0.000000e+00 : f32
    %402 = vector.broadcast %cst_87 : f32 to vector<8x1xf32>
    %403 = arith.cmpf ogt, %397, %402 : vector<8x1xf32>
    %cst_88 = arith.constant 0xFF800000 : f32
    %404 = vector.broadcast %cst_88 : f32 to vector<8x1xf32>
    %405 = arith.select %403, %396, %404 : vector<8x1xi1>, vector<8x1xf32>
    %cst_89 = arith.constant dense<0xFF800000> : vector<1xf32>
    %406 = vector.multi_reduction <maximumf>, %405, %cst_89 [0] : vector<8x1xf32> to vector<1xf32>
    %407 = vector.shape_cast %406 : vector<1xf32> to vector<1x1xf32>
    %408 = vector.broadcast %407 : vector<1x1xf32> to vector<8x1xf32>
    %409 = arith.cmpf oeq, %405, %408 : vector<8x1xf32>
    %cst_90 = arith.constant 8.000000e+00 : f32
    %410 = vector.broadcast %cst_90 : f32 to vector<8x1xf32>
    %411 = arith.select %409, %399, %410 : vector<8x1xi1>, vector<8x1xf32>
    %cst_91 = arith.constant dense<0x7F800000> : vector<1xf32>
    %412 = vector.multi_reduction <minimumf>, %411, %cst_91 [0] : vector<8x1xf32> to vector<1xf32>
    %413 = vector.shape_cast %412 : vector<1xf32> to vector<1x1xf32>
    %414 = vector.broadcast %413 : vector<1x1xf32> to vector<8x1xf32>
    %415 = arith.cmpf oeq, %399, %414 : vector<8x1xf32>
    %416 = arith.extui %415 : vector<8x1xi1> to vector<8x1xi32>
    %417 = arith.sitofp %416 : vector<8x1xi32> to vector<8x1xf32>
    %418 = vector.broadcast %413 : vector<1x1xf32> to vector<1x8xf32>
    %419 = arith.cmpf oeq, %401, %418 : vector<1x8xf32>
    %420 = arith.extui %419 : vector<1x8xi1> to vector<1x8xi32>
    %421 = arith.sitofp %420 : vector<1x8xi32> to vector<1x8xf32>
    %cst_92 = arith.constant 0.000000e+00 : f32
    %422 = vector.broadcast %cst_92 : f32 to vector<8x1xf32>
    %423 = arith.cmpf ogt, %417, %422 : vector<8x1xf32>
    %cst_93 = arith.constant 0xFF800000 : f32
    %424 = vector.broadcast %cst_93 : f32 to vector<8x1xf32>
    %425 = arith.select %423, %424, %405 : vector<8x1xi1>, vector<8x1xf32>
    %cst_94 = arith.constant dense<0xFF800000> : vector<1xf32>
    %426 = vector.multi_reduction <maximumf>, %425, %cst_94 [0] : vector<8x1xf32> to vector<1xf32>
    %427 = vector.shape_cast %426 : vector<1xf32> to vector<1x1xf32>
    %428 = vector.broadcast %427 : vector<1x1xf32> to vector<8x1xf32>
    %429 = arith.cmpf oeq, %425, %428 : vector<8x1xf32>
    %cst_95 = arith.constant 8.000000e+00 : f32
    %430 = vector.broadcast %cst_95 : f32 to vector<8x1xf32>
    %431 = arith.select %429, %399, %430 : vector<8x1xi1>, vector<8x1xf32>
    %cst_96 = arith.constant dense<0x7F800000> : vector<1xf32>
    %432 = vector.multi_reduction <minimumf>, %431, %cst_96 [0] : vector<8x1xf32> to vector<1xf32>
    %433 = vector.shape_cast %432 : vector<1xf32> to vector<1x1xf32>
    %434 = vector.broadcast %433 : vector<1x1xf32> to vector<8x1xf32>
    %435 = arith.cmpf oeq, %399, %434 : vector<8x1xf32>
    %436 = arith.extui %435 : vector<8x1xi1> to vector<8x1xi32>
    %437 = arith.sitofp %436 : vector<8x1xi32> to vector<8x1xf32>
    %438 = vector.broadcast %433 : vector<1x1xf32> to vector<1x8xf32>
    %439 = arith.cmpf oeq, %401, %438 : vector<1x8xf32>
    %440 = arith.extui %439 : vector<1x8xi1> to vector<1x8xi32>
    %441 = arith.sitofp %440 : vector<1x8xi32> to vector<1x8xf32>
    %442 = arith.addf %417, %437 : vector<8x1xf32>
    %443 = arith.addf %421, %441 : vector<1x8xf32>
    %444 = math.tanh %396 : vector<8x1xf32>
    %445 = vector.broadcast %444 : vector<8x1xf32> to vector<8x128xf32>
    %446 = arith.mulf %384, %445 : vector<8x128xf32>
    %447 = vector.broadcast %442 : vector<8x1xf32> to vector<8x128xf32>
    %448 = arith.mulf %446, %447 : vector<8x128xf32>
    %cst_97 = arith.constant 0.000000e+00 : f32
    %449 = vector.broadcast %cst_97 : f32 to vector<8x1xf32>
    %450 = arith.cmpf ogt, %442, %449 : vector<8x1xf32>
    %cst_98 = arith.constant 0xFF800000 : f32
    %451 = vector.shape_cast %450 : vector<8x1xi1> to vector<8x1xi1>
    %452 = vector.broadcast %451 : vector<8x1xi1> to vector<8x128xi1>
    %453 = vector.broadcast %cst_98 : f32 to vector<8x128xf32>
    %454 = arith.select %452, %448, %453 : vector<8x128xi1>, vector<8x128xf32>
    %cst_99 = arith.constant dense<0xFF800000> : vector<128xf32>
    %455 = vector.multi_reduction <maximumf>, %454, %cst_99 [0] : vector<8x128xf32> to vector<128xf32>
    %456 = vector.shape_cast %455 : vector<128xf32> to vector<1x128xf32>
    %cst_100 = arith.constant dense<0.000000e+00> : vector<128xf32>
    %457 = vector.multi_reduction <add>, %448, %cst_100 [0] : vector<8x128xf32> to vector<128xf32>
    %458 = vector.shape_cast %457 : vector<128xf32> to vector<1x128xf32>
    %cst_101 = arith.constant 5.000000e-01 : f32
    %459 = vector.broadcast %cst_101 : f32 to vector<1x128xf32>
    %460 = arith.mulf %458, %459 : vector<1x128xf32>
    %461 = vector.broadcast %443 : vector<1x8xf32> to vector<8x8xf32>
    %462 = arith.mulf %357, %461 : vector<8x8xf32>
    %cst_102 = arith.constant dense<0.000000e+00> : vector<8xf32>
    %463 = vector.multi_reduction <add>, %462, %cst_102 [1] : vector<8x8xf32> to vector<8xf32>
    %464 = vector.shape_cast %463 : vector<8xf32> to vector<8x1xf32>
    %cst_103 = arith.constant 1.000000e+00 : f32
    %465 = vector.broadcast %cst_103 : f32 to vector<8x1xf32>
    %466 = arith.maximumf %464, %465 : vector<8x1xf32>
    %c1280 = arith.constant 1280 : index
    %c0_104 = arith.constant 0 : index
    %467 = vector.load %arg2[%c1280, %c0_104] : memref<2504x256xbf16, #tpu.memory_space<vmem>>, vector<128x256xbf16>
    %468 = arith.truncf %448 : vector<8x128xf32> to vector<8x128xbf16>
    %cst_105 = arith.constant dense<0.000000e+00> : vector<8x256xf32>
    %469 = tpu.matmul %468, %467, %cst_105 {dimension_numbers = #tpu.dot_dimension_numbers<[1], [0], [0], [1], [0, 0, 1, 1], [], []>} : vector<8x128xbf16>, vector<128x256xbf16>, vector<8x256xf32> -> vector<8x256xf32>
    %470 = tpu.reciprocal %466 {approx = true} : vector<8x1xf32> -> vector<8x1xf32>
    %471 = vector.extract_strided_slice %469 {offsets = [0, 0], sizes = [8, 128], strides = [1, 1]} : vector<8x256xf32> to vector<8x128xf32>
    %472 = arith.truncf %462 : vector<8x8xf32> to vector<8x8xbf16>
    %473 = arith.truncf %471 : vector<8x128xf32> to vector<8x128xbf16>
    %cst_106 = arith.constant dense<0.000000e+00> : vector<8x128xf32>
    %474 = tpu.matmul %472, %473, %cst_106 {dimension_numbers = #tpu.dot_dimension_numbers<[1], [0], [0], [1], [0, 0, 1, 1], [], []>} : vector<8x8xbf16>, vector<8x128xbf16>, vector<8x128xf32> -> vector<8x128xf32>
    %475 = vector.broadcast %470 : vector<8x1xf32> to vector<8x128xf32>
    %476 = arith.mulf %474, %475 : vector<8x128xf32>
    %477 = vector.extract_strided_slice %469 {offsets = [0, 128], sizes = [8, 128], strides = [1, 1]} : vector<8x256xf32> to vector<8x128xf32>
    %478 = arith.addf %476, %477 : vector<8x128xf32>
    %c0_107 = arith.constant 0 : index
    %c256 = arith.constant 256 : index
    %479 = vector.load %arg6[%c0_107, %c256] : memref<1x4352xf32, #tpu.memory_space<vmem>>, vector<1x128xf32>
    %480 = vector.broadcast %479 : vector<1x128xf32> to vector<8x128xf32>
    %481 = arith.addf %478, %480 : vector<8x128xf32>
    %cst_108 = arith.constant 0.000000e+00 : f32
    %482 = vector.broadcast %cst_108 : f32 to vector<8x128xf32>
    %483 = arith.maximumf %481, %482 : vector<8x128xf32>
    %c672 = arith.constant 672 : index
    %c0_109 = arith.constant 0 : index
    %484 = vector.load %arg4[%c672, %c0_109] : memref<1120x128xbf16, #tpu.memory_space<vmem>>, vector<128x2xbf16>
    %485 = arith.truncf %483 : vector<8x128xf32> to vector<8x128xbf16>
    %cst_110 = arith.constant dense<0.000000e+00> : vector<8x2xf32>
    %486 = tpu.matmul %485, %484, %cst_110 {dimension_numbers = #tpu.dot_dimension_numbers<[1], [0], [0], [1], [0, 0, 1, 1], [], []>} : vector<8x128xbf16>, vector<128x2xbf16>, vector<8x2xf32> -> vector<8x2xf32>
    %487 = vector.extract_strided_slice %486 {offsets = [0, 0], sizes = [8, 1], strides = [1, 1]} : vector<8x2xf32> to vector<8x1xf32>
    %488 = arith.truncf %462 : vector<8x8xf32> to vector<8x8xbf16>
    %489 = arith.truncf %487 : vector<8x1xf32> to vector<8x1xbf16>
    %cst_111 = arith.constant dense<0.000000e+00> : vector<8x1xf32>
    %490 = tpu.matmul %488, %489, %cst_111 {dimension_numbers = #tpu.dot_dimension_numbers<[1], [0], [0], [1], [0, 0, 1, 1], [], []>} : vector<8x8xbf16>, vector<8x1xbf16>, vector<8x1xf32> -> vector<8x1xf32>
    %491 = vector.extract_strided_slice %486 {offsets = [0, 1], sizes = [8, 1], strides = [1, 1]} : vector<8x2xf32> to vector<8x1xf32>
    %492 = arith.addf %490, %491 : vector<8x1xf32>
    %c0_112 = arith.constant 0 : index
    %c640 = arith.constant 640 : index
    %493 = vector.load %arg6[%c0_112, %c640] : memref<1x4352xf32, #tpu.memory_space<vmem>>, vector<1x1xf32>
    %494 = vector.broadcast %493 : vector<1x1xf32> to vector<8x1xf32>
    %495 = arith.addf %492, %494 : vector<8x1xf32>
    %496 = tpu.iota {dimensions = array<i32: 0>} : vector<8x1xi32>
    %497 = arith.sitofp %496 : vector<8x1xi32> to vector<8x1xf32>
    %cst_113 = arith.constant 0.000000e+00 : f32
    %498 = vector.broadcast %cst_113 : f32 to vector<8x1xf32>
    %499 = arith.cmpf ogt, %442, %498 : vector<8x1xf32>
    %cst_114 = arith.constant 0xFF800000 : f32
    %500 = vector.broadcast %cst_114 : f32 to vector<8x1xf32>
    %501 = arith.select %499, %495, %500 : vector<8x1xi1>, vector<8x1xf32>
    %cst_115 = arith.constant dense<0xFF800000> : vector<1xf32>
    %502 = vector.multi_reduction <maximumf>, %501, %cst_115 [0] : vector<8x1xf32> to vector<1xf32>
    %503 = vector.shape_cast %502 : vector<1xf32> to vector<1x1xf32>
    %504 = vector.broadcast %503 : vector<1x1xf32> to vector<8x1xf32>
    %505 = arith.cmpf oeq, %501, %504 : vector<8x1xf32>
    %cst_116 = arith.constant 8.000000e+00 : f32
    %506 = vector.broadcast %cst_116 : f32 to vector<8x1xf32>
    %507 = arith.select %505, %497, %506 : vector<8x1xi1>, vector<8x1xf32>
    %cst_117 = arith.constant dense<0x7F800000> : vector<1xf32>
    %508 = vector.multi_reduction <minimumf>, %507, %cst_117 [0] : vector<8x1xf32> to vector<1xf32>
    %509 = vector.shape_cast %508 : vector<1xf32> to vector<1x1xf32>
    %510 = vector.broadcast %509 : vector<1x1xf32> to vector<8x1xf32>
    %511 = arith.cmpf oeq, %497, %510 : vector<8x1xf32>
    %512 = arith.extui %511 : vector<8x1xi1> to vector<8x1xi32>
    %513 = arith.sitofp %512 : vector<8x1xi32> to vector<8x1xf32>
    %514 = math.tanh %495 : vector<8x1xf32>
    %515 = vector.broadcast %514 : vector<8x1xf32> to vector<8x128xf32>
    %516 = arith.mulf %483, %515 : vector<8x128xf32>
    %517 = vector.broadcast %513 : vector<8x1xf32> to vector<8x128xf32>
    %518 = arith.mulf %516, %517 : vector<8x128xf32>
    %cst_118 = arith.constant 0.000000e+00 : f32
    %519 = vector.broadcast %cst_118 : f32 to vector<8x1xf32>
    %520 = arith.cmpf ogt, %513, %519 : vector<8x1xf32>
    %cst_119 = arith.constant 0xFF800000 : f32
    %521 = vector.shape_cast %520 : vector<8x1xi1> to vector<8x1xi1>
    %522 = vector.broadcast %521 : vector<8x1xi1> to vector<8x128xi1>
    %523 = vector.broadcast %cst_119 : f32 to vector<8x128xf32>
    %524 = arith.select %522, %518, %523 : vector<8x128xi1>, vector<8x128xf32>
    %cst_120 = arith.constant dense<0xFF800000> : vector<128xf32>
    %525 = vector.multi_reduction <maximumf>, %524, %cst_120 [0] : vector<8x128xf32> to vector<128xf32>
    %526 = vector.shape_cast %525 : vector<128xf32> to vector<1x128xf32>
    %cst_121 = arith.constant dense<0.000000e+00> : vector<128xf32>
    %527 = vector.multi_reduction <add>, %518, %cst_121 [0] : vector<8x128xf32> to vector<128xf32>
    %528 = vector.shape_cast %527 : vector<128xf32> to vector<1x128xf32>
    %cst_122 = arith.constant 1.000000e+00 : f32
    %529 = vector.broadcast %cst_122 : f32 to vector<1x128xf32>
    %530 = arith.mulf %528, %529 : vector<1x128xf32>
    %531 = arith.addf %359, %456 : vector<1x128xf32>
    %532 = arith.addf %531, %526 : vector<1x128xf32>
    %533 = arith.addf %363, %460 : vector<1x128xf32>
    %534 = arith.addf %533, %530 : vector<1x128xf32>
    %535 = tpu.concatenate %532, %534 in 1 : vector<1x128xf32>, vector<1x128xf32> -> vector<1x256xf32>
    %c0_123 = arith.constant 0 : index
    %c0_124 = arith.constant 0 : index
    %536 = vector.load %arg4[%c0_123, %c0_124] : memref<1120x128xbf16, #tpu.memory_space<vmem>>, vector<256x128xbf16>
    %537 = arith.truncf %535 : vector<1x256xf32> to vector<1x256xbf16>
    %cst_125 = arith.constant dense<0.000000e+00> : vector<1x128xf32>
    %538 = tpu.matmul %537, %536, %cst_125 {dimension_numbers = #tpu.dot_dimension_numbers<[1], [0], [0], [1], [0, 0, 1, 1], [], []>} : vector<1x256xbf16>, vector<256x128xbf16>, vector<1x128xf32> -> vector<1x128xf32>
    %c0_126 = arith.constant 0 : index
    %c768 = arith.constant 768 : index
    %539 = vector.load %arg6[%c0_126, %c768] : memref<1x4352xf32, #tpu.memory_space<vmem>>, vector<1x128xf32>
    %540 = arith.addf %538, %539 : vector<1x128xf32>
    %cst_127 = arith.constant 0.000000e+00 : f32
    %541 = vector.broadcast %cst_127 : f32 to vector<1x128xf32>
    %542 = arith.maximumf %540, %541 : vector<1x128xf32>
    %c256_128 = arith.constant 256 : index
    %c0_129 = arith.constant 0 : index
    %543 = vector.load %arg4[%c256_128, %c0_129] : memref<1120x128xbf16, #tpu.memory_space<vmem>>, vector<128x32xbf16>
    %544 = arith.truncf %542 : vector<1x128xf32> to vector<1x128xbf16>
    %cst_130 = arith.constant dense<0.000000e+00> : vector<1x32xf32>
    %545 = tpu.matmul %544, %543, %cst_130 {dimension_numbers = #tpu.dot_dimension_numbers<[1], [0], [0], [1], [0, 0, 1, 1], [], []>} : vector<1x128xbf16>, vector<128x32xbf16>, vector<1x32xf32> -> vector<1x32xf32>
    %c0_131 = arith.constant 0 : index
    %c896 = arith.constant 896 : index
    %546 = vector.load %arg6[%c0_131, %c896] : memref<1x4352xf32, #tpu.memory_space<vmem>>, vector<1x32xf32>
    %547 = arith.addf %545, %546 : vector<1x32xf32>
    %cst_132 = arith.constant 0.000000e+00 : f32
    %548 = vector.broadcast %cst_132 : f32 to vector<1x32xf32>
    %549 = arith.maximumf %547, %548 : vector<1x32xf32>
    %c0_133 = arith.constant 0 : index
    %c0_134 = arith.constant 0 : index
    %550 = vector.load %arg3[%c0_133, %c0_134] : memref<32x4864xbf16, #tpu.memory_space<vmem>>, vector<32x2304xbf16>
    %551 = arith.truncf %549 : vector<1x32xf32> to vector<1x32xbf16>
    %cst_135 = arith.constant dense<0.000000e+00> : vector<1x2304xf32>
    %552 = tpu.matmul %551, %550, %cst_135 {dimension_numbers = #tpu.dot_dimension_numbers<[1], [0], [0], [1], [0, 0, 1, 1], [], []>} : vector<1x32xbf16>, vector<32x2304xbf16>, vector<1x2304xf32> -> vector<1x2304xf32>
    %553 = vector.extract_strided_slice %552 {offsets = [0, 0], sizes = [1, 32], strides = [1, 1]} : vector<1x2304xf32> to vector<1x32xf32>
    %c0_136 = arith.constant 0 : index
    %c1024 = arith.constant 1024 : index
    %554 = vector.load %arg6[%c0_136, %c1024] : memref<1x4352xf32, #tpu.memory_space<vmem>>, vector<1x32xf32>
    %555 = arith.addf %553, %554 : vector<1x32xf32>
    %cst_137 = arith.constant 0.000000e+00 : f32
    %556 = vector.broadcast %cst_137 : f32 to vector<1x32xf32>
    %557 = arith.maximumf %555, %556 : vector<1x32xf32>
    %558 = vector.extract_strided_slice %552 {offsets = [0, 128], sizes = [1, 32], strides = [1, 1]} : vector<1x2304xf32> to vector<1x32xf32>
    %c0_138 = arith.constant 0 : index
    %c1408 = arith.constant 1408 : index
    %559 = vector.load %arg6[%c0_138, %c1408] : memref<1x4352xf32, #tpu.memory_space<vmem>>, vector<1x32xf32>
    %560 = arith.addf %558, %559 : vector<1x32xf32>
    %cst_139 = arith.constant 0.000000e+00 : f32
    %561 = vector.broadcast %cst_139 : f32 to vector<1x32xf32>
    %562 = arith.maximumf %560, %561 : vector<1x32xf32>
    %563 = vector.extract_strided_slice %552 {offsets = [0, 256], sizes = [1, 1024], strides = [1, 1]} : vector<1x2304xf32> to vector<1x1024xf32>
    %564 = vector.extract_strided_slice %552 {offsets = [0, 1280], sizes = [1, 1024], strides = [1, 1]} : vector<1x2304xf32> to vector<1x1024xf32>
    %565 = arith.mulf %563, %564 : vector<1x1024xf32>
    %c0_140 = arith.constant 0 : index
    %c0_141 = arith.constant 0 : index
    %566 = vector.load %arg5[%c0_140, %c0_141] : memref<1024x32xbf16, #tpu.memory_space<vmem>>, vector<1024x32xbf16>
    %567 = arith.truncf %565 : vector<1x1024xf32> to vector<1x1024xbf16>
    %cst_142 = arith.constant dense<0.000000e+00> : vector<1x32xf32>
    %568 = tpu.matmul %567, %566, %cst_142 {dimension_numbers = #tpu.dot_dimension_numbers<[1], [0], [0], [1], [0, 0, 1, 1], [], []>} : vector<1x1024xbf16>, vector<1024x32xbf16>, vector<1x32xf32> -> vector<1x32xf32>
    %c0_143 = arith.constant 0 : index
    %c1152_144 = arith.constant 1152 : index
    %569 = vector.load %arg6[%c0_143, %c1152_144] : memref<1x4352xf32, #tpu.memory_space<vmem>>, vector<1x32xf32>
    %570 = arith.addf %568, %569 : vector<1x32xf32>
    %571 = arith.negf %570 : vector<1x32xf32>
    %572 = math.exp %571 : vector<1x32xf32>
    %cst_145 = arith.constant 1.000000e+00 : f32
    %573 = vector.broadcast %cst_145 : f32 to vector<1x32xf32>
    %574 = arith.addf %573, %572 : vector<1x32xf32>
    %575 = arith.divf %573, %574 : vector<1x32xf32>
    %576 = arith.mulf %575, %557 : vector<1x32xf32>
    %c384_146 = arith.constant 384 : index
    %c0_147 = arith.constant 0 : index
    %577 = vector.load %arg4[%c384_146, %c0_147] : memref<1120x128xbf16, #tpu.memory_space<vmem>>, vector<32x32xbf16>
    %578 = arith.truncf %576 : vector<1x32xf32> to vector<1x32xbf16>
    %cst_148 = arith.constant dense<0.000000e+00> : vector<1x32xf32>
    %579 = tpu.matmul %578, %577, %cst_148 {dimension_numbers = #tpu.dot_dimension_numbers<[1], [0], [0], [1], [0, 0, 1, 1], [], []>} : vector<1x32xbf16>, vector<32x32xbf16>, vector<1x32xf32> -> vector<1x32xf32>
    %c0_149 = arith.constant 0 : index
    %c1280_150 = arith.constant 1280 : index
    %580 = vector.load %arg6[%c0_149, %c1280_150] : memref<1x4352xf32, #tpu.memory_space<vmem>>, vector<1x32xf32>
    %581 = arith.addf %579, %580 : vector<1x32xf32>
    %cst_151 = arith.constant 0.000000e+00 : f32
    %582 = vector.broadcast %cst_151 : f32 to vector<1x32xf32>
    %583 = arith.maximumf %581, %582 : vector<1x32xf32>
    %c0_152 = arith.constant 0 : index
    %c2304 = arith.constant 2304 : index
    %584 = vector.load %arg3[%c0_152, %c2304] : memref<32x4864xbf16, #tpu.memory_space<vmem>>, vector<32x1280xbf16>
    %585 = arith.truncf %583 : vector<1x32xf32> to vector<1x32xbf16>
    %cst_153 = arith.constant dense<0.000000e+00> : vector<1x1280xf32>
    %586 = tpu.matmul %585, %584, %cst_153 {dimension_numbers = #tpu.dot_dimension_numbers<[1], [0], [0], [1], [0, 0, 1, 1], [], []>} : vector<1x32xbf16>, vector<32x1280xbf16>, vector<1x1280xf32> -> vector<1x1280xf32>
    %c0_154 = arith.constant 0 : index
    %c3584 = arith.constant 3584 : index
    %587 = vector.load %arg3[%c0_154, %c3584] : memref<32x4864xbf16, #tpu.memory_space<vmem>>, vector<32x1280xbf16>
    %588 = arith.truncf %562 : vector<1x32xf32> to vector<1x32xbf16>
    %cst_155 = arith.constant dense<0.000000e+00> : vector<1x1280xf32>
    %589 = tpu.matmul %588, %587, %cst_155 {dimension_numbers = #tpu.dot_dimension_numbers<[1], [0], [0], [1], [0, 0, 1, 1], [], []>} : vector<1x32xbf16>, vector<32x1280xbf16>, vector<1x1280xf32> -> vector<1x1280xf32>
    %590 = vector.extract_strided_slice %586 {offsets = [0, 0], sizes = [1, 1089], strides = [1, 1]} : vector<1x1280xf32> to vector<1x1089xf32>
    %c0_156 = arith.constant 0 : index
    %c2048 = arith.constant 2048 : index
    %591 = vector.load %arg6[%c0_156, %c2048] : memref<1x4352xf32, #tpu.memory_space<vmem>>, vector<1x1089xf32>
    %592 = arith.addf %590, %591 : vector<1x1089xf32>
    %593 = vector.extract_strided_slice %589 {offsets = [0, 0], sizes = [1, 1089], strides = [1, 1]} : vector<1x1280xf32> to vector<1x1089xf32>
    %c0_157 = arith.constant 0 : index
    %c3200 = arith.constant 3200 : index
    %594 = vector.load %arg6[%c0_157, %c3200] : memref<1x4352xf32, #tpu.memory_space<vmem>>, vector<1x1089xf32>
    %595 = arith.addf %593, %594 : vector<1x1089xf32>
    %596 = arith.mulf %592, %595 : vector<1x1089xf32>
    %c1408_158 = arith.constant 1408 : index
    %c0_159 = arith.constant 0 : index
    %597 = vector.load %arg2[%c1408_158, %c0_159] : memref<2504x256xbf16, #tpu.memory_space<vmem>>, vector<1089x256xbf16>
    %598 = arith.truncf %596 : vector<1x1089xf32> to vector<1x1089xbf16>
    %cst_160 = arith.constant dense<0.000000e+00> : vector<1x256xf32>
    %599 = tpu.matmul %598, %597, %cst_160 {dimension_numbers = #tpu.dot_dimension_numbers<[1], [0], [0], [1], [0, 0, 1, 1], [], []>} : vector<1x1089xbf16>, vector<1089x256xbf16>, vector<1x256xf32> -> vector<1x256xf32>
    %c0_161 = arith.constant 0 : index
    %c1536 = arith.constant 1536 : index
    %600 = vector.load %arg6[%c0_161, %c1536] : memref<1x4352xf32, #tpu.memory_space<vmem>>, vector<1x256xf32>
    %601 = arith.addf %599, %600 : vector<1x256xf32>
    %cst_162 = arith.constant 0.000000e+00 : f32
    %602 = vector.broadcast %cst_162 : f32 to vector<1x256xf32>
    %603 = arith.maximumf %601, %602 : vector<1x256xf32>
    %c800 = arith.constant 800 : index
    %c0_163 = arith.constant 0 : index
    %604 = vector.load %arg4[%c800, %c0_163] : memref<1120x128xbf16, #tpu.memory_space<vmem>>, vector<256x64xbf16>
    %605 = arith.truncf %603 : vector<1x256xf32> to vector<1x256xbf16>
    %cst_164 = arith.constant dense<0.000000e+00> : vector<1x64xf32>
    %606 = tpu.matmul %605, %604, %cst_164 {dimension_numbers = #tpu.dot_dimension_numbers<[1], [0], [0], [1], [0, 0, 1, 1], [], []>} : vector<1x256xbf16>, vector<256x64xbf16>, vector<1x64xf32> -> vector<1x64xf32>
    %607 = vector.extract_strided_slice %586 {offsets = [0, 1152], sizes = [1, 64], strides = [1, 1]} : vector<1x1280xf32> to vector<1x64xf32>
    %608 = arith.addf %606, %607 : vector<1x64xf32>
    %609 = vector.extract_strided_slice %589 {offsets = [0, 1152], sizes = [1, 64], strides = [1, 1]} : vector<1x1280xf32> to vector<1x64xf32>
    %610 = arith.addf %608, %609 : vector<1x64xf32>
    %c0_165 = arith.constant 0 : index
    %c1792 = arith.constant 1792 : index
    %611 = vector.load %arg6[%c0_165, %c1792] : memref<1x4352xf32, #tpu.memory_space<vmem>>, vector<1x64xf32>
    %612 = arith.addf %610, %611 : vector<1x64xf32>
    %cst_166 = arith.constant 0.000000e+00 : f32
    %613 = vector.broadcast %cst_166 : f32 to vector<1x64xf32>
    %614 = arith.maximumf %612, %613 : vector<1x64xf32>
    %c0_167 = arith.constant 0 : index
    %c0_168 = arith.constant 0 : index
    %615 = vector.load %arg7[%c0_167, %c0_168] : memref<1x64xf32, #tpu.memory_space<vmem>>, vector<1x64xf32>
    tpu.vector_store %arg7[%c0_167, %c0_168], %614 {strides = array<i32>} : memref<1x64xf32, #tpu.memory_space<vmem>>, vector<1x64xf32>,
    %c1056 = arith.constant 1056 : index
    %c0_169 = arith.constant 0 : index
    %616 = vector.load %arg4[%c1056, %c0_169] : memref<1120x128xbf16, #tpu.memory_space<vmem>>, vector<64x1xbf16>
    %617 = arith.truncf %614 : vector<1x64xf32> to vector<1x64xbf16>
    %cst_170 = arith.constant dense<0.000000e+00> : vector<1x1xf32>
    %618 = tpu.matmul %617, %616, %cst_170 {dimension_numbers = #tpu.dot_dimension_numbers<[1], [0], [0], [1], [0, 0, 1, 1], [], []>} : vector<1x64xbf16>, vector<64x1xbf16>, vector<1x1xf32> -> vector<1x1xf32>
    %c0_171 = arith.constant 0 : index
    %c1920 = arith.constant 1920 : index
    %619 = vector.load %arg6[%c0_171, %c1920] : memref<1x4352xf32, #tpu.memory_space<vmem>>, vector<1x1xf32>
    %620 = arith.addf %618, %619 : vector<1x1xf32>
    %621 = arith.negf %620 : vector<1x1xf32>
    %622 = math.exp %621 : vector<1x1xf32>
    %cst_172 = arith.constant 1.000000e+00 : f32
    %623 = vector.broadcast %cst_172 : f32 to vector<1x1xf32>
    %624 = arith.addf %623, %622 : vector<1x1xf32>
    %625 = arith.divf %623, %624 : vector<1x1xf32>
    %cst_173 = arith.constant 6.000000e+00 : f32
    %626 = vector.broadcast %cst_173 : f32 to vector<1x1xf32>
    %627 = arith.mulf %625, %626 : vector<1x1xf32>
    %cst_174 = arith.constant 3.000000e+00 : f32
    %628 = vector.broadcast %cst_174 : f32 to vector<1x1xf32>
    %629 = arith.subf %627, %628 : vector<1x1xf32>
    %c0_175 = arith.constant 0 : index
    %c0_176 = arith.constant 0 : index
    %630 = vector.load %arg8[%c0_175, %c0_176] : memref<1x1xf32, #tpu.memory_space<vmem>>, vector<1x1xf32>
    tpu.vector_store %arg8[%c0_175, %c0_176], %629 {strides = array<i32>} : memref<1x1xf32, #tpu.memory_space<vmem>>, vector<1x1xf32>,
    return
  }
}

</mosaic_0001>

<bundles_post_ra>
// kernel: forward.1
= control target key start
LH: loop header
LB: loop body
LE: loop exit
PB: predicated region body
PF: predicated region fallthrough
CT: control target
= control target key end

     0   :  { %14 = vsyncpa [#allocation3], 0  ;;  %s12627_s0 = inlined_call_operand.vmem [shape: f32[40,1152], index: 0, kind: input, shape index: {}]   ;;  %s12628_s1 = inlined_call_operand.hbm [shape: f32[40,40], index: 1, kind: input, shape index: {}]   ;;  %s12629_s2 = inlined_call_operand.vmem [shape: bf16[2504,256], index: 2, kind: input, shape index: {}]   ;;  %s12630_s3 = inlined_call_operand.vmem [shape: bf16[32,4864], index: 3, kind: input, shape index: {}]   ;;  %s12631_s4 = inlined_call_operand.vmem [shape: bf16[1120,128], index: 4, kind: input, shape index: {}]   ;;  %s12632_s5 = inlined_call_operand.vmem [shape: bf16[1024,32], index: 5, kind: input, shape index: {}]   ;;  %s12633_s6 = inlined_call_operand.vmem [shape: f32[1,4352], index: 6, kind: input, shape index: {}]   ;;  %s12634_s7 = inlined_call_operand.hbm [shape: f32[1,64], index: 7, kind: output, shape index: {0}]   ;;  %s12635_s8 = inlined_call_operand.hbm [shape: f32[1,1], index: 8, kind: output, shape index: {1}]  }
   0x1   :  { %15 = vsyncpa [#allocation4], 0 }
   0x2   :  { %16 = vsyncpa [#allocation7], 0  ;;  %s9635_s27 = smov [#allocation2]  }
   0x3   :  { %s24_s28 = sshll.u32 %s9635_s27, 4  ;;  %s25_s28 = int_to_ptr.vmem [resolvable:$true] %s24_s28 }
   0x4   :  { %s9577_s29 = scalar_lea.vmem %s25_s28, 640  ;;  %p9582_p1 = scmp.lt.s32.totalorder %s25_s28, %s25_s28 }
   0x5   :  { %p9578_p0 = scmp.ne.s32.totalorder %s25_s28, %s9577_s29  ;;  %p9583_p2 = scmp.lt.s32.totalorder %s9577_s29, %s9577_s29 }
   0x7   :  { %p9584_p3 = por %p9583_p2, %p9582_p1 }
   0x9   :  { %p9585_p4 = pnand %p9584_p3, %p9578_p0 }
   0xb   :  { %9588 = shalt.err (!%p9585_p4)
}
   0xc   :  { %s9636_s30 = smov 128   ;;  %s9637_s9 = smov 8  }
   0xd   :  { %30 = dma.hbm_to_vmem [thread:$0]  %s12628_s1, 640, %s25_s28, [#allocation3], %s9636_s30, %s9636_s30, %s9637_s9  }
   0xe   :  { %9629 = dma.done.wait [#allocation3], 640  }
   0xf   :  { %9630 = vsyncadd [#allocation3], 4294966656  ;;  %v8813_v0 = vld [vmem:[%s12629_s2 + $0x74] ss:$8 sps:$4 sm:$0xff]   ;;  %v8817_v2 = vld [vmem:[%s12629_s2 + $0x70] ss:$8 sps:$4 sm:$0xff]  }
  0x10   :  { %v8815_v1 = vld [vmem:[%s12629_s2 + $0x174] ss:$8 sps:$4 sm:$0xff]   ;;  %1251 = vmatprep.subr.bf16.mxu0 %v8813_v0  ;;  %v8818_v3 = vld [vmem:[%s12629_s2 + $0x170] ss:$8 sps:$4 sm:$0xff]   ;;  %v8819_v4 = vld [vmem:[%s12629_s2 + $0x64] ss:$8 sps:$4 sm:$0xff]  }
  0x11   :  { %1312 = vmatprep.subr.bf16.mxu1 %v8815_v1  ;;  %1252 = vmatpush1.bf16.msra.mxu0 %v8817_v2  ;;  %v8821_v5 = vld [vmem:[%s12629_s2 + $0x164] ss:$8 sps:$4 sm:$0xff]   ;;  %v8823_v6 = vld [vmem:[%s12629_s2 + $0x60] ss:$8 sps:$4 sm:$0xff]   ;;  %v8825_v8 = vld [vmem:[%s12629_s2 + $0x54] ss:$8 sps:$4 sm:$0xff]  }
  0x12   :  { %1313 = vmatpush1.bf16.msra.mxu1 %v8818_v3  ;;  %1253 = vmatprep.subr.bf16.mxu0 %v8819_v4  ;;  %v8824_v7 = vld [vmem:[%s12629_s2 + $0x160] ss:$8 sps:$4 sm:$0xff]   ;;  %v8827_v9 = vld [vmem:[%s12629_s2 + $0x154] ss:$8 sps:$4 sm:$0xff]   ;;  %v8829_v10 = vld [vmem:[%s12629_s2 + $0x50] ss:$8 sps:$4 sm:$0xff]  }
  0x13   :  { %1314 = vmatprep.subr.bf16.mxu1 %v8821_v5  ;;  %v8830_v11 = vld [vmem:[%s12629_s2 + $0x150] ss:$8 sps:$4 sm:$0xff]   ;;  %v8831_v12 = vld [vmem:[%s12629_s2 + $0x44] ss:$8 sps:$4 sm:$0xff]   ;;  %v8835_v14 = vld [vmem:[%s12629_s2 + $0x40] ss:$8 sps:$4 sm:$0xff]  }
  0x14   :  { %v8833_v13 = vld [vmem:[%s12629_s2 + $0x144] ss:$8 sps:$4 sm:$0xff]   ;;  %v8836_v15 = vld [vmem:[%s12629_s2 + $0x140] ss:$8 sps:$4 sm:$0xff]   ;;  %v8837_v16 = vld [vmem:[%s12629_s2 + $0x34] ss:$8 sps:$4 sm:$0xff]  }
  0x15   :  { %1254 = vmatpush1.bf16.msra.mxu0 %v8823_v6  ;;  %v8839_v17 = vld [vmem:[%s12629_s2 + $0x134] ss:$8 sps:$4 sm:$0xff]   ;;  %v8841_v18 = vld [vmem:[%s12629_s2 + $0x30] ss:$8 sps:$4 sm:$0xff]   ;;  %v8843_v20 = vld [vmem:[%s12629_s2 + $0x24] ss:$8 sps:$4 sm:$0xff]  }
  0x16   :  { %1315 = vmatpush1.bf16.msra.mxu1 %v8824_v7  ;;  %1255 = vmatprep.subr.bf16.mxu0 %v8825_v8  ;;  %v8842_v19 = vld [vmem:[%s12629_s2 + $0x130] ss:$8 sps:$4 sm:$0xff]   ;;  %v8845_v21 = vld [vmem:[%s12629_s2 + $0x124] ss:$8 sps:$4 sm:$0xff]   ;;  %v8847_v22 = vld [vmem:[%s12629_s2 + $0x20] ss:$8 sps:$4 sm:$0xff]  }
  0x17   :  { %1316 = vmatprep.subr.bf16.mxu1 %v8827_v9  ;;  %v8848_v23 = vld [vmem:[%s12629_s2 + $0x120] ss:$8 sps:$4 sm:$0xff]   ;;  %v8849_v24 = vld [vmem:[%s12629_s2 + $0x14] ss:$8 sps:$4 sm:$0xff]   ;;  %v8853_v26 = vld [vmem:[%s12629_s2 + $0x10] ss:$8 sps:$4 sm:$0xff]  }
  0x18   :  { %v8851_v25 = vld [vmem:[%s12629_s2 + $0x114] ss:$8 sps:$4 sm:$0xff]   ;;  %v8854_v27 = vld [vmem:[%s12629_s2 + $0x110] ss:$8 sps:$4 sm:$0xff]   ;;  %v8855_v28 = vld [vmem:[%s12629_s2 + $0x4] ss:$8 sps:$4 sm:$0xff]  }
  0x19   :  { %1256 = vmatpush1.bf16.msra.mxu0 %v8829_v10  ;;  %v8857_v29 = vld [vmem:[%s12629_s2 + $0x104] ss:$8 sps:$4 sm:$0xff]   ;;  %v8859_v30 = vld [vmem:[%s12629_s2] ss:$8 sps:$4 sm:$0xff]   ;;  %v8861_v32 = vld [vmem:[%s12629_s2 + $0xf4] ss:$8 sps:$4 sm:$0xff]  }
  0x1a   :  { %1317 = vmatpush1.bf16.msra.mxu1 %v8830_v11  ;;  %1257 = vmatprep.subr.bf16.mxu0 %v8831_v12  ;;  %v8860_v31 = vld [vmem:[%s12629_s2 + $0x100] ss:$8 sps:$4 sm:$0xff]   ;;  %v8863_v33 = vld [vmem:[%s12629_s2 + $0x1f4] ss:$8 sps:$4 sm:$0xff]   ;;  %v8865_v34 = vld [vmem:[%s12629_s2 + $0xf0] ss:$8 sps:$4 sm:$0xff]  }
  0x1b   :  { %1318 = vmatprep.subr.bf16.mxu1 %v8833_v13  ;;  %v8866_v35 = vld [vmem:[%s12629_s2 + $0x1f0] ss:$8 sps:$4 sm:$0xff]   ;;  %v8867_v36 = vld [vmem:[%s12629_s2 + $0xe4] ss:$8 sps:$4 sm:$0xff]   ;;  %v8871_v38 = vld [vmem:[%s12629_s2 + $0xe0] ss:$8 sps:$4 sm:$0xff]  }
  0x1c   :  { %v8869_v37 = vld [vmem:[%s12629_s2 + $0x1e4] ss:$8 sps:$4 sm:$0xff]   ;;  %v8872_v39 = vld [vmem:[%s12629_s2 + $0x1e0] ss:$8 sps:$4 sm:$0xff]   ;;  %v8873_v40 = vld [vmem:[%s12629_s2 + $0xd4] ss:$8 sps:$4 sm:$0xff]  }
  0x1d   :  { %1258 = vmatpush1.bf16.msra.mxu0 %v8835_v14  ;;  %v8875_v41 = vld [vmem:[%s12629_s2 + $0x1d4] ss:$8 sps:$4 sm:$0xff]   ;;  %v8877_v42 = vld [vmem:[%s12629_s2 + $0xd0] ss:$8 sps:$4 sm:$0xff]   ;;  %v8879_v44 = vld [vmem:[%s12629_s2 + $0xc4] ss:$8 sps:$4 sm:$0xff]  }
  0x1e   :  { %1319 = vmatpush1.bf16.msra.mxu1 %v8836_v15  ;;  %1259 = vmatprep.subr.bf16.mxu0 %v8837_v16  ;;  %v8878_v43 = vld [vmem:[%s12629_s2 + $0x1d0] ss:$8 sps:$4 sm:$0xff]   ;;  %v8881_v45 = vld [vmem:[%s12629_s2 + $0x1c4] ss:$8 sps:$4 sm:$0xff]   ;;  %v8883_v46 = vld [vmem:[%s12629_s2 + $0xc0] ss:$8 sps:$4 sm:$0xff]  }
  0x1f   :  { %1320 = vmatprep.subr.bf16.mxu1 %v8839_v17  ;;  %v8884_v47 = vld [vmem:[%s12629_s2 + $0x1c0] ss:$8 sps:$4 sm:$0xff]   ;;  %v55_v49 = vld [vmem:[%s12627_s0 + $0x50] sm:$0xff]  ;;  %v48_v50 = vld [vmem:[%s12627_s0 + $0x18] sm:$0xff]  ;;  %v12636_v10 = vmov 0   ;;  %vm9640_vm2 = vmmov 0  }
  0x20   :  { %v46_v48 = vld [vmem:[%s12627_s0 + $0x8] sm:$0xff]  ;;  %v57_v51 = vld [vmem:[%s12627_s0 + $0x60] sm:$0xff]  ;;  %v9861_v56 = vld [vmem:[%s12627_s0 + $0x90] sm:$0xff]  ;;  %8711 = vset.pattern.permute.xlu0 %v12636_v10  ;;  %8712 = vset.pattern.permute.xlu1 %v12636_v10  ;;  %vm339_vm3 = vcmask 326656   ;;  %vm1576_vm4 = vcmask 1043456   ;;  %s9641_s16 = smov 127  }
  0x21   :  { %1260 = vmatpush1.bf16.msra.mxu0 %v8841_v18  ;;  %v505_v52 = vpack.c.bf16 %v55_v49, %v46_v48  ;;  %v507_v53 = vpack.c.bf16 %v57_v51, %v48_v50  ;;  %v9851_v54 = vld [vmem:[%s12627_s0] sm:$0xff]  ;;  %v9856_v55 = vld [vmem:[%s12627_s0 + $0x48] sm:$0xff]  ;;  %v8885_v57 = vld [vmem:[%s12629_s2 + $0xb4] ss:$8 sps:$4 sm:$0xff]   ;;  %vm1898_vm5 = vcmask 7168  }
  0x22   :  { %1321 = vmatpush1.bf16.msra.mxu1 %v8842_v19  ;;  %1261 = vmatprep.subr.bf16.mxu0 %v8843_v20  ;;  %v8887_v58 = vld [vmem:[%s12629_s2 + $0x1b4] ss:$8 sps:$4 sm:$0xff]   ;;  %v90_v59 = vmax.f32 %v9851_v54, %v9856_v55  ;;  %v8889_v61 = vld [vmem:[%s12629_s2 + $0xb0] ss:$8 sps:$4 sm:$0xff]   ;;  %v8891_v0 = vld [vmem:[%s12629_s2 + $0xa4] ss:$8 sps:$4 sm:$0xff]  }
  0x23   :  { %1322 = vmatprep.subr.bf16.mxu1 %v8845_v21  ;;  %1283 = vmatprep.mubr.bf16.mxu0 %v505_v52  ;;  %v9874_v60 = vld [vmem:[%s12627_s0 + $0xd8] sm:$0xff]  ;;  %v9889_v1 = vld [vmem:[%s12627_s0 + $0x120] sm:$0xff]  ;;  %v47_v20 = vld [vmem:[%s12627_s0 + $0x10] sm:$0xff] }
  0x24   :  { %1344 = vmatprep.mubr.bf16.mxu1 %v507_v53  ;;  %v8890_v62 = vld [vmem:[%s12629_s2 + $0x1b0] ss:$8 sps:$4 sm:$0xff]   ;;  %v91_v63 = vmax.f32 %v90_v59, %v9861_v56  ;;  %v8893_v2 = vld [vmem:[%s12629_s2 + $0x1a4] ss:$8 sps:$4 sm:$0xff]   ;;  %v8895_v4 = vld [vmem:[%s12629_s2 + $0xa0] ss:$8 sps:$4 sm:$0xff]  }
  0x25   :  { %1262 = vmatpush1.bf16.msra.mxu0 %v8847_v22  ;;  %v8896_v6 = vld [vmem:[%s12629_s2 + $0x1a0] ss:$8 sps:$4 sm:$0xff]   ;;  %v8897_v7 = vld [vmem:[%s12629_s2 + $0x94] ss:$8 sps:$4 sm:$0xff]   ;;  %v8901_v11 = vld [vmem:[%s12629_s2 + $0x90] ss:$8 sps:$4 sm:$0xff]  }
  0x26   :  { %1323 = vmatpush1.bf16.msra.mxu1 %v8848_v23  ;;  %1263 = vmatprep.subr.bf16.mxu0 %v8849_v24  ;;  %v92_v3 = vmax.f32 %v91_v63, %v9874_v60  ;;  %v8899_v8 = vld [vmem:[%s12629_s2 + $0x194] ss:$8 sps:$4 sm:$0xff]   ;;  %v8902_v13 = vld [vmem:[%s12629_s2 + $0x190] ss:$8 sps:$4 sm:$0xff]   ;;  %v8903_v14 = vld [vmem:[%s12629_s2 + $0x84] ss:$8 sps:$4 sm:$0xff]  }
  0x27   :  { %1324 = vmatprep.subr.bf16.mxu1 %v8851_v25  ;;  %v8905_v15 = vld [vmem:[%s12629_s2 + $0x184] ss:$8 sps:$4 sm:$0xff]   ;;  %v8907_v17 = vld [vmem:[%s12629_s2 + $0x80] ss:$8 sps:$4 sm:$0xff]   ;;  %v56_v21 = vld [vmem:[%s12627_s0 + $0x58] sm:$0xff] }
  0x28   :  { %v93_v5 = vmax.f32 %v92_v3, %v9889_v1  ;;  %v8908_v18 = vld [vmem:[%s12629_s2 + $0x180] ss:$8 sps:$4 sm:$0xff]   ;;  %v8911_v22 = vld [vmem:[%s12629_s2 + $0x274] ss:$8 sps:$4 sm:$0xff]   ;;  %v8944_v50 = vld [vmem:[%s12629_s2 + $0x324] ss:$8 sps:$4 sm:$0xff]  }
  0x29   :  { %1264 = vmatpush1.bf16.msra.mxu0 %v8853_v26  ;;  %v8914_v24 = vld [vmem:[%s12629_s2 + $0x374] ss:$8 sps:$4 sm:$0xff]   ;;  %v506_v26 = vpack.c.bf16 %v56_v21, %v47_v20  ;;  %v8960_v20 = vld [vmem:[%s12629_s2 + $0x3f0] ss:$8 sps:$4 sm:$0xff]  }
  0x2a   :  { %1325 = vmatpush1.bf16.msra.mxu1 %v8854_v27  ;;  %1265 = vmatprep.subr.bf16.mxu0 %v8855_v28  ;;  %v94_v9 = vrot.slane %v93_v5, 4  ;;  %v8912_v27 = vld [vmem:[%s12629_s2 + $0x370] ss:$8 sps:$4 sm:$0xff]   ;;  %v8920_v28 = vld [vmem:[%s12629_s2 + $0x364] ss:$8 sps:$4 sm:$0xff]  }
  0x2b   :  { %1326 = vmatprep.subr.bf16.mxu1 %v8857_v29  ;;  %v8950_v63 = vld [vmem:[%s12629_s2 + $0x314] ss:$8 sps:$4 sm:$0xff]  }
  0x2c   :  { %v95_v12 = vmax.f32 %v93_v5, %v94_v9  ;;  %v83_v3 = vld [vmem:[%s12627_s0 + $0x130] sm:$0xff]  ;;  %v82_v9 = vld [vmem:[%s12627_s0 + $0x128] sm:$0xff] }
  0x2d   :  { %1266 = vmatpush1.bf16.msra.mxu0 %v8859_v30  ;;  %v8918_v30 = vld [vmem:[%s12629_s2 + $0x360] ss:$8 sps:$4 sm:$0xff]   ;;  %v8948_v5 = vld [vmem:[%s12629_s2 + $0x310] ss:$8 sps:$4 sm:$0xff]  }
  0x2e   :  { %1327 = vmatpush1.bf16.msra.mxu1 %v8860_v31  ;;  %1267 = vmatprep.subr.bf16.mxu0 %v8861_v32  ;;  %v96_v16 = vrot.slane %v95_v12, 2  ;;  %v8926_v31 = vld [vmem:[%s12629_s2 + $0x354] ss:$8 sps:$4 sm:$0xff]   ;;  %v198_v32 = vlaneseq }
  0x2f   :  { %1328 = vmatprep.subr.bf16.mxu1 %v8863_v33  ;;  %v8924_v33 = vld [vmem:[%s12629_s2 + $0x350] ss:$8 sps:$4 sm:$0xff]  }
  0x30   :  { %v97_v19 = vmax.f32 %v95_v12, %v96_v16  ;;  %v8962_v16 = vld [vmem:[%s12629_s2 + $0x3f4] ss:$8 sps:$4 sm:$0xff]  }
  0x31   :  { %1268 = vmatpush2.bf16.msra.mxu0 %v8865_v34  ;;  %v8932_v34 = vld [vmem:[%s12629_s2 + $0x344] ss:$8 sps:$4 sm:$0xff]  }
  0x32   :  { %1329 = vmatpush2.bf16.msra.mxu1 %v8866_v35  ;;  %1269 = vmatprep.subr.bf16.mxu0 %v8867_v36  ;;  %v98_v23 = vrot.slane %v97_v19, 1  ;;  %v66_v35 = vld [vmem:[%s12627_s0 + $0xa8] sm:$0xff]  ;;  %v75_v36 = vld [vmem:[%s12627_s0 + $0xf0] sm:$0xff] }
  0x33   :  { %1330 = vmatprep.subr.bf16.mxu1 %v8869_v37  ;;  %v9965_v37 = vand.u32 127, %v198_v32 }
  0x34   :  { %v99_v25 = vmax.f32 %v97_v19, %v98_v23  ;;  %v52_v19 = vld [vmem:[%s12627_s0 + $0x38] sm:$0xff]  ;;  %v61_v23 = vld [vmem:[%s12627_s0 + $0x80] sm:$0xff] }
  0x35   :  { %1270 = vmatpush2.bf16.msra.mxu0 %v8871_v38  ;;  %12649 = vst [vmem:[#allocation11_spill] sm:$0xff] %v9965_v37  ;;  %v8930_v38 = vld [vmem:[%s12629_s2 + $0x340] ss:$8 sps:$4 sm:$0xff]   ;;  %vm208_vm1 = vcmp.lt.s32.totalorder %v9965_v37, 12 }
  0x36   :  { %1331 = vmatpush2.bf16.msra.mxu1 %v8872_v39  ;;  %1271 = vmatprep.subr.bf16.mxu0 %v8873_v40  ;;  %vm180_vm0 = vcmp.eq.f32.partialorder %v99_v25, 0.0  ;;  %v8938_v39 = vld [vmem:[%s12629_s2 + $0x334] ss:$8 sps:$4 sm:$0xff]   ;;  %v516_v40 = vpack.c.bf16 %v75_v36, %v66_v35  ;;  %v8972_v35 = vld [vmem:[%s12629_s2 + $0x3d0] ss:$8 sps:$4 sm:$0xff]  }
  0x37   :  { %1332 = vmatprep.subr.bf16.mxu1 %v8875_v41  ;;  %v189_v29 = vsel %vm180_vm0, 1.0, %v99_v25  ;;  %v65_v41 = vld [vmem:[%s12627_s0 + $0xa0] sm:$0xff]  ;;  %v511_v25 = vpack.c.bf16 %v61_v23, %v52_v19  ;;  %v68_v19 = vld [vmem:[%s12627_s0 + $0xb8] sm:$0xff] }
  0x38   :  { %9531 = vrcp.f32 %v189_v29  ;;  %v8941_v29 = vld [vmem:[%s12629_s2 + $0x224] ss:$8 sps:$4 sm:$0xff]  }
  0x39   :  { %1272 = vmatpush2.bf16.msra.mxu0 %v8877_v42  ;;  %v74_v42 = vld [vmem:[%s12627_s0 + $0xe8] sm:$0xff] }
  0x3a   :  { %1333 = vmatpush2.bf16.msra.mxu1 %v8878_v43  ;;  %1273 = vmatprep.subr.bf16.mxu0 %v8879_v44  ;;  %v64_v43 = vld [vmem:[%s12627_s0 + $0x98] sm:$0xff]  ;;  %v515_v44 = vpack.c.bf16 %v74_v42, %v65_v41  ;;  %v8980_v36 = vld [vmem:[%s12629_s2 + $0x3c4] ss:$8 sps:$4 sm:$0xff]   ;;  %v8951_v42 = vld [vmem:[%s12629_s2 + $0x200] ss:$8 sps:$4 sm:$0xff]  }
  0x3b   :  { %1334 = vmatprep.subr.bf16.mxu1 %v8881_v45  ;;  %v73_v45 = vld [vmem:[%s12627_s0 + $0xe0] sm:$0xff]  ;;  %v8986_v41 = vld [vmem:[%s12629_s2 + $0x3b4] ss:$8 sps:$4 sm:$0xff]  }
  0x3c   :  { %v514_v51 = vpack.c.bf16 %v73_v45, %v64_v43  ;;  %v8959_v43 = vld [vmem:[%s12629_s2 + $0x2f4] ss:$8 sps:$4 sm:$0xff]   ;;  %v8992_v45 = vld [vmem:[%s12629_s2 + $0x3a4] ss:$8 sps:$4 sm:$0xff]  }
  0x3d   :  { %1274 = vmatpush2.bf16.msra.mxu0 %v8883_v46 }
  0x3e   :  { %1335 = vmatpush2.bf16.msra.mxu1 %v8884_v47  ;;  %1275 = vmatprep.subr.bf16.mxu0 %v8885_v57  ;;  %v8936_v47 = vld [vmem:[%s12629_s2 + $0x330] ss:$8 sps:$4 sm:$0xff]  }
  0x3f   :  { %1336 = vmatprep.subr.bf16.mxu1 %v8887_v58  ;;  %v8909_v57 = vld [vmem:[%s12629_s2 + $0x270] ss:$8 sps:$4 sm:$0xff]  }
  0x41   :  { %1276 = vmatpush2.bf16.msra.mxu0 %v8889_v61 }
  0x42   :  { %1337 = vmatpush2.bf16.msra.mxu1 %v8890_v62  ;;  %1277 = vmatprep.subr.bf16.mxu0 %v8891_v0  ;;  %v8917_v62 = vld [vmem:[%s12629_s2 + $0x264] ss:$8 sps:$4 sm:$0xff]  }
  0x43   :  { %1338 = vmatprep.subr.bf16.mxu1 %v8893_v2  ;;  %v8915_v2 = vld [vmem:[%s12629_s2 + $0x260] ss:$8 sps:$4 sm:$0xff]  }
  0x45   :  { %1278 = vmatpush2.bf16.msra.mxu0 %v8895_v4  ;;  %v9532_v46 = vpop.eup %9531  ;;  %v8923_v4 = vld [vmem:[%s12629_s2 + $0x254] ss:$8 sps:$4 sm:$0xff]  }
  0x46   :  { %1339 = vmatpush2.bf16.msra.mxu1 %v8896_v6  ;;  %1279 = vmatprep.subr.bf16.mxu0 %v8897_v7  ;;  %v218_v48 = vmul.f32 %v9532_v46, %v9851_v54  ;;  %v235_v49 = vmul.f32 %v9532_v46, %v9856_v55  ;;  %v244_v58 = vmul.f32 %v9532_v46, %v9861_v56 }
  0x47   :  { %1340 = vmatprep.subr.bf16.mxu1 %v8899_v8  ;;  %v253_v59 = vmul.f32 %v9532_v46, %v9874_v60  ;;  %v524_v8 = vpack.c.bf16 %v83_v3, %v83_v3 }
  0x48   :  { %v289_v52 = vsel %vm208_vm1, %v218_v48, %v9851_v54  ;;  %v298_v53 = vsel %vm208_vm1, %v235_v49, %v9856_v55  ;;  %v8942_v54 = vld [vmem:[%s12629_s2 + $0x320] ss:$8 sps:$4 sm:$0xff]   ;;  %v84_v55 = vld [vmem:[%s12627_s0 + $0x138] sm:$0xff]  ;;  %v307_v6 = vsel %vm208_vm1, %v244_v58, %v9861_v56  ;;  %v8977_v58 = vld [vmem:[%s12629_s2 + $0x2c4] ss:$8 sps:$4 sm:$0xff]  }
  0x49   :  { %1280 = vmatpush2.bf16.msra.mxu0 %v8901_v11  ;;  %v504_v61 = vpack.c.bf16 %v298_v53, %v289_v52  ;;  %v525_v0 = vpack.c.bf16 %v84_v55, %v84_v55  ;;  %v316_v7 = vsel %vm208_vm1, %v253_v59, %v9874_v60  ;;  %v8956_v11 = vld [vmem:[%s12629_s2 + $0x304] ss:$8 sps:$4 sm:$0xff]   ;;  %v8921_v56 = vld [vmem:[%s12629_s2 + $0x250] ss:$8 sps:$4 sm:$0xff]   ;;  %v523_v60 = vpack.c.bf16 %v82_v9, %v82_v9  ;;  %v8990_v48 = vld [vmem:[%s12629_s2 + $0x3a0] ss:$8 sps:$4 sm:$0xff]  }
  0x4a   :  { %1341 = vmatpush2.bf16.msra.mxu1 %v8902_v13  ;;  %1281 = vmatprep.subr.bf16.mxu0 %v8903_v14  ;;  %v513_v12 = vpack.c.bf16 %v316_v7, %v307_v6  ;;  %v262_v13 = vmul.f32 %v9532_v46, %v9889_v1  ;;  %v8929_v14 = vld [vmem:[%s12629_s2 + $0x244] ss:$8 sps:$4 sm:$0xff]   ;;  %v8957_v46 = vld [vmem:[%s12629_s2 + $0x2f0] ss:$8 sps:$4 sm:$0xff]   ;;  %v8998_v49 = vld [vmem:[%s12629_s2 + $0x394] ss:$8 sps:$4 sm:$0xff]  }
  0x4b   :  { %1342 = vmatprep.subr.bf16.mxu1 %v8905_v15  ;;  %v8954_v15 = vld [vmem:[%s12629_s2 + $0x300] ss:$8 sps:$4 sm:$0xff]   ;;  %v8996_v52 = vld [vmem:[%s12629_s2 + $0x390] ss:$8 sps:$4 sm:$0xff]   ;;  %v9004_v53 = vld [vmem:[%s12629_s2 + $0x384] ss:$8 sps:$4 sm:$0xff]  }
  0x4c   :  { %v325_v21 = vsel %vm208_vm1, %v262_v13, %v9889_v1  ;;  %v8968_v1 = vld [vmem:[%s12629_s2 + $0x3e4] ss:$8 sps:$4 sm:$0xff]   ;;  %v9002_v59 = vld [vmem:[%s12629_s2 + $0x380] ss:$8 sps:$4 sm:$0xff]   ;;  %v79_v55 = vld [vmem:[%s12627_s0 + $0x110] sm:$0xff] }
  0x4d   :  { %1282 = vmatpush2.bf16.msra.mxu0 %v8907_v17  ;;  %v8927_v17 = vld [vmem:[%s12629_s2 + $0x240] ss:$8 sps:$4 sm:$0xff]   ;;  %v9001_v13 = vld [vmem:[%s12629_s2 + $0x284] ss:$8 sps:$4 sm:$0xff]  }
  0x4e   :  { %1343 = vmatpush2.bf16.msra.mxu1 %v8908_v18  ;;  %1373 = vmatprep.subr.bf16.mxu0 %v8911_v22  ;;  %v8935_v18 = vld [vmem:[%s12629_s2 + $0x234] ss:$8 sps:$4 sm:$0xff]   ;;  %v50_v22 = vld [vmem:[%s12627_s0 + $0x28] sm:$0xff]  ;;  %v69_v6 = vld [vmem:[%s12627_s0 + $0xc0] sm:$0xff] }
  0x4f   :  { %1434 = vmatprep.subr.bf16.mxu1 %v8914_v24  ;;  %v59_v24 = vld [vmem:[%s12627_s0 + $0x70] sm:$0xff]  ;;  %v78_v7 = vld [vmem:[%s12627_s0 + $0x108] sm:$0xff] }
  0x50   :  { %1284 = vmatmul.mubr.bf16.vlgmr.msra.gmra.mxu0 %v504_v61  ;;  %v51_v61 = vld [vmem:[%s12627_s0 + $0x30] sm:$0xff]  ;;  %v8987_v9 = vld [vmem:[%s12629_s2 + $0x2a0] ss:$8 sps:$4 sm:$0xff]  }
  0x51   :  { %1345 = vmatmul.mubr.bf16.vlgmr.msra.gmra.mxu1 %v506_v26  ;;  %1374 = vmatpush1.bf16.msra.mxu0 %v8909_v57  ;;  %v522_v26 = vpack.c.bf16 %v325_v21, %v325_v21  ;;  %v8969_v57 = vld [vmem:[%s12629_s2 + $0x2d0] ss:$8 sps:$4 sm:$0xff]  }
  0x52   :  { %1435 = vmatpush1.bf16.msra.mxu1 %v8912_v27  ;;  %1354 = vmatprep.mubr.bf16.mxu1 %v516_v40  ;;  %v8933_v27 = vld [vmem:[%s12629_s2 + $0x230] ss:$8 sps:$4 sm:$0xff]   ;;  %v8978_v40 = vld [vmem:[%s12629_s2 + $0x3c0] ss:$8 sps:$4 sm:$0xff]  }
  0x53   :  { %1436 = vmatprep.subr.bf16.mxu1 %v8920_v28  ;;  %1293 = vmatprep.mubr.bf16.mxu0 %v514_v51  ;;  %v509_v28 = vpack.c.bf16 %v59_v24, %v50_v22  ;;  %v8971_v51 = vld [vmem:[%s12629_s2 + $0x2d4] ss:$8 sps:$4 sm:$0xff]   ;;  %v9005_v22 = vld [vmem:[%s12629_s2 + $0x470] ss:$8 sps:$4 sm:$0xff]   ;;  %v9010_v24 = vld [vmem:[%s12629_s2 + $0x464] ss:$8 sps:$4 sm:$0xff]  }
  0x54   :  { %1375 = vmatprep.subr.bf16.mxu0 %v8917_v62  ;;  %v60_v62 = vld [vmem:[%s12627_s0 + $0x78] sm:$0xff] }
  0x55   :  { %1376 = vmatpush1.bf16.msra.mxu0 %v8915_v2  ;;  %v510_v2 = vpack.c.bf16 %v60_v62, %v51_v61  ;;  %v12640_v61 = vmov 0.0  }
  0x56   :  { %1437 = vmatpush1.bf16.msra.mxu1 %v8918_v30  ;;  %1377 = vmatprep.subr.bf16.mxu0 %v8923_v4  ;;  %v8966_v30 = vld [vmem:[%s12629_s2 + $0x3e0] ss:$8 sps:$4 sm:$0xff]   ;;  %v8981_v4 = vld [vmem:[%s12629_s2 + $0x2b0] ss:$8 sps:$4 sm:$0xff]  }
  0x57   :  { %1438 = vmatprep.subr.bf16.mxu1 %v8926_v31  ;;  %v8974_v31 = vld [vmem:[%s12629_s2 + $0x3d4] ss:$8 sps:$4 sm:$0xff]  }
  0x58   :  { %1294 = vmatmul.mubr.bf16.gmra.mxu0 %v513_v12  ;;  %v519_v12 = vpack.c.bf16 %v78_v7, %v69_v6 }
  0x59   :  { %1355 = vmatmul.mubr.bf16.gmra.mxu1 %v515_v44  ;;  %1378 = vmatpush1.bf16.msra.mxu0 %v8921_v56  ;;  %v8984_v44 = vld [vmem:[%s12629_s2 + $0x3b0] ss:$8 sps:$4 sm:$0xff]  }
  0x5a   :  { %1439 = vmatpush1.bf16.msra.mxu1 %v8924_v33  ;;  %1364 = vmatprep.mubr.bf16.mxu1 %v525_v0  ;;  %v8939_v33 = vld [vmem:[%s12629_s2 + $0x220] ss:$8 sps:$4 sm:$0xff]   ;;  %v8983_v0 = vld [vmem:[%s12629_s2 + $0x2b4] ss:$8 sps:$4 sm:$0xff]  }
  0x5b   :  { %1440 = vmatprep.subr.bf16.mxu1 %v8932_v34  ;;  %1303 = vmatprep.mubr.bf16.mxu0 %v523_v60  ;;  %v8947_v34 = vld [vmem:[%s12629_s2 + $0x214] ss:$8 sps:$4 sm:$0xff]   ;;  %v8993_v60 = vld [vmem:[%s12629_s2 + $0x290] ss:$8 sps:$4 sm:$0xff]  }
  0x5c   :  { %1379 = vmatprep.subr.bf16.mxu0 %v8929_v14  ;;  %v87_v14 = vld [vmem:[%s12627_s0 + $0x150] sm:$0xff] }
  0x5d   :  { %1380 = vmatpush1.bf16.msra.mxu0 %v8927_v17  ;;  %v58_v17 = vld [vmem:[%s12627_s0 + $0x68] sm:$0xff]  ;;  %v528_v21 = vpack.c.bf16 %v87_v14, %v87_v14 }
  0x5e   :  { %1441 = vmatpush1.bf16.msra.mxu1 %v8930_v38  ;;  %1381 = vmatprep.subr.bf16.mxu0 %v8935_v18  ;;  %v8945_v38 = vld [vmem:[%s12629_s2 + $0x210] ss:$8 sps:$4 sm:$0xff]   ;;  %v9007_v18 = vld [vmem:[%s12629_s2 + $0x474] ss:$8 sps:$4 sm:$0xff]  }
  0x5f   :  { %1442 = vmatprep.subr.bf16.mxu1 %v8938_v39  ;;  %v8953_v39 = vld [vmem:[%s12629_s2 + $0x204] ss:$8 sps:$4 sm:$0xff]  }
  0x60   :  { %1304 = vmatmul.mubr.bf16.gmra.mxu0 %v522_v26  ;;  %v67_v26 = vld [vmem:[%s12627_s0 + $0xb0] sm:$0xff] }
  0x61   :  { %1365 = vmatmul.mubr.bf16.gmra.mxu1 %v524_v8  ;;  %1382 = vmatpush1.bf16.msra.mxu0 %v8933_v27  ;;  %v88_v8 = vld [vmem:[%s12627_s0 + $0x158] sm:$0xff] }
  0x62   :  { %1443 = vmatpush1.bf16.msra.mxu1 %v8936_v47  ;;  %1466 = vmatprep.mubr.bf16.mxu1 %v511_v25  ;;  %v8965_v47 = vld [vmem:[%s12629_s2 + $0x2e4] ss:$8 sps:$4 sm:$0xff]   ;;  %v529_v56 = vpack.c.bf16 %v88_v8, %v88_v8  ;;  %v76_v27 = vld [vmem:[%s12627_s0 + $0xf8] sm:$0xff] }
  0x63   :  { %1444 = vmatprep.subr.bf16.mxu1 %v8944_v50  ;;  %1405 = vmatprep.mubr.bf16.mxu0 %v509_v28  ;;  %v8963_v50 = vld [vmem:[%s12629_s2 + $0x2e0] ss:$8 sps:$4 sm:$0xff]   ;;  %v9013_v28 = vld [vmem:[%s12629_s2 + $0x454] ss:$8 sps:$4 sm:$0xff]  }
  0x64   :  { %1383 = vmatprep.subr.bf16.mxu0 %v8941_v29  ;;  %v86_v29 = vld [vmem:[%s12627_s0 + $0x148] sm:$0xff] }
  0x65   :  { %1384 = vmatpush1.bf16.msra.mxu0 %v8939_v33  ;;  %v9016_v33 = vld [vmem:[%s12629_s2 + $0x444] ss:$8 sps:$4 sm:$0xff]  }
  0x66   :  { %1445 = vmatpush1.bf16.msra.mxu1 %v8942_v54  ;;  %1385 = vmatprep.subr.bf16.mxu0 %v8947_v34  ;;  %v70_v54 = vld [vmem:[%s12627_s0 + $0xc8] sm:$0xff]  ;;  %v527_v34 = vpack.c.bf16 %v86_v29, %v86_v29 }
  0x67   :  { %1446 = vmatprep.subr.bf16.mxu1 %v8950_v63  ;;  %v8975_v63 = vld [vmem:[%s12629_s2 + $0x2c0] ss:$8 sps:$4 sm:$0xff]   ;;  %v520_v3 = vpack.c.bf16 %v79_v55, %v70_v54 }
  0x69   :  { %1386 = vmatpush1.bf16.msra.mxu0 %v8945_v38  ;;  %v9019_v38 = vld [vmem:[%s12629_s2 + $0x434] ss:$8 sps:$4 sm:$0xff]  }
  0x6a   :  { %1447 = vmatpush1.bf16.msra.mxu1 %v8948_v5  ;;  %1387 = vmatprep.subr.bf16.mxu0 %v8953_v39  ;;  %v8989_v5 = vld [vmem:[%s12629_s2 + $0x2a4] ss:$8 sps:$4 sm:$0xff]   ;;  %v9017_v39 = vld [vmem:[%s12629_s2 + $0x430] ss:$8 sps:$4 sm:$0xff]  }
  0x6b   :  { %1448 = vmatprep.subr.bf16.mxu1 %v8956_v11  ;;  %v8995_v11 = vld [vmem:[%s12629_s2 + $0x294] ss:$8 sps:$4 sm:$0xff]  }
  0x6d   :  { %1388 = vmatpush1.bf16.msra.mxu0 %v8951_v42  ;;  %v9020_v42 = vld [vmem:[%s12629_s2 + $0x420] ss:$8 sps:$4 sm:$0xff]  }
  0x6e   :  { %1449 = vmatpush1.bf16.msra.mxu1 %v8954_v15  ;;  %1389 = vmatprep.subr.bf16.mxu0 %v8959_v43  ;;  %v8999_v15 = vld [vmem:[%s12629_s2 + $0x280] ss:$8 sps:$4 sm:$0xff]   ;;  %v9025_v43 = vld [vmem:[%s12629_s2 + $0x414] ss:$8 sps:$4 sm:$0xff]  }
  0x6f   :  { %1450 = vmatprep.subr.bf16.mxu1 %v8962_v16  ;;  %v49_v16 = vld [vmem:[%s12627_s0 + $0x20] sm:$0xff] }
  0x70   :  { %v508_v23 = vpack.c.bf16 %v58_v17, %v49_v16 }
  0x71   :  { %1390 = vmatpush2.bf16.msra.mxu0 %v8957_v46  ;;  %v9026_v46 = vld [vmem:[%s12629_s2 + $0x400] ss:$8 sps:$4 sm:$0xff]  }
  0x72   :  { %1451 = vmatpush2.bf16.msra.mxu1 %v8960_v20  ;;  %1391 = vmatprep.subr.bf16.mxu0 %v8965_v47  ;;  %v77_v20 = vld [vmem:[%s12627_s0 + $0x100] sm:$0xff] }
  0x73   :  { %1452 = vmatprep.subr.bf16.mxu1 %v8968_v1  ;;  %v518_v25 = vpack.c.bf16 %v77_v20, %v68_v19  ;;  %v9008_v1 = vld [vmem:[%s12629_s2 + $0x460] ss:$8 sps:$4 sm:$0xff]  }
  0x74   :  { %v53_v47 = vld [vmem:[%s12627_s0 + $0x40] sm:$0xff] }
  0x75   :  { %1392 = vmatpush2.bf16.msra.mxu0 %v8963_v50  ;;  %v71_v50 = vld [vmem:[%s12627_s0 + $0xd0] sm:$0xff] }
  0x76   :  { %1453 = vmatpush2.bf16.msra.mxu1 %v8966_v30  ;;  %1393 = vmatprep.subr.bf16.mxu0 %v8971_v51  ;;  %v9011_v30 = vld [vmem:[%s12629_s2 + $0x450] ss:$8 sps:$4 sm:$0xff]  }
  0x77   :  { %1454 = vmatprep.subr.bf16.mxu1 %v8974_v31  ;;  %v517_v31 = vpack.c.bf16 %v76_v27, %v67_v26  ;;  %v80_v51 = vld [vmem:[%s12627_s0 + $0x118] sm:$0xff] }
  0x79   :  { %1394 = vmatpush2.bf16.msra.mxu0 %v8969_v57 }
  0x7a   :  { %1455 = vmatpush2.bf16.msra.mxu1 %v8972_v35  ;;  %1395 = vmatprep.subr.bf16.mxu0 %v8977_v58  ;;  %v9014_v35 = vld [vmem:[%s12629_s2 + $0x440] ss:$8 sps:$4 sm:$0xff]  }
  0x7b   :  { %1456 = vmatprep.subr.bf16.mxu1 %v8980_v36  ;;  %v85_v36 = vld [vmem:[%s12627_s0 + $0x140] sm:$0xff] }
  0x7d   :  { %1396 = vmatpush2.bf16.msra.mxu0 %v8975_v63 }
  0x7e   :  { %1457 = vmatpush2.bf16.msra.mxu1 %v8978_v40  ;;  %1397 = vmatprep.subr.bf16.mxu0 %v8983_v0  ;;  %v526_v40 = vpack.c.bf16 %v85_v36, %v85_v36  ;;  %v334_v0 = vld [vmem:[#allocation2] sm:$0xff] }
  0x7f   :  { %1458 = vmatprep.subr.bf16.mxu1 %v8986_v41  ;;  %v9022_v41 = vld [vmem:[%s12629_s2 + $0x424] ss:$8 sps:$4 sm:$0xff]   ;;  %v340_v27 = vsel %vm339_vm3, %v334_v0, 0.0 }
  0x80   :  { %341 = vadd.xlane.f32.xlu0 %v340_v27  ;;  %v10329_v36 = vld [vmem:[#allocation2 + $0x20] sm:$0xff] }
  0x81   :  { %1398 = vmatpush2.bf16.msra.mxu0 %v8981_v4 }
  0x82   :  { %1459 = vmatpush2.bf16.msra.mxu1 %v8984_v44  ;;  %1399 = vmatprep.subr.bf16.mxu0 %v8989_v5  ;;  %v9023_v44 = vld [vmem:[%s12629_s2 + $0x410] ss:$8 sps:$4 sm:$0xff]  }
  0x83   :  { %1460 = vmatprep.subr.bf16.mxu1 %v8992_v45  ;;  %v9028_v45 = vld [vmem:[%s12629_s2 + $0x404] ss:$8 sps:$4 sm:$0xff]  }
  0x85   :  { %1400 = vmatpush2.bf16.msra.mxu0 %v8987_v9  ;;  %v336_v9 = vld [vmem:[#allocation2 + $0x10] sm:$0xff] }
  0x86   :  { %1461 = vmatpush2.bf16.msra.mxu1 %v8990_v48  ;;  %1401 = vmatprep.subr.bf16.mxu0 %v8995_v11  ;;  %v62_v48 = vld [vmem:[%s12627_s0 + $0x88] sm:$0xff]  ;;  %v337_v11 = vld [vmem:[#allocation2 + $0x18] sm:$0xff] }
  0x87   :  { %1462 = vmatprep.subr.bf16.mxu1 %v8998_v49  ;;  %v512_v49 = vpack.c.bf16 %v62_v48, %v53_v47 }
  0x89   :  { %1402 = vmatpush2.bf16.msra.mxu0 %v8993_v60 }
  0x8a   :  { %1463 = vmatpush2.bf16.msra.mxu1 %v8996_v52  ;;  %1403 = vmatprep.subr.bf16.mxu0 %v9001_v13  ;;  %v521_v52 = vpack.c.bf16 %v80_v51, %v71_v50 }
  0x8b   :  { %1464 = vmatprep.subr.bf16.mxu1 %v9004_v53  ;;  %v89_v53 = vld [vmem:[%s12627_s0 + $0x160] sm:$0xff] }
  0x8c   :  { %v530_v57 = vpack.c.bf16 %v89_v53, %v89_v53 }
  0x8d   :  { %1404 = vmatpush2.bf16.msra.mxu0 %v8999_v15 }
  0x8e   :  { %1465 = vmatpush2.bf16.msra.mxu1 %v9002_v59  ;;  %1495 = vmatprep.subr.bf16.mxu0 %v9007_v18 }
  0x8f   :  { %8504 = vmatprep.subr.bf16.mxu1 %v12640_v61 }
  0x90   :  { %1406 = vmatmul.mubr.bf16.vlgmr.msra.gmra.mxu0 %v508_v23 }
  0x91   :  { %1467 = vmatmul.mubr.bf16.vlgmr.msra.gmra.mxu1 %v510_v2  ;;  %1496 = vmatpush1.bf16.msra.mxu0 %v9005_v22  ;;  %v335_v2 = vld [vmem:[#allocation2 + $0x8] sm:$0xff] }
  0x92   :  { %1476 = vmatprep.mubr.bf16.mxu1 %v520_v3  ;;  %1415 = vmatprep.mubr.bf16.mxu0 %v518_v25  ;;  %v10309_v3 = vpack.c.bf16 %v335_v2, %v334_v0 }
  0x93   :  { %1497 = vmatprep.subr.bf16.mxu0 %v9010_v24 }
  0x95   :  { %1498 = vmatpush1.bf16.msra.mxu0 %v9008_v1 }
  0x96   :  { %1499 = vmatprep.subr.bf16.mxu0 %v9013_v28  ;;  %v346_v28 = vsel %vm339_vm3, %v336_v9, 0.0 }
  0x97   :  { %347 = vadd.xlane.f32.xlu1 %v346_v28 }
  0x98   :  { %1416 = vmatmul.mubr.bf16.gmra.mxu0 %v517_v31  ;;  %v343_v31 = vsel %vm339_vm3, %v335_v2, 0.0 }
  0x99   :  { %1477 = vmatmul.mubr.bf16.gmra.mxu1 %v519_v12  ;;  %1500 = vmatpush1.bf16.msra.mxu0 %v9011_v30 }
  0x9a   :  { %1486 = vmatprep.mubr.bf16.mxu1 %v529_v56  ;;  %1425 = vmatprep.mubr.bf16.mxu0 %v527_v34  ;;  %v10315_v56 = vpack.c.bf16 %v337_v11, %v336_v9 }
  0x9b   :  { %1501 = vmatprep.subr.bf16.mxu0 %v9016_v33  ;;  %v349_v33 = vsel %vm339_vm3, %v337_v11, 0.0  ;;  %344 = vadd.xlane.f32.xlu0 %v343_v31 }
  0x9c   :  { %350 = vadd.xlane.f32.xlu1 %v349_v33 }
  0x9d   :  { %1502 = vmatpush1.bf16.msra.mxu0 %v9014_v35 }
  0x9e   :  { %1503 = vmatprep.subr.bf16.mxu0 %v9019_v38  ;;  %v352_v38 = vsel %vm339_vm3, %v10329_v36, 0.0 }
  0x9f   :  { %353 = vadd.xlane.f32.xlu0 %v352_v38 }
  0xa0   :  { %1426 = vmatmul.mubr.bf16.gmra.mxu0 %v526_v40 }
  0xa1   :  { %1487 = vmatmul.mubr.bf16.gmra.mxu1 %v528_v21  ;;  %1504 = vmatpush1.bf16.msra.mxu0 %v9017_v39 }
  0xa2   :  { %1527 = vmatprep.mubr.bf16.mxu0 %v12636_v10  ;;  %1505 = vmatprep.subr.bf16.mxu0 %v9022_v41 }
  0xa3   :  { %8510 = vmatprep.mubr.msk.bf16.mxu1 %vm9640_vm2, %v12640_v61 }
  0xa5   :  { %1506 = vmatpush1.bf16.msra.mxu0 %v9020_v42 }
  0xa6   :  { %1507 = vmatprep.subr.bf16.mxu0 %v9025_v43 }
  0xa9   :  { %1508 = vmatpush1.bf16.msra.mxu0 %v9023_v44 }
  0xaa   :  { %1509 = vmatprep.subr.bf16.mxu0 %v9028_v45 }
  0xad   :  { %1510 = vmatpush1.bf16.msra.mxu0 %v9026_v46 }
  0xae   :  { %8550 = vmatprep.subr.bf16.mxu0 %v12640_v61 }
  0xb0   :  { %1528 = vmatmul.mubr.bf16.vlgmr.msra.gmra.mxu0 %v512_v49 }
  0xb1   :  { %1537 = vmatprep.mubr.bf16.mxu0 %v12636_v10 }
  0xb8   :  { %1538 = vmatmul.mubr.bf16.gmra.mxu0 %v521_v52 }
  0xb9   :  { %1547 = vmatprep.mubr.bf16.mxu0 %v12636_v10 }
  0xc0   :  { %1548 = vmatmul.mubr.bf16.gmra.mxu0 %v530_v57 }
  0xc1   :  { %8556 = vmatprep.mubr.msk.bf16.mxu0 %vm9640_vm2, %v12640_v61 }
 0x110   :  { %v1285_v4 = vpop.f32.mrf.mxu0 }
 0x111   :  { %v1346_v58 = vpop.f32.mrf.mxu1 }
 0x112   :  { %v1347_v6 = vadd.f32 %v1346_v58, %v1285_v4  ;;  %v1287_v7 = vpop.f32.mrf.mxu0 }
 0x113   :  { %v1348_v59 = vpop.f32.mrf.mxu1 }
 0x114   :  { %v1349_v12 = vadd.f32 %v1348_v59, %v1287_v7  ;;  %v1289_v60 = vpop.f32.mrf.mxu0 }
 0x115   :  { %v1350_v62 = vpop.f32.mrf.mxu1 }
 0x116   :  { %v1351_v14 = vadd.f32 %v1350_v62, %v1289_v60  ;;  %v10317_v15 = vpop.f32.mrf.mxu0 }
 0x117   :  { %v10305_v54 = vpop.f32.mrf.mxu1 }
 0x118   :  { %v1295_v17 = vpop.f32.mrf.mxu0 }
 0x119   :  { %v1356_v55 = vpop.f32.mrf.mxu1 }
 0x11a   :  { %v10319_v19 = vadd.f32 %v1356_v55, %v1295_v17  ;;  %v1297_v20 = vpop.f32.mrf.mxu0 }
 0x11b   :  { %v1358_v63 = vpop.f32.mrf.mxu1 }
 0x11c   :  { %v1359_v22 = vadd.f32 %v1358_v63, %v1297_v20  ;;  %v1299_v23 = vpop.f32.mrf.mxu0 }
 0x11d   :  { %v1360_v5 = vpop.f32.mrf.mxu1 }
 0x11e   :  { %v1361_v24 = vadd.f32 %v1360_v5, %v1299_v23  ;;  %v10321_v25 = vpop.f32.mrf.mxu0 }
 0x11f   :  { %v10313_v8 = vpop.f32.mrf.mxu1 }
 0x120   :  { %v1305_v1 = vpop.f32.mrf.mxu0 }
 0x121   :  { %v1366_v13 = vpop.f32.mrf.mxu1 }
 0x122   :  { %v10323_v26 = vadd.f32 %v1366_v13, %v1305_v1  ;;  %v1307_v29 = vpop.f32.mrf.mxu0 }
 0x123   :  { %v1368_v16 = vpop.f32.mrf.mxu1 }
 0x124   :  { %v1369_v30 = vadd.f32 %v1368_v16, %v1307_v29  ;;  %v1309_v34 = vpop.f32.mrf.mxu0 }
 0x125   :  { %v1370_v18 = vpop.f32.mrf.mxu1 }
 0x126   :  { %v1310_v35 = vpop.f32.mrf.mxu0 }
 0x127   :  { %v1371_v21 = vpop.f32.mrf.mxu1 }
 0x150   :  { %v1407_v49 = vpop.f32.mrf.mxu0 }
 0x151   :  { %v1468_v39 = vpop.f32.mrf.mxu1  ;;  %v1408_v50 = vadd.f32 %v1407_v49, %v1347_v6 }
 0x152   :  { %v1409_v52 = vpop.f32.mrf.mxu0 }
 0x153   :  { %v1470_v40 = vpop.f32.mrf.mxu1  ;;  %v1410_v53 = vadd.f32 %v1409_v52, %v1349_v12  ;;  %v1469_v57 = vadd.f32 %v1468_v39, %v1408_v50 }
 0x154   :  { %v1411_v59 = vpop.f32.mrf.mxu0 }
 0x155   :  { %v1472_v41 = vpop.f32.mrf.mxu1  ;;  %v1412_v62 = vadd.f32 %v1411_v59, %v1351_v14  ;;  %v1471_v55 = vadd.f32 %v1470_v40, %v1410_v53  ;;  %v9030_v53 = vld [vmem:[%s12631_s4 + $0x100] sm:$0xff]   ;;  %v10382_v59 = vpack.c.bf16 %v10329_v36, %v10329_v36 }
 0x156   :  { %v10337_v63 = vpop.f32.mrf.mxu0  ;;  %v9034_v36 = vld [vmem:[%s12631_s4 + $0xe0] sm:$0xff]  }
 0x157   :  { %v10333_v42 = vpop.f32.mrf.mxu1  ;;  %v1473_v0 = vadd.f32 %v1472_v41, %v1412_v62  ;;  %v9033_v62 = vld [vmem:[%s12631_s4 + $0xe8] sm:$0xff]  }
 0x158   :  { %v1417_v2 = vpop.f32.mrf.mxu0 }
 0x159   :  { %v1478_v43 = vpop.f32.mrf.mxu1 }
 0x15a   :  { %v1419_v4 = vpop.f32.mrf.mxu0 }
 0x15b   :  { %v1480_v44 = vpop.f32.mrf.mxu1  ;;  %v1420_v5 = vadd.f32 %v1419_v4, %v1359_v22  ;;  %v1418_v22 = vadd.f32 %v1417_v2, %v10319_v19  ;;  %v342_v2 = vpop.xlane.xlu0 %341 }
 0x15c   :  { %v1421_v7 = vpop.f32.mrf.mxu0  ;;  %v355_v4 = vmax.f32 %v342_v2, 1.0 }
 0x15d   :  { %v1482_v45 = vpop.f32.mrf.mxu1  ;;  %v1481_v9 = vadd.f32 %v1480_v44, %v1420_v5  ;;  %v1422_v28 = vadd.f32 %v1421_v7, %v1361_v24  ;;  %v1479_v34 = vadd.f32 %v1478_v43, %v1418_v22  ;;  %v348_v7 = vpop.xlane.xlu1 %347 }
 0x15e   :  { %v10339_v11 = vpop.f32.mrf.mxu0  ;;  %9533 = vrcp.f32 %v355_v4 }
 0x15f   :  { %v10335_v46 = vpop.f32.mrf.mxu1  ;;  %v345_v5 = vpop.xlane.xlu0 %344 }
 0x160   :  { %v1427_v60 = vpop.f32.mrf.mxu0 }
 0x161   :  { %v1488_v47 = vpop.f32.mrf.mxu1  ;;  %v1428_v35 = vadd.f32 %v1427_v60, %v10323_v26  ;;  %v357_v60 = vmax.f32 %v348_v7, 1.0 }
 0x162   :  { %v1429_v6 = vpop.f32.mrf.mxu0 }
 0x163   :  { %v1490_v48 = vpop.f32.mrf.mxu1  ;;  %v1430_v13 = vadd.f32 %v1429_v6, %v1369_v30  ;;  %v1483_v30 = vadd.f32 %v1482_v45, %v1422_v28  ;;  %v351_v6 = vpop.xlane.xlu1 %350 }
 0x164   :  { %v1431_v16 = vpop.f32.mrf.mxu0 }
 0x165   :  { %v1492_v51 = vpop.f32.mrf.mxu1  ;;  %v1491_v12 = vadd.f32 %v1490_v48, %v1430_v13  ;;  %v1489_v48 = vadd.f32 %v1488_v47, %v1428_v35  ;;  %v9029_v47 = vld [vmem:[%s12631_s4 + $0x108] sm:$0xff]   ;;  %v358_v13 = vmax.f32 %v351_v6, 1.0  ;;  %v354_v16 = vpop.xlane.xlu0 %353 }
 0x166   :  { %v1432_v17 = vpop.f32.mrf.mxu0 }
 0x167   :  { %v1493_v58 = vpop.f32.mrf.mxu1  ;;  %v359_v17 = vmax.f32 %v354_v16, 1.0 }
 0x168   :  { %v9032_v58 = vld [vmem:[%s12631_s4 + $0xf0] sm:$0xff]  }
 0x170   :  { %v1529_v18 = vpop.f32.mrf.mxu0 }
 0x171   :  { %v1530_v23 = vadd.f32 %v1529_v18, %v1469_v57  ;;  %v9031_v57 = vld [vmem:[%s12631_s4 + $0xf8] sm:$0xff]   ;;  %v9534_v18 = vpop.eup %9533 }
 0x172   :  { %v1531_v20 = vpop.f32.mrf.mxu0 }
 0x173   :  { %v10341_v14 = vadd.f32 %v1531_v20, %v1471_v55  ;;  %v9035_v55 = vld [vmem:[%s12631_s4 + $0xd8] sm:$0xff]  }
 0x174   :  { %v1533_v21 = vpop.f32.mrf.mxu0 }
 0x175   :  { %v1534_v1 = vadd.f32 %v1533_v21, %v1473_v0  ;;  %v9036_v0 = vld [vmem:[%s12631_s4 + $0xd0] sm:$0xff]  }
 0x176   :  { %v10343_v27 = vpop.f32.mrf.mxu0 }
 0x177   :  { %v1564_v29 = vpack.c.bf16 %v1534_v1, %v1530_v23 }
 0x178   :  { %v1539_v31 = vpop.f32.mrf.mxu0 }
 0x179   :  { %v1540_v40 = vadd.f32 %v1539_v31, %v1479_v34  ;;  %v7802_v31 = vld [vmem:[%s12633_s6] ss:$0 sm:$0xff] }
 0x17a   :  { %v1541_v33 = vpop.f32.mrf.mxu0 }
 0x17b   :  { %v10347_v38 = vadd.f32 %v1541_v33, %v1481_v9  ;;  %v356_v9 = vmax.f32 %v345_v5, 1.0 }
 0x17c   :  { %v1543_v39 = vpop.f32.mrf.mxu0 }
 0x17d   :  { %v1544_v41 = vadd.f32 %v1543_v39, %v1483_v30  ;;  %9535 = vrcp.f32 %v356_v9 }
 0x17e   :  { %v10349_v44 = vpop.f32.mrf.mxu0  ;;  %9537 = vrcp.f32 %v357_v60 }
 0x17f   :  { %v1565_v49 = vpack.c.bf16 %v1544_v41, %v1540_v40  ;;  %9539 = vrcp.f32 %v358_v13 }
 0x180   :  { %v1549_v50 = vpop.f32.mrf.mxu0  ;;  %9541 = vrcp.f32 %v359_v17 }
 0x181   :  { %v1550_v51 = vadd.f32 %v1549_v50, %v1489_v48 }
 0x182   :  { %v1551_v19 = vpop.f32.mrf.mxu0 }
 0x183   :  { %v1566_v24 = vpack.c.bf16 %v1550_v51, %v1550_v51  ;;  %v10351_v52 = vadd.f32 %v1551_v19, %v1491_v12  ;;  %v1353_v12 = vadd.f32 %v10305_v54, %v10317_v15  ;;  %v1363_v54 = vadd.f32 %v10313_v8, %v10321_v25 }
 0x184   :  { %v1553_v43 = vpop.f32.mrf.mxu0 }
 0x185   :  { %v1578_v45 = vsel %vm1576_vm4, %v1566_v24, 0  ;;  %v1414_v20 = vadd.f32 %v10337_v63, %v1353_v12  ;;  %v1424_v35 = vadd.f32 %v10339_v11, %v1363_v54 }
 0x186   :  { %v1554_v26 = vpop.f32.mrf.mxu0  ;;  %8505 = vmatpush3.bf16.msra.mxu1 %v1578_v45 }
 0x187   :  { %8506 = vmatprep.subr.bf16.mxu1 %v12640_v61  ;;  %v1475_v28 = vadd.f32 %v10333_v42, %v1414_v20  ;;  %v1485_v50 = vadd.f32 %v10335_v46, %v1424_v35 }
 0x189   :  { %v1536_v15 = vadd.f32 %v10343_v27, %v1475_v28  ;;  %v1546_v11 = vadd.f32 %v10349_v44, %v1485_v50 }
 0x18a   :  { %8507 = vmatpush3.bf16.msra.mxu1 %v1565_v49  ;;  %v9536_v1 = vpop.eup %9535 }
 0x18b   :  { %8508 = vmatprep.subr.bf16.mxu1 %v12640_v61  ;;  %v9538_v34 = vpop.eup %9537 }
 0x18c   :  { %v9540_v48 = vpop.eup %9539 }
 0x18d   :  { %v9542_v43 = vpop.eup %9541 }
 0x18e   :  { %8509 = vmatpush3.bf16.msra.mxu1 %v1564_v29 }
 0x18f   :  { %8522 = vmatprep.subr.bf16.mxu1 %v12640_v61 }
 0x191   :  { %8511 = vmatmul.mubr.msk.bf16.vlgmr.msra.gmra.mxu1 %vm339_vm3, %v10309_v3 }
 0x192   :  { %8514 = vmatprep.mubr.msk.bf16.mxu1 %vm9640_vm2, %v12640_v61  ;;  %8523 = vmatpush3.bf16.msra.mxu1 %v9029_v47 }
 0x193   :  { %8524 = vmatprep.subr.bf16.mxu1 %v12640_v61 }
 0x196   :  { %8525 = vmatpush3.bf16.msra.mxu1 %v9030_v53 }
 0x197   :  { %8526 = vmatprep.subr.bf16.mxu1 %v12640_v61 }
 0x199   :  { %8515 = vmatmul.mubr.msk.bf16.gmra.mxu1 %vm339_vm3, %v10315_v56 }
 0x19a   :  { %8518 = vmatprep.mubr.msk.bf16.mxu1 %vm9640_vm2, %v12640_v61  ;;  %8527 = vmatpush3.bf16.msra.mxu1 %v9031_v57 }
 0x19b   :  { %8528 = vmatprep.subr.bf16.mxu1 %v12640_v61 }
 0x19e   :  { %8529 = vmatpush3.bf16.msra.mxu1 %v9032_v58 }
 0x19f   :  { %8530 = vmatprep.subr.bf16.mxu1 %v12640_v61 }
 0x1a1   :  { %8519 = vmatmul.mubr.msk.bf16.gmra.mxu1 %vm339_vm3, %v10382_v59 }
 0x1a2   :  { %8538 = vmatprep.mubr.msk.bf16.mxu1 %vm9640_vm2, %v12640_v61  ;;  %8531 = vmatpush3.bf16.msra.mxu1 %v9033_v62 }
 0x1a3   :  { %8532 = vmatprep.subr.bf16.mxu1 %v12640_v61 }
 0x1a6   :  { %8533 = vmatpush3.bf16.msra.mxu1 %v9034_v36 }
 0x1a7   :  { %8534 = vmatprep.subr.bf16.mxu1 %v12640_v61 }
 0x1aa   :  { %8535 = vmatpush3.bf16.msra.mxu1 %v9035_v55 }
 0x1ab   :  { %8536 = vmatprep.subr.bf16.mxu1 %v12640_v61 }
 0x1ae   :  { %8537 = vmatpush3.bf16.msra.mxu1 %v9036_v0 }
 0x1af   :  { %8578 = vmatprep.subr.bf16.mxu1 %v12640_v61 }
 0x251   :  { %v1614_v21 = vpop.f32.mrf.mxu1 }
 0x252   :  { %v1636_v23 = vmul.f32 %v9534_v18, %v1614_v21 }
 0x253   :  { %v8512_v22 = vpop.f32.mrf.mxu1 }
 0x254   :  { %v1641_v29 = vadd.f32 %v1636_v23, %v10341_v14 }
 0x255   :  { %v1617_v33 = vpop.f32.mrf.mxu1 }
 0x256   :  { %v1637_v63 = vmul.f32 %v9536_v1, %v1617_v33  ;;  %v10417_v39 = vadd.f32 %v7802_v31, %v1641_v29 }
 0x257   :  { %v8513_v30 = vpop.f32.mrf.mxu1 }
 0x258   :  { %12650 = vst [vmem:[#allocation12_spill] sm:$0xff] %v10417_v39  ;;  %v1642_v42 = vadd.f32 %v1637_v63, %v1536_v15  ;;  %v12639_v8 = vmax.f32 %v10417_v39, 0.0 }
 0x259   :  { %v1622_v40 = vpop.f32.mrf.mxu1 }
 0x25a   :  { %v10419_v14 = vadd.f32 %v7802_v31, %v1642_v42  ;;  %v1638_v41 = vmul.f32 %v9538_v34, %v1622_v40  ;;  %v7814_v42 = vld [vmem:[%s12633_s6 + $0x3] ss:$0 sm:$0xff] }
 0x25b   :  { %v8516_v49 = vpop.f32.mrf.mxu1 }
 0x25c   :  { %12651 = vst [vmem:[#allocation13_spill] sm:$0xff] %v10419_v14  ;;  %v12638_v25 = vmax.f32 %v10419_v14, 0.0  ;;  %v1643_v27 = vadd.f32 %v1638_v41, %v10347_v38 }
 0x25d   :  { %v1625_v51 = vpop.f32.mrf.mxu1 }
 0x25e   :  { %v1679_v19 = vpack.c.bf16 %v12638_v25, %v12639_v8  ;;  %v1639_v24 = vmul.f32 %v9540_v48, %v1625_v51  ;;  %v10430_v26 = vadd.f32 %v7802_v31, %v1643_v27 }
 0x25f   :  { %v8517_v45 = vpop.f32.mrf.mxu1 }
 0x260   :  { %v1644_v46 = vadd.f32 %v1639_v24, %v1546_v11  ;;  %8539 = vmatmul.mubr.bf16.vlgmr.msra.gmra.mxu1 %v1679_v19  ;;  %v1660_v57 = vmax.f32 %v10430_v26, 0.0 }
 0x261   :  { %v1630_v47 = vpop.f32.mrf.mxu1  ;;  %8542 = vmatprep.mubr.msk.bf16.mxu1 %vm9640_vm2, %v12640_v61 }
 0x262   :  { %v10434_v38 = vadd.f32 %v7802_v31, %v1644_v46  ;;  %v1640_v53 = vmul.f32 %v9542_v43, %v1630_v47 }
 0x263   :  { %v8520_v44 = vpop.f32.mrf.mxu1 }
 0x264   :  { %v1661_v58 = vmax.f32 %v10434_v38, 0.0  ;;  %v1645_v62 = vadd.f32 %v1640_v53, %v10351_v52 }
 0x265   :  { %v1633_v36 = vpop.f32.mrf.mxu1 }
 0x266   :  { %v1657_v55 = vadd.f32 %v7802_v31, %v1645_v62  ;;  %v1680_v0 = vpack.c.bf16 %v1661_v58, %v1660_v57 }
 0x267   :  { %v8521_v2 = vpop.f32.mrf.mxu1 }
 0x268   :  { %8543 = vmatmul.mubr.bf16.gmra.mxu1 %v1680_v0  ;;  %v10445_v4 = vmax.f32 %v1657_v55, 0.0 }
 0x269   :  { %8546 = vmatprep.mubr.msk.bf16.mxu1 %vm9640_vm2, %v12640_v61 }
 0x26a   :  { %v1681_v5 = vpack.c.bf16 %v10445_v4, %v10445_v4 }
 0x270   :  { %8547 = vmatmul.mubr.bf16.gmra.mxu1 %v1681_v5 }
 0x271   :  { %8584 = vmatprep.mubr.msk.bf16.mxu1 %vm9640_vm2, %v12640_v61 }
 0x320   :  { %v1764_v52 = vpop.f32.mrf.mxu1 }
 0x321   :  { %1794 = vrot.lane.b32.xlu1 %v1764_v52, %s9641_s16 }
 0x322   :  { %v8540_v7 = vpop.f32.mrf.mxu1 }
 0x324   :  { %v1767_v9 = vpop.f32.mrf.mxu1 }
 0x325   :  { %1796 = vrot.lane.b32.xlu1 %v1767_v9, %s9641_s16  ;;  %v1786_v28 = vpack.c.bf16 %v1767_v9, %v1764_v52 }
 0x326   :  { %v8541_v60 = vpop.f32.mrf.mxu1 }
 0x328   :  { %v1772_v6 = vpop.f32.mrf.mxu1 }
 0x329   :  { %1798 = vrot.lane.b32.xlu1 %v1772_v6, %s9641_s16 }
 0x32a   :  { %v8544_v13 = vpop.f32.mrf.mxu1 }
 0x32c   :  { %v1775_v16 = vpop.f32.mrf.mxu1 }
 0x32d   :  { %1800 = vrot.lane.b32.xlu1 %v1775_v16, %s9641_s16  ;;  %v1787_v1 = vpack.c.bf16 %v1775_v16, %v1772_v6 }
 0x32e   :  { %v8545_v12 = vpop.f32.mrf.mxu1 }
 0x32f   :  { %v10499_v12 = vshrl.u32 %v198_v32, 7 }
 0x330   :  { %v1780_v17 = vpop.f32.mrf.mxu1 }
 0x331   :  { %v1788_v18 = vpack.c.bf16 %v1780_v17, %v1780_v17  ;;  %1802 = vrot.lane.b32.xlu0 %v1780_v17, %s9641_s16  ;;  %12652 = vst [vmem:[#allocation14_spill] sm:$0xff] %v10499_v12 }
 0x332   :  { %v8548_v20 = vpop.f32.mrf.mxu1 }
 0x333   :  { %v1810_v21 = vsel %vm1576_vm4, %v1788_v18, 0 }
 0x334   :  { %v1783_v23 = vpop.f32.mrf.mxu1  ;;  %8551 = vmatpush3.bf16.msra.mxu0 %v1810_v21  ;;  %v1883_v21 = vadd.s32 16, %v10499_v12 }
 0x335   :  { %8552 = vmatprep.subr.bf16.mxu0 %v12640_v61 }
 0x336   :  { %v8549_v22 = vpop.f32.mrf.mxu1  ;;  %v10508_v32 = vcvt.s32.f32 %v1883_v21 }
 0x337   :  { %v1884_v22 = vadd.s32 24, %v10499_v12 }
 0x338   :  { %8553 = vmatpush3.bf16.msra.mxu0 %v1787_v1  ;;  %v1882_v1 = vadd.s32 8, %v10499_v12 }
 0x339   :  { %8554 = vmatprep.subr.bf16.mxu0 %v12640_v61 }
 0x33c   :  { %8555 = vmatpush3.bf16.msra.mxu0 %v1786_v28  ;;  %v1885_v28 = vadd.s32 32, %v10499_v12 }
 0x33d   :  { %8568 = vmatprep.subr.bf16.mxu0 %v12640_v61 }
 0x33f   :  { %8557 = vmatmul.mubr.msk.bf16.vlgmr.msra.gmra.mxu0 %vm339_vm3, %v10309_v3 }
 0x340   :  { %8560 = vmatprep.mubr.msk.bf16.mxu0 %vm9640_vm2, %v12640_v61 }
 0x347   :  { %8561 = vmatmul.mubr.msk.bf16.gmra.mxu0 %vm339_vm3, %v10315_v56 }
 0x348   :  { %8564 = vmatprep.mubr.msk.bf16.mxu0 %vm9640_vm2, %v12640_v61 }
 0x34f   :  { %8565 = vmatmul.mubr.msk.bf16.gmra.mxu0 %vm339_vm3, %v10382_v59 }
 0x350   :  { %8574 = vmatprep.mubr.msk.bf16.mxu0 %vm9640_vm2, %v12640_v61 }
 0x393   :  { %v1795_v29 = vpop.permute.xlu1 %1794 }
 0x397   :  { %v1797_v31 = vpop.permute.xlu1 %1796 }
 0x39b   :  { %v1799_v63 = vpop.permute.xlu1 %1798 }
 0x39f   :  { %v1801_v48 = vpop.permute.xlu1 %1800 }
 0x3a3   :  { %v1803_v24 = vpop.permute.xlu0 %1802 }
 0x3ff   :  { %v1846_v33 = vpop.f32.mrf.mxu0 }
 0x400   :  { %v1847_v50 = vadd.f32 %v1846_v33, %v1795_v29  ;;  %v10506_v33 = vcvt.s32.f32 %v10499_v12 }
 0x401   :  { %v8558_v54 = vpop.f32.mrf.mxu0 }
 0x402   :  { %v10480_v45 = vadd.f32 %v7814_v42, %v1847_v50  ;;  %v10510_v54 = vcvt.s32.f32 %v1882_v1 }
 0x403   :  { %v1849_v15 = vpop.f32.mrf.mxu0 }
 0x404   :  { %v1850_v11 = vadd.f32 %v1849_v15, %v1797_v31  ;;  %v1899_v36 = vsel %vm1898_vm5, %v10480_v45, -inf  ;;  %v10512_v15 = vcvt.s32.f32 %v1884_v22 }
 0x405   :  { %v8559_v34 = vpop.f32.mrf.mxu0 }
 0x406   :  { %v10483_v53 = vadd.f32 %v7814_v42, %v1850_v11 }
 0x407   :  { %v1854_v30 = vpop.f32.mrf.mxu0 }
 0x408   :  { %v1855_v35 = vadd.f32 %v1854_v30, %v1799_v63  ;;  %v1900_v52 = vsel %vm1898_vm5, %v10483_v53, -inf  ;;  %v10514_v63 = vcvt.s32.f32 %v1885_v28 }
 0x409   :  { %v8562_v40 = vpop.f32.mrf.mxu0 }
 0x40a   :  { %v10475_v41 = vadd.f32 %v7814_v42, %v1855_v35 }
 0x40b   :  { %v1857_v49 = vpop.f32.mrf.mxu0 }
 0x40c   :  { %9543 = vtanh.f32 %v10475_v41  ;;  %v1858_v27 = vadd.f32 %v1857_v49, %v1801_v48  ;;  %v1901_v7 = vsel %vm1898_vm5, %v10475_v41, -inf }
 0x40d   :  { %v8563_v51 = vpop.f32.mrf.mxu0 }
 0x40e   :  { %v10478_v19 = vadd.f32 %v7814_v42, %v1858_v27 }
 0x40f   :  { %v1862_v43 = vpop.f32.mrf.mxu0 }
 0x410   :  { %9545 = vtanh.f32 %v10478_v19  ;;  %v1863_v46 = vadd.f32 %v1862_v43, %v1803_v24  ;;  %v1902_v55 = vsel %vm1898_vm5, %v10478_v19, -inf }
 0x411   :  { %v8566_v47 = vpop.f32.mrf.mxu0  ;;  %v1906_v9 = vmax.f32 %v1901_v7, %v1902_v55 }
 0x412   :  { %v10485_v44 = vadd.f32 %v7814_v42, %v1863_v46 }
 0x413   :  { %v1865_v62 = vpop.f32.mrf.mxu0 }
 0x414   :  { %v1903_v0 = vsel %vm1898_vm5, %v10485_v44, -inf  ;;  %9547 = vtanh.f32 %v10485_v44 }
 0x415   :  { %v1904_v2 = vmax.f32 %v1899_v36, %v1903_v0  ;;  %v8567_v5 = vpop.f32.mrf.mxu0  ;;  %9549 = vtanh.f32 %v10480_v45 }
 0x416   :  { %9551 = vtanh.f32 %v10483_v53 }
 0x417   :  { %v1905_v60 = vmax.f32 %v1904_v2, %v1900_v52 }
 0x419   :  { %v9544_v6 = vpop.eup %9543  ;;  %v1907_v13 = vmax.f32 %v1905_v60, %v1906_v9 }
 0x41a   :  { %2834 = vperm.xlu0 %8711, %v9544_v6  }
 0x41b   :  { %v1908_v16 = vrot.slane %v1907_v13, 4 }
 0x41d   :  { %v9546_v17 = vpop.eup %9545  ;;  %v1909_v18 = vmax.f32 %v1907_v13, %v1908_v16 }
 0x41e   :  { %2839 = vperm.xlu1 %8712, %v9546_v17  }
 0x41f   :  { %v1910_v20 = vrot.slane %v1909_v18, 2 }
 0x421   :  { %v9548_v23 = vpop.eup %9547  ;;  %v1911_v29 = vmax.f32 %v1909_v18, %v1910_v20 }
 0x422   :  { %2844 = vperm.xlu1 %8712, %v9548_v23  }
 0x423   :  { %v1912_v31 = vrot.slane %v1911_v29, 1 }
 0x425   :  { %v1913_v34 = vmax.f32 %v1911_v29, %v1912_v31 }
 0x427   :  { %vm1914_vm6 = vcmp.eq.f32.partialorder %v10480_v45, %v1913_v34  ;;  %vm1915_vm7 = vcmp.eq.f32.partialorder %v10483_v53, %v1913_v34  ;;  %vm1916_vm8 = vcmp.eq.f32.partialorder %v10475_v41, %v1913_v34  ;;  %vm1917_vm9 = vcmp.eq.f32.partialorder %v10478_v19, %v1913_v34 }
 0x428   :  { %vm1918_vm10 = vcmp.eq.f32.partialorder %v10485_v44, %v1913_v34  ;;  %v1919_v30 = vsel %vm1914_vm6, %v10506_v33, 40.0  ;;  %v1921_v35 = vsel %vm1916_vm8, %v10508_v32, 40.0  ;;  %v1920_v42 = vsel %vm1915_vm7, %v10510_v54, 40.0 }
 0x429   :  { %v1922_v40 = vsel %vm1917_vm9, %v10512_v15, 40.0  ;;  %v1923_v48 = vsel %vm1918_vm10, %v10514_v63, 40.0  ;;  %v1924_v49 = vsel %vm1898_vm5, %v1919_v30, inf  ;;  %v1926_v50 = vsel %vm1898_vm5, %v1921_v35, inf }
 0x42a   :  { %v1927_v27 = vsel %vm1898_vm5, %v1922_v40, inf  ;;  %v1928_v51 = vsel %vm1898_vm5, %v1923_v48, inf  ;;  %v1925_v24 = vsel %vm1898_vm5, %v1920_v42, inf }
 0x42b   :  { %v1929_v11 = vmin.f32 %v1924_v49, %v1928_v51  ;;  %v1931_v46 = vmin.f32 %v1926_v50, %v1927_v27 }
 0x42d   :  { %v1930_v43 = vmin.f32 %v1929_v11, %v1925_v24 }
 0x42f   :  { %v1932_v47 = vmin.f32 %v1930_v43, %v1931_v46 }
 0x431   :  { %v1933_v62 = vrot.slane %v1932_v47, 4 }
 0x433   :  { %v1934_v36 = vmin.f32 %v1932_v47, %v1933_v62 }
 0x435   :  { %v1935_v55 = vrot.slane %v1934_v36, 2 }
 0x437   :  { %v1936_v0 = vmin.f32 %v1934_v36, %v1935_v55 }
 0x439   :  { %v1937_v2 = vrot.slane %v1936_v0, 1 }
 0x43b   :  { %v1938_v5 = vmin.f32 %v1936_v0, %v1937_v2 }
 0x43d   :  { %vm1939_vm11 = vcmp.eq.f32.partialorder %v10506_v33, %v1938_v5  ;;  %vm1940_vm12 = vcmp.eq.f32.partialorder %v10510_v54, %v1938_v5  ;;  %vm1941_vm13 = vcmp.eq.f32.partialorder %v10508_v32, %v1938_v5  ;;  %vm1942_vm14 = vcmp.eq.f32.partialorder %v10512_v15, %v1938_v5  ;;  %1956 = vperm.xlu0 %8711, %v1938_v5  }
 0x43e   :  { %vm1943_vm15 = vcmp.eq.f32.partialorder %v10514_v63, %v1938_v5  ;;  %v10537_v52 = vsel %vm1939_vm11, 1.0, %v12640_v61  ;;  %v10540_v7 = vsel %vm1940_vm12, 1.0, %v12640_v61  ;;  %v10543_v9 = vsel %vm1941_vm13, 1.0, %v12640_v61 }
 0x43f   :  { %v10546_v60 = vsel %vm1942_vm14, 1.0, %v12640_v61  ;;  %v10549_v6 = vsel %vm1943_vm15, 1.0, %v12640_v61  ;;  %vm1962_vm0 = vcmp.gt.f32.partialorder %v10537_v52, 0.0  ;;  %vm1963_vm1 = vcmp.gt.f32.partialorder %v10540_v7, 0.0 }
 0x440   :  { %vm1964_vm6 = vcmp.gt.f32.partialorder %v10543_v9, 0.0  ;;  %vm1965_vm7 = vcmp.gt.f32.partialorder %v10546_v60, 0.0  ;;  %vm1966_vm8 = vcmp.gt.f32.partialorder %v10549_v6, 0.0  ;;  %v10557_v13 = vsel %vm1962_vm0, -inf, %v10480_v45 }
 0x441   :  { %v10560_v16 = vsel %vm1964_vm6, -inf, %v10475_v41  ;;  %v10563_v17 = vsel %vm1965_vm7, -inf, %v10478_v19  ;;  %v10566_v18 = vsel %vm1966_vm8, -inf, %v10485_v44  ;;  %v10569_v20 = vsel %vm1963_vm1, -inf, %v10483_v53 }
 0x442   :  { %v1972_v21 = vsel %vm1898_vm5, %v10557_v13, -inf  ;;  %v1974_v23 = vsel %vm1898_vm5, %v10560_v16, -inf  ;;  %v1975_v1 = vsel %vm1898_vm5, %v10563_v17, -inf  ;;  %v1976_v41 = vsel %vm1898_vm5, %v10566_v18, -inf }
 0x443   :  { %v1977_v44 = vmax.f32 %v1972_v21, %v1976_v41  ;;  %v1973_v28 = vsel %vm1898_vm5, %v10569_v20, -inf  ;;  %v1979_v31 = vmax.f32 %v1974_v23, %v1975_v1 }
 0x445   :  { %v1978_v29 = vmax.f32 %v1977_v44, %v1973_v28 }
 0x447   :  { %v1980_v34 = vmax.f32 %v1978_v29, %v1979_v31 }
 0x449   :  { %v1981_v30 = vrot.slane %v1980_v34, 4 }
 0x44b   :  { %v1982_v35 = vmax.f32 %v1980_v34, %v1981_v30 }
 0x44d   :  { %v1983_v42 = vrot.slane %v1982_v35, 2 }
 0x44f   :  { %v1984_v40 = vmax.f32 %v1982_v35, %v1983_v42 }
 0x451   :  { %v1985_v48 = vrot.slane %v1984_v40, 1 }
 0x453   :  { %v1986_v49 = vmax.f32 %v1984_v40, %v1985_v48 }
 0x455   :  { %vm1987_vm9 = vcmp.eq.f32.partialorder %v10557_v13, %v1986_v49  ;;  %vm1988_vm10 = vcmp.eq.f32.partialorder %v10569_v20, %v1986_v49  ;;  %vm1989_vm11 = vcmp.eq.f32.partialorder %v10560_v16, %v1986_v49  ;;  %vm1990_vm12 = vcmp.eq.f32.partialorder %v10563_v17, %v1986_v49 }
 0x456   :  { %vm1991_vm13 = vcmp.eq.f32.partialorder %v10566_v18, %v1986_v49  ;;  %v1992_v50 = vsel %vm1987_vm9, %v10506_v33, 40.0  ;;  %v1994_v27 = vsel %vm1989_vm11, %v10508_v32, 40.0  ;;  %v1993_v51 = vsel %vm1988_vm10, %v10510_v54, 40.0 }
 0x457   :  { %v1995_v11 = vsel %vm1990_vm12, %v10512_v15, 40.0  ;;  %v1996_v24 = vsel %vm1991_vm13, %v10514_v63, 40.0  ;;  %v1997_v43 = vsel %vm1898_vm5, %v1992_v50, inf  ;;  %v1999_v46 = vsel %vm1898_vm5, %v1994_v27, inf }
 0x458   :  { %v2000_v47 = vsel %vm1898_vm5, %v1995_v11, inf  ;;  %v2001_v62 = vsel %vm1898_vm5, %v1996_v24, inf  ;;  %v1998_v55 = vsel %vm1898_vm5, %v1993_v51, inf }
 0x459   :  { %v2002_v36 = vmin.f32 %v1997_v43, %v2001_v62  ;;  %v2004_v2 = vmin.f32 %v1999_v46, %v2000_v47 }
 0x45b   :  { %v2003_v0 = vmin.f32 %v2002_v36, %v1998_v55 }
 0x45d   :  { %v2005_v5 = vmin.f32 %v2003_v0, %v2004_v2 }
 0x45f   :  { %v2006_v21 = vrot.slane %v2005_v5, 4 }
 0x461   :  { %v2007_v23 = vmin.f32 %v2005_v5, %v2006_v21 }
 0x463   :  { %v2008_v1 = vrot.slane %v2007_v23, 2 }
 0x465   :  { %v2009_v41 = vmin.f32 %v2007_v23, %v2008_v1 }
 0x467   :  { %v2010_v44 = vrot.slane %v2009_v41, 1 }
 0x469   :  { %v2011_v28 = vmin.f32 %v2009_v41, %v2010_v44 }
 0x46b   :  { %vm2012_vm14 = vcmp.eq.f32.partialorder %v10506_v33, %v2011_v28  ;;  %vm2013_vm15 = vcmp.eq.f32.partialorder %v10510_v54, %v2011_v28  ;;  %vm2014_vm0 = vcmp.eq.f32.partialorder %v10508_v32, %v2011_v28  ;;  %vm2015_vm1 = vcmp.eq.f32.partialorder %v10512_v15, %v2011_v28  ;;  %2029 = vperm.xlu1 %8712, %v2011_v28  }
 0x46c   :  { %vm2016_vm6 = vcmp.eq.f32.partialorder %v10514_v63, %v2011_v28  ;;  %v10606_v29 = vsel %vm2012_vm14, 1.0, %v12640_v61  ;;  %v10609_v31 = vsel %vm2013_vm15, 1.0, %v12640_v61  ;;  %v10612_v34 = vsel %vm2014_vm0, 1.0, %v12640_v61 }
 0x46d   :  { %v10615_v30 = vsel %vm2015_vm1, 1.0, %v12640_v61  ;;  %v10618_v35 = vsel %vm2016_vm6, 1.0, %v12640_v61  ;;  %vm2035_vm7 = vcmp.gt.f32.partialorder %v10606_v29, 0.0  ;;  %vm2036_vm8 = vcmp.gt.f32.partialorder %v10609_v31, 0.0 }
 0x46e   :  { %vm2037_vm9 = vcmp.gt.f32.partialorder %v10612_v34, 0.0  ;;  %vm2038_vm10 = vcmp.gt.f32.partialorder %v10615_v30, 0.0  ;;  %vm2039_vm11 = vcmp.gt.f32.partialorder %v10618_v35, 0.0  ;;  %v10626_v42 = vsel %vm2035_vm7, -inf, %v10557_v13 }
 0x46f   :  { %v10629_v40 = vsel %vm2037_vm9, -inf, %v10560_v16  ;;  %v10632_v48 = vsel %vm2038_vm10, -inf, %v10563_v17  ;;  %v10635_v49 = vsel %vm2039_vm11, -inf, %v10566_v18  ;;  %v10638_v50 = vsel %vm2036_vm8, -inf, %v10569_v20 }
 0x470   :  { %v2045_v27 = vsel %vm1898_vm5, %v10626_v42, -inf  ;;  %v2047_v51 = vsel %vm1898_vm5, %v10629_v40, -inf  ;;  %v2048_v13 = vsel %vm1898_vm5, %v10632_v48, -inf  ;;  %v2049_v16 = vsel %vm1898_vm5, %v10635_v49, -inf }
 0x471   :  { %v2050_v20 = vmax.f32 %v2045_v27, %v2049_v16  ;;  %v2046_v24 = vsel %vm1898_vm5, %v10638_v50, -inf  ;;  %v2052_v46 = vmax.f32 %v2047_v51, %v2048_v13 }
 0x473   :  { %v2051_v43 = vmax.f32 %v2050_v20, %v2046_v24 }
 0x475   :  { %v2053_v47 = vmax.f32 %v2051_v43, %v2052_v46 }
 0x477   :  { %v2054_v62 = vrot.slane %v2053_v47, 4 }
 0x479   :  { %v2055_v36 = vmax.f32 %v2053_v47, %v2054_v62 }
 0x47b   :  { %v2056_v55 = vrot.slane %v2055_v36, 2 }
 0x47d   :  { %v2057_v0 = vmax.f32 %v2055_v36, %v2056_v55 }
 0x47f   :  { %v2058_v2 = vrot.slane %v2057_v0, 1 }
 0x481   :  { %v2059_v5 = vmax.f32 %v2057_v0, %v2058_v2 }
 0x483   :  { %vm2060_vm12 = vcmp.eq.f32.partialorder %v10626_v42, %v2059_v5  ;;  %vm2061_vm13 = vcmp.eq.f32.partialorder %v10638_v50, %v2059_v5  ;;  %vm2062_vm14 = vcmp.eq.f32.partialorder %v10629_v40, %v2059_v5  ;;  %vm2063_vm15 = vcmp.eq.f32.partialorder %v10632_v48, %v2059_v5 }
 0x484   :  { %vm2064_vm0 = vcmp.eq.f32.partialorder %v10635_v49, %v2059_v5  ;;  %v2065_v21 = vsel %vm2060_vm12, %v10506_v33, 40.0  ;;  %v2067_v23 = vsel %vm2062_vm14, %v10508_v32, 40.0  ;;  %v2066_v1 = vsel %vm2061_vm13, %v10510_v54, 40.0 }
 0x485   :  { %v2068_v41 = vsel %vm2063_vm15, %v10512_v15, 40.0  ;;  %v2069_v44 = vsel %vm2064_vm0, %v10514_v63, 40.0  ;;  %v2070_v28 = vsel %vm1898_vm5, %v2065_v21, inf  ;;  %v2072_v27 = vsel %vm1898_vm5, %v2067_v23, inf }
 0x486   :  { %v2073_v51 = vsel %vm1898_vm5, %v2068_v41, inf  ;;  %v2074_v13 = vsel %vm1898_vm5, %v2069_v44, inf  ;;  %v2071_v20 = vsel %vm1898_vm5, %v2066_v1, inf }
 0x487   :  { %v2075_v16 = vmin.f32 %v2070_v28, %v2074_v13  ;;  %v2077_v43 = vmin.f32 %v2072_v27, %v2073_v51 }
 0x489   :  { %v2076_v24 = vmin.f32 %v2075_v16, %v2071_v20 }
 0x48b   :  { %v2078_v46 = vmin.f32 %v2076_v24, %v2077_v43 }
 0x48d   :  { %v2079_v47 = vrot.slane %v2078_v46, 4 }
 0x48f   :  { %v2080_v62 = vmin.f32 %v2078_v46, %v2079_v47 }
 0x491   :  { %v2081_v36 = vrot.slane %v2080_v62, 2 }
 0x493   :  { %v2082_v55 = vmin.f32 %v2080_v62, %v2081_v36 }
 0x495   :  { %v2083_v0 = vrot.slane %v2082_v55, 1 }
 0x497   :  { %v2084_v2 = vmin.f32 %v2082_v55, %v2083_v0 }
 0x499   :  { %v2840_v5 = vpop.permute.xlu1 %2839  ;;  %vm2085_vm1 = vcmp.eq.f32.partialorder %v10506_v33, %v2084_v2  ;;  %vm2086_vm6 = vcmp.eq.f32.partialorder %v10510_v54, %v2084_v2  ;;  %vm2087_vm7 = vcmp.eq.f32.partialorder %v10508_v32, %v2084_v2  ;;  %vm2088_vm8 = vcmp.eq.f32.partialorder %v10512_v15, %v2084_v2  ;;  %2102 = vperm.xlu1 %8712, %v2084_v2  }
 0x49a   :  { %vm2089_vm9 = vcmp.eq.f32.partialorder %v10514_v63, %v2084_v2  ;;  %v10677_v21 = vsel %vm2085_vm1, 1.0, %v12640_v61  ;;  %v10680_v23 = vsel %vm2086_vm6, 1.0, %v12640_v61  ;;  %v10683_v1 = vsel %vm2087_vm7, 1.0, %v12640_v61 }
 0x49b   :  { %v10686_v41 = vsel %vm2088_vm8, 1.0, %v12640_v61  ;;  %v10689_v44 = vsel %vm2089_vm9, 1.0, %v12640_v61  ;;  %vm2108_vm10 = vcmp.gt.f32.partialorder %v10677_v21, 0.0  ;;  %vm2109_vm11 = vcmp.gt.f32.partialorder %v10680_v23, 0.0 }
 0x49c   :  { %vm2110_vm12 = vcmp.gt.f32.partialorder %v10683_v1, 0.0  ;;  %vm2111_vm13 = vcmp.gt.f32.partialorder %v10686_v41, 0.0  ;;  %vm2112_vm14 = vcmp.gt.f32.partialorder %v10689_v44, 0.0  ;;  %v10697_v28 = vsel %vm2108_vm10, -inf, %v10626_v42 }
 0x49d   :  { %v2845_v27 = vpop.permute.xlu1 %2844  ;;  %v10700_v51 = vsel %vm2110_vm12, -inf, %v10629_v40  ;;  %v10703_v13 = vsel %vm2111_vm13, -inf, %v10632_v48  ;;  %v10706_v16 = vsel %vm2112_vm14, -inf, %v10635_v49  ;;  %v10709_v20 = vsel %vm2109_vm11, -inf, %v10638_v50  ;;  %v2835_v50 = vpop.permute.xlu0 %2834 }
 0x49e   :  { %v2118_v24 = vsel %vm1898_vm5, %v10697_v28, -inf  ;;  %v2120_v42 = vsel %vm1898_vm5, %v10700_v51, -inf  ;;  %v2121_v43 = vsel %vm1898_vm5, %v10703_v13, -inf  ;;  %v2122_v40 = vsel %vm1898_vm5, %v10706_v16, -inf }
 0x49f   :  { %v2851_v48 = vmul.f32 %v2845_v27, %v10445_v4  ;;  %v2123_v46 = vmax.f32 %v2118_v24, %v2122_v40  ;;  %v2119_v49 = vsel %vm1898_vm5, %v10709_v20, -inf  ;;  %v2125_v36 = vmax.f32 %v2120_v42, %v2121_v43 }
 0x4a0   :  { %v2850_v55 = vmul.f32 %v2840_v5, %v1661_v58  ;;  %v2849_v10 = vmul.f32 %v2835_v50, %v1660_v57 }
 0x4a1   :  { %v2855_v47 = vpack.c.bf16 %v2851_v48, %v2851_v48  ;;  %v2124_v62 = vmax.f32 %v2123_v46, %v2119_v49 }
 0x4a2   :  { %v2854_v27 = vpack.c.bf16 %v2850_v55, %v2849_v10 }
 0x4a3   :  { %v2860_v0 = vsel %vm1576_vm4, %v2855_v47, 0  ;;  %v2126_v2 = vmax.f32 %v2124_v62, %v2125_v36 }
 0x4a4   :  { %8569 = vmatpush3.bf16.msra.mxu0 %v2860_v0 }
 0x4a5   :  { %8570 = vmatprep.subr.bf16.mxu0 %v12640_v61  ;;  %v2127_v4 = vrot.slane %v2126_v2, 4 }
 0x4a7   :  { %v2128_v24 = vmax.f32 %v2126_v2, %v2127_v4 }
 0x4a8   :  { %8571 = vmatpush3.bf16.msra.mxu0 %v2854_v27 }
 0x4a9   :  { %8572 = vmatprep.subr.bf16.mxu0 %v12640_v61  ;;  %v2129_v40 = vrot.slane %v2128_v24, 2 }
 0x4ab   :  { %v2130_v42 = vmax.f32 %v2128_v24, %v2129_v40 }
 0x4ad   :  { %v2131_v43 = vrot.slane %v2130_v42, 1 }
 0x4af   :  { %v2132_v38 = vmax.f32 %v2130_v42, %v2131_v43 }
 0x4b1   :  { %vm2133_vm15 = vcmp.eq.f32.partialorder %v10697_v28, %v2132_v38  ;;  %vm2134_vm0 = vcmp.eq.f32.partialorder %v10709_v20, %v2132_v38  ;;  %vm2135_vm1 = vcmp.eq.f32.partialorder %v10700_v51, %v2132_v38  ;;  %vm2136_vm6 = vcmp.eq.f32.partialorder %v10703_v13, %v2132_v38 }
 0x4b2   :  { %vm2137_vm7 = vcmp.eq.f32.partialorder %v10706_v16, %v2132_v38  ;;  %v2138_v10 = vsel %vm2133_vm15, %v10506_v33, 40.0  ;;  %v2140_v26 = vsel %vm2135_vm1, %v10508_v32, 40.0  ;;  %v2139_v57 = vsel %vm2134_vm0, %v10510_v54, 40.0 }
 0x4b3   :  { %v2141_v58 = vsel %vm2136_vm6, %v10512_v15, 40.0  ;;  %v2142_v5 = vsel %vm2137_vm7, %v10514_v63, 40.0  ;;  %v2143_v48 = vsel %vm1898_vm5, %v2138_v10, inf  ;;  %v2145_v46 = vsel %vm1898_vm5, %v2140_v26, inf }
 0x4b4   :  { %v2146_v49 = vsel %vm1898_vm5, %v2141_v58, inf  ;;  %v2147_v50 = vsel %vm1898_vm5, %v2142_v5, inf  ;;  %v2144_v62 = vsel %vm1898_vm5, %v2139_v57, inf }
 0x4b5   :  { %v2148_v47 = vmin.f32 %v2143_v48, %v2147_v50  ;;  %v2150_v55 = vmin.f32 %v2145_v46, %v2146_v49 }
 0x4b7   :  { %v2149_v36 = vmin.f32 %v2148_v47, %v2144_v62 }
 0x4b9   :  { %v2151_v0 = vmin.f32 %v2149_v36, %v2150_v55 }
 0x4bb   :  { %v2152_v2 = vrot.slane %v2151_v0, 4 }
 0x4bd   :  { %v2153_v4 = vmin.f32 %v2151_v0, %v2152_v2 }
 0x4bf   :  { %v2154_v27 = vrot.slane %v2153_v4, 2 }
 0x4c1   :  { %v2155_v24 = vmin.f32 %v2153_v4, %v2154_v27 }
 0x4c3   :  { %v2156_v40 = vrot.slane %v2155_v24, 1 }
 0x4c5   :  { %v2157_v42 = vmin.f32 %v2155_v24, %v2156_v40 }
 0x4c7   :  { %vm2158_vm8 = vcmp.eq.f32.partialorder %v10506_v33, %v2157_v42  ;;  %vm2159_vm9 = vcmp.eq.f32.partialorder %v10510_v54, %v2157_v42  ;;  %vm2160_vm10 = vcmp.eq.f32.partialorder %v10508_v32, %v2157_v42  ;;  %vm2161_vm11 = vcmp.eq.f32.partialorder %v10512_v15, %v2157_v42  ;;  %2175 = vperm.xlu0 %8711, %v2157_v42  }
 0x4c8   :  { %vm2162_vm12 = vcmp.eq.f32.partialorder %v10514_v63, %v2157_v42  ;;  %v10750_v43 = vsel %vm2158_vm8, 1.0, %v12640_v61  ;;  %v10753_v38 = vsel %vm2159_vm9, 1.0, %v12640_v61  ;;  %v10756_v10 = vsel %vm2160_vm10, 1.0, %v12640_v61 }
 0x4c9   :  { %v10759_v26 = vsel %vm2161_vm11, 1.0, %v12640_v61  ;;  %v10762_v57 = vsel %vm2162_vm12, 1.0, %v12640_v61  ;;  %vm2181_vm13 = vcmp.gt.f32.partialorder %v10750_v43, 0.0  ;;  %vm2182_vm14 = vcmp.gt.f32.partialorder %v10753_v38, 0.0 }
 0x4ca   :  { %vm2183_vm15 = vcmp.gt.f32.partialorder %v10756_v10, 0.0  ;;  %vm2184_vm0 = vcmp.gt.f32.partialorder %v10759_v26, 0.0  ;;  %vm2185_vm1 = vcmp.gt.f32.partialorder %v10762_v57, 0.0  ;;  %v10770_v58 = vsel %vm2181_vm13, -inf, %v10697_v28 }
 0x4cb   :  { %v10773_v5 = vsel %vm2183_vm15, -inf, %v10700_v51  ;;  %v10776_v48 = vsel %vm2184_vm0, -inf, %v10703_v13  ;;  %v10779_v46 = vsel %vm2185_vm1, -inf, %v10706_v16  ;;  %v10782_v49 = vsel %vm2182_vm14, -inf, %v10709_v20 }
 0x4cc   :  { %v2191_v50 = vsel %vm1898_vm5, %v10770_v58, -inf  ;;  %v2193_v47 = vsel %vm1898_vm5, %v10773_v5, -inf  ;;  %v2194_v28 = vsel %vm1898_vm5, %v10776_v48, -inf  ;;  %v2195_v51 = vsel %vm1898_vm5, %v10779_v46, -inf }
 0x4cd   :  { %v2196_v20 = vmax.f32 %v2191_v50, %v2195_v51  ;;  %v2192_v36 = vsel %vm1898_vm5, %v10782_v49, -inf  ;;  %v2198_v0 = vmax.f32 %v2193_v47, %v2194_v28 }
 0x4cf   :  { %v2197_v55 = vmax.f32 %v2196_v20, %v2192_v36 }
 0x4d1   :  { %v2199_v2 = vmax.f32 %v2197_v55, %v2198_v0 }
 0x4d3   :  { %v2200_v4 = vrot.slane %v2199_v2, 4 }
 0x4d5   :  { %v2201_v27 = vmax.f32 %v2199_v2, %v2200_v4 }
 0x4d7   :  { %v2202_v24 = vrot.slane %v2201_v27, 2 }
 0x4d9   :  { %v2203_v40 = vmax.f32 %v2201_v27, %v2202_v24 }
 0x4db   :  { %v2204_v42 = vrot.slane %v2203_v40, 1 }
 0x4dd   :  { %v2205_v25 = vmax.f32 %v2203_v40, %v2204_v42 }
 0x4df   :  { %vm2206_vm6 = vcmp.eq.f32.partialorder %v10770_v58, %v2205_v25  ;;  %vm2207_vm7 = vcmp.eq.f32.partialorder %v10782_v49, %v2205_v25  ;;  %vm2210_vm8 = vcmp.eq.f32.partialorder %v10779_v46, %v2205_v25  ;;  %vm2208_vm9 = vcmp.eq.f32.partialorder %v10773_v5, %v2205_v25 }
 0x4e0   :  { %v2211_v50 = vsel %vm2206_vm6, %v10506_v33, 40.0  ;;  %v2212_v51 = vsel %vm2207_vm7, %v10510_v54, 40.0  ;;  %v2215_v47 = vsel %vm2210_vm8, %v10514_v63, 40.0  ;;  %vm2209_vm10 = vcmp.eq.f32.partialorder %v10776_v48, %v2205_v25 }
 0x4e1   :  { %v2216_v28 = vsel %vm1898_vm5, %v2211_v50, inf  ;;  %v2220_v20 = vsel %vm1898_vm5, %v2215_v47, inf  ;;  %v2213_v36 = vsel %vm2208_vm9, %v10508_v32, 40.0  ;;  %v2214_v0 = vsel %vm2209_vm10, %v10512_v15, 40.0 }
 0x4e2   :  { %v2221_v55 = vmin.f32 %v2216_v28, %v2220_v20  ;;  %v2218_v2 = vsel %vm1898_vm5, %v2213_v36, inf  ;;  %v2217_v4 = vsel %vm1898_vm5, %v2212_v51, inf  ;;  %v2219_v27 = vsel %vm1898_vm5, %v2214_v0, inf }
 0x4e3   :  { %v2223_v40 = vmin.f32 %v2218_v2, %v2219_v27 }
 0x4e4   :  { %v2222_v24 = vmin.f32 %v2221_v55, %v2217_v4 }
 0x4e6   :  { %v2224_v42 = vmin.f32 %v2222_v24, %v2223_v40 }
 0x4e8   :  { %v2225_v8 = vrot.slane %v2224_v42, 4 }
 0x4ea   :  { %v2226_v25 = vmin.f32 %v2224_v42, %v2225_v8 }
 0x4ec   :  { %v2227_v11 = vrot.slane %v2226_v25, 2 }
 0x4ee   :  { %v2228_v50 = vmin.f32 %v2226_v25, %v2227_v11 }
 0x4f0   :  { %v2229_v18 = vrot.slane %v2228_v50, 1 }
 0x4f2   :  { %v2230_v47 = vmin.f32 %v2228_v50, %v2229_v18 }
 0x4f4   :  { %2248 = vperm.xlu0 %8711, %v2230_v47   ;;  %vm2231_vm11 = vcmp.eq.f32.partialorder %v10506_v33, %v2230_v47  ;;  %vm2235_vm12 = vcmp.eq.f32.partialorder %v10514_v63, %v2230_v47  ;;  %vm2232_vm13 = vcmp.eq.f32.partialorder %v10510_v54, %v2230_v47  ;;  %vm2233_vm14 = vcmp.eq.f32.partialorder %v10508_v32, %v2230_v47 }
 0x4f5   :  { %vm2234_vm15 = vcmp.eq.f32.partialorder %v10512_v15, %v2230_v47  ;;  %v10821_v51 = vsel %vm2231_vm11, 1.0, %v12640_v61  ;;  %v10824_v8 = vsel %vm2232_vm13, 1.0, %v12640_v61  ;;  %v10827_v11 = vsel %vm2233_vm14, 1.0, %v12640_v61 }
 0x4f6   :  { %v10830_v18 = vsel %vm2234_vm15, 1.0, %v12640_v61  ;;  %v10833_v28 = vsel %vm2235_vm12, 1.0, %v12640_v61  ;;  %vm2254_vm0 = vcmp.gt.f32.partialorder %v10821_v51, 0.0  ;;  %vm2255_vm1 = vcmp.gt.f32.partialorder %v10824_v8, 0.0 }
 0x4f7   :  { %12653 = vst [vmem:[#allocation15_spill] sm:$0xff] %v10830_v18  ;;  %vm2256_vm6 = vcmp.gt.f32.partialorder %v10827_v11, 0.0  ;;  %vm2257_vm7 = vcmp.gt.f32.partialorder %v10830_v18, 0.0  ;;  %vm2258_vm8 = vcmp.gt.f32.partialorder %v10833_v28, 0.0  ;;  %v2259_v20 = vsel %vm2254_vm0, -inf, %v10770_v58 }
 0x4f8   :  { %v2261_v36 = vsel %vm2256_vm6, -inf, %v10773_v5  ;;  %v2262_v55 = vsel %vm2257_vm7, -inf, %v10776_v48  ;;  %v2263_v0 = vsel %vm2258_vm8, -inf, %v10779_v46  ;;  %v2260_v2 = vsel %vm2255_vm1, -inf, %v10782_v49 }
 0x4f9   :  { %v2264_v4 = vsel %vm1898_vm5, %v2259_v20, -inf  ;;  %v2266_v27 = vsel %vm1898_vm5, %v2261_v36, -inf  ;;  %v2267_v24 = vsel %vm1898_vm5, %v2262_v55, -inf  ;;  %v2268_v40 = vsel %vm1898_vm5, %v2263_v0, -inf }
 0x4fa   :  { %v2269_v42 = vmax.f32 %v2264_v4, %v2268_v40  ;;  %v2265_v5 = vsel %vm1898_vm5, %v2260_v2, -inf  ;;  %v2271_v48 = vmax.f32 %v2266_v27, %v2267_v24 }
 0x4fc   :  { %v2270_v25 = vmax.f32 %v2269_v42, %v2265_v5 }
 0x4fe   :  { %v2272_v50 = vmax.f32 %v2270_v25, %v2271_v48 }
 0x500   :  { %v2273_v46 = vrot.slane %v2272_v50, 4 }
 0x502   :  { %v2274_v47 = vmax.f32 %v2272_v50, %v2273_v46 }
 0x504   :  { %v2275_v49 = vrot.slane %v2274_v47, 2 }
 0x506   :  { %v2276_v62 = vmax.f32 %v2274_v47, %v2275_v49 }
 0x508   :  { %v2277_v16 = vrot.slane %v2276_v62, 1 }
 0x50a   :  { %v2278_v13 = vmax.f32 %v2276_v62, %v2277_v16 }
 0x50c   :  { %vm2279_vm9 = vcmp.eq.f32.partialorder %v2259_v20, %v2278_v13  ;;  %vm2280_vm10 = vcmp.eq.f32.partialorder %v2260_v2, %v2278_v13  ;;  %vm2281_vm11 = vcmp.eq.f32.partialorder %v2261_v36, %v2278_v13  ;;  %vm2282_vm12 = vcmp.eq.f32.partialorder %v2262_v55, %v2278_v13 }
 0x50d   :  { %vm2283_vm13 = vcmp.eq.f32.partialorder %v2263_v0, %v2278_v13  ;;  %v2284_v4 = vsel %vm2279_vm9, %v10506_v33, 40.0  ;;  %v2286_v40 = vsel %vm2281_vm11, %v10508_v32, 40.0  ;;  %v2285_v58 = vsel %vm2280_vm10, %v10510_v54, 40.0 }
 0x50e   :  { %v2287_v27 = vsel %vm2282_vm12, %v10512_v15, 40.0  ;;  %v2288_v24 = vsel %vm2283_vm13, %v10514_v63, 40.0  ;;  %v2289_v42 = vsel %vm1898_vm5, %v2284_v4, inf  ;;  %v2291_v5 = vsel %vm1898_vm5, %v2286_v40, inf }
 0x50f   :  { %v2292_v16 = vsel %vm1898_vm5, %v2287_v27, inf  ;;  %v2293_v62 = vsel %vm1898_vm5, %v2288_v24, inf  ;;  %v2290_v13 = vsel %vm1898_vm5, %v2285_v58, inf  ;;  %v12654_v58 = vmov 0.0  }
 0x510   :  { %v2294_v25 = vmin.f32 %v2289_v42, %v2293_v62  ;;  %v2296_v50 = vmin.f32 %v2291_v5, %v2292_v16 }
 0x512   :  { %v2295_v48 = vmin.f32 %v2294_v25, %v2290_v13 }
 0x514   :  { %v2297_v46 = vmin.f32 %v2295_v48, %v2296_v50 }
 0x516   :  { %v2298_v47 = vrot.slane %v2297_v46, 4 }
 0x518   :  { %v2299_v49 = vmin.f32 %v2297_v46, %v2298_v47 }
 0x51a   :  { %v2300_v22 = vrot.slane %v2299_v49, 2 }
 0x51c   :  { %v2301_v19 = vmin.f32 %v2299_v49, %v2300_v22 }
 0x51e   :  { %v2302_v17 = vrot.slane %v2301_v19, 1 }
 0x520   :  { %v2303_v61 = vmin.f32 %v2301_v19, %v2302_v17 }
 0x522   :  { %2321 = vperm.xlu1 %8712, %v2303_v61   ;;  %vm2304_vm14 = vcmp.eq.f32.partialorder %v10506_v33, %v2303_v61  ;;  %vm2308_vm15 = vcmp.eq.f32.partialorder %v10514_v63, %v2303_v61  ;;  %vm2305_vm0 = vcmp.eq.f32.partialorder %v10510_v54, %v2303_v61  ;;  %vm2306_vm1 = vcmp.eq.f32.partialorder %v10508_v32, %v2303_v61 }
 0x523   :  { %vm2307_vm6 = vcmp.eq.f32.partialorder %v10512_v15, %v2303_v61  ;;  %v10868_v4 = vsel %vm2304_vm14, 1.0, %v12654_v58  ;;  %v10871_v40 = vsel %vm2305_vm0, 1.0, %v12654_v58  ;;  %v10874_v22 = vsel %vm2306_vm1, 1.0, %v12654_v58 }
 0x524   :  { %v10877_v19 = vsel %vm2307_vm6, 1.0, %v12654_v58  ;;  %v10880_v17 = vsel %vm2308_vm15, 1.0, %v12654_v58  ;;  %vm2327_vm7 = vcmp.gt.f32.partialorder %v10868_v4, 0.0  ;;  %vm2328_vm8 = vcmp.gt.f32.partialorder %v10871_v40, 0.0 }
 0x525   :  { %vm2329_vm9 = vcmp.gt.f32.partialorder %v10874_v22, 0.0  ;;  %vm2330_vm10 = vcmp.gt.f32.partialorder %v10877_v19, 0.0  ;;  %vm2331_vm11 = vcmp.gt.f32.partialorder %v10880_v17, 0.0  ;;  %v10887_v61 = vsel %vm2327_vm7, -inf, %v2259_v20 }
 0x526   :  { %v10889_v27 = vsel %vm2329_vm9, -inf, %v2261_v36  ;;  %v10891_v24 = vsel %vm2330_vm10, -inf, %v2262_v55  ;;  %v10893_v42 = vsel %vm2331_vm11, -inf, %v2263_v0  ;;  %v10895_v5 = vsel %vm2328_vm8, -inf, %v2260_v2 }
 0x527   :  { %v2337_v16 = vsel %vm1898_vm5, %v10887_v61, -inf  ;;  %v2339_v62 = vsel %vm1898_vm5, %v10889_v27, -inf  ;;  %v2340_v25 = vsel %vm1898_vm5, %v10891_v24, -inf  ;;  %v2341_v20 = vsel %vm1898_vm5, %v10893_v42, -inf }
 0x528   :  { %v2342_v55 = vmax.f32 %v2337_v16, %v2341_v20  ;;  %v2338_v2 = vsel %vm1898_vm5, %v10895_v5, -inf  ;;  %v2344_v48 = vmax.f32 %v2339_v62, %v2340_v25 }
 0x52a   :  { %v2343_v13 = vmax.f32 %v2342_v55, %v2338_v2 }
 0x52c   :  { %v2345_v50 = vmax.f32 %v2343_v13, %v2344_v48 }
 0x52e   :  { %v2346_v46 = vrot.slane %v2345_v50, 4 }
 0x530   :  { %v2347_v47 = vmax.f32 %v2345_v50, %v2346_v46 }
 0x532   :  { %v2348_v49 = vrot.slane %v2347_v47, 2 }
 0x534   :  { %v2349_v14 = vmax.f32 %v2347_v47, %v2348_v49 }
 0x536   :  { %v2350_v39 = vrot.slane %v2349_v14, 1 }
 0x538   :  { %v2351_v12 = vmax.f32 %v2349_v14, %v2350_v39 }
 0x53a   :  { %vm2352_vm12 = vcmp.eq.f32.partialorder %v10887_v61, %v2351_v12  ;;  %vm2353_vm13 = vcmp.eq.f32.partialorder %v10895_v5, %v2351_v12  ;;  %vm2354_vm14 = vcmp.eq.f32.partialorder %v10889_v27, %v2351_v12  ;;  %vm2355_vm15 = vcmp.eq.f32.partialorder %v10891_v24, %v2351_v12 }
 0x53b   :  { %vm2356_vm0 = vcmp.eq.f32.partialorder %v10893_v42, %v2351_v12  ;;  %v2357_v16 = vsel %vm2352_vm12, %v10506_v33, 40.0  ;;  %v2359_v62 = vsel %vm2354_vm14, %v10508_v32, 40.0  ;;  %v2358_v25 = vsel %vm2353_vm13, %v10510_v54, 40.0 }
 0x53c   :  { %v2360_v20 = vsel %vm2355_vm15, %v10512_v15, 40.0  ;;  %v2361_v39 = vsel %vm2356_vm0, %v10514_v63, 40.0  ;;  %v2362_v14 = vsel %vm1898_vm5, %v2357_v16, inf  ;;  %v2364_v55 = vsel %vm1898_vm5, %v2359_v62, inf }
 0x53d   :  { %v2365_v2 = vsel %vm1898_vm5, %v2360_v20, inf  ;;  %v2366_v13 = vsel %vm1898_vm5, %v2361_v39, inf  ;;  %v2363_v12 = vsel %vm1898_vm5, %v2358_v25, inf }
 0x53e   :  { %v2367_v48 = vmin.f32 %v2362_v14, %v2366_v13  ;;  %v2369_v46 = vmin.f32 %v2364_v55, %v2365_v2 }
 0x540   :  { %v2368_v50 = vmin.f32 %v2367_v48, %v2363_v12 }
 0x542   :  { %v2370_v47 = vmin.f32 %v2368_v50, %v2369_v46 }
 0x544   :  { %v2371_v49 = vrot.slane %v2370_v47, 4 }
 0x546   :  { %v2372_v0 = vmin.f32 %v2370_v47, %v2371_v49  ;;  %v8733_v49 = vpack.i.bf16 %v10683_v1, %v10833_v28 }
 0x548   :  { %v2373_v36 = vrot.slane %v2372_v0, 2 }
 0x54a   :  { %v2374_v37 = vmin.f32 %v2372_v0, %v2373_v36  ;;  %v9550_v0 = vpop.eup %9549 }
 0x54c   :  { %v2375_v18 = vrot.slane %v2374_v37, 1 }
 0x54e   :  { %v2376_v16 = vmin.f32 %v2374_v37, %v2375_v18 }
 0x550   :  { %2394 = vperm.xlu0 %8711, %v2376_v16   ;;  %vm2377_vm1 = vcmp.eq.f32.partialorder %v10506_v33, %v2376_v16  ;;  %vm2378_vm6 = vcmp.eq.f32.partialorder %v10510_v54, %v2376_v16  ;;  %vm2379_vm7 = vcmp.eq.f32.partialorder %v10508_v32, %v2376_v16  ;;  %vm2380_vm8 = vcmp.eq.f32.partialorder %v10512_v15, %v2376_v16 }
 0x551   :  { %vm2381_vm9 = vcmp.eq.f32.partialorder %v10514_v63, %v2376_v16  ;;  %v10933_v62 = vsel %vm2378_vm6, 1.0, %v12654_v58  ;;  %v10936_v45 = vsel %vm2379_vm7, 1.0, %v12654_v58  ;;  %v10939_v36 = vsel %vm2377_vm1, 1.0, %v12654_v58 }
 0x552   :  { %v10942_v37 = vsel %vm2380_vm8, 1.0, %v12654_v58  ;;  %v10945_v18 = vsel %vm2381_vm9, 1.0, %v12654_v58  ;;  %vm2402_vm10 = vcmp.gt.f32.partialorder %v10936_v45, 0.0  ;;  %vm2401_vm11 = vcmp.gt.f32.partialorder %v10933_v62, 0.0 }
 0x553   :  { %vm2403_vm12 = vcmp.gt.f32.partialorder %v10942_v37, 0.0  ;;  %vm2404_vm13 = vcmp.gt.f32.partialorder %v10945_v18, 0.0  ;;  %v2407_v25 = vsel %vm2402_vm10, -inf, %v10889_v27  ;;  %vm2400_vm14 = vcmp.gt.f32.partialorder %v10939_v36, 0.0 }
 0x554   :  { %2824 = vperm.xlu0 %8711, %v9550_v0   ;;  %v2408_v20 = vsel %vm2403_vm12, -inf, %v10891_v24  ;;  %v2409_v39 = vsel %vm2404_vm13, -inf, %v10893_v42  ;;  %v2406_v55 = vsel %vm2401_vm11, -inf, %v10895_v5  ;;  %v2405_v2 = vsel %vm2400_vm14, -inf, %v10887_v61 }
 0x555   :  { %v2414_v14 = vsel %vm1898_vm5, %v2409_v39, -inf  ;;  %v2412_v48 = vsel %vm1898_vm5, %v2407_v25, -inf  ;;  %v2413_v12 = vsel %vm1898_vm5, %v2408_v20, -inf  ;;  %v2410_v27 = vsel %vm1898_vm5, %v2405_v2, -inf }
 0x556   :  { %v12655_v24 = vpack.i.bf16 %v10618_v35, %v10549_v6  ;;  %v2415_v42 = vmax.f32 %v2410_v27, %v2414_v14  ;;  %v2411_v50 = vsel %vm1898_vm5, %v2406_v55, -inf  ;;  %v2417_v46 = vmax.f32 %v2412_v48, %v2413_v12 }
 0x557   :  { %v12656_v61 = vpack.i.bf16 %v10546_v60, %v10543_v9  ;;  %v12657_v6 = vpack.i.bf16 %v10540_v7, %v10537_v52  ;;  %v12658_v48 = vpack.i.bf16 %v10759_v26, %v10756_v10  ;;  %v8763_v60 = vpack.i.bf16 %v10827_v11, %v10680_v23 }
 0x558   :  { %8714 = vperm.xlu0 %8711, %v12655_v24   ;;  %v2416_v5 = vmax.f32 %v2415_v42, %v2411_v50  ;;  %v12660_v27 = vpack.i.bf16 %v10824_v8, %v10821_v51  ;;  %v2902_v50 = vsel %vm1576_vm4, %v10382_v59, 0  ;;  %v9552_v59 = vpop.eup %9551 }
 0x559   :  { %8579 = vmatpush3.bf16.msra.mxu1 %v2902_v50 }
 0x55a   :  { %v2418_v47 = vmax.f32 %v2416_v5, %v2417_v46  ;;  %v12661_v46 = vpack.i.bf16 %v10871_v40, %v10868_v4  ;;  %8580 = vmatprep.subr.bf16.mxu1 %v12654_v58  ;;  %v12662_v4 = vpack.i.bf16 %v10762_v57, %v10689_v44  ;;  %v12663_v40 = vpack.i.bf16 %v10615_v30, %v10612_v34  ;;  %v12666_v30 = vld [vmem:[#allocation15_spill] sm:$0xff] }
 0x55b   :  { %v12665_v34 = vpack.i.bf16 %v10877_v19, %v10874_v22  ;;  %v1957_v19 = vpop.permute.xlu0 %1956 }
 0x55c   :  { %8724 = vperm.xlu0 %8711, %v12656_v61   ;;  %v2419_v16 = vrot.slane %v2418_v47, 4 }
 0x55d   :  { %8581 = vmatpush3.bf16.msra.mxu1 %v10315_v56  ;;  %v8738_v56 = vpack.i.bf16 %v10880_v17, %v10686_v41 }
 0x55e   :  { %v2420_v0 = vmax.f32 %v2418_v47, %v2419_v16  ;;  %8582 = vmatprep.subr.bf16.mxu1 %v12654_v58  ;;  %v12669_v47 = vld [vmem:[#allocation14_spill] sm:$0xff] }
 0x55f   :  { %v2176_v17 = vpop.permute.xlu0 %2175  ;;  %vm2516_vm13 = vcmp.eq.s32.totalorder %v12669_v47, 1 }
 0x560   :  { %8734 = vperm.xlu0 %8711, %v8733_v49   ;;  %v2421_v13 = vrot.slane %v2420_v0, 2  ;;  %v7865_v16 = vsel %vm2516_vm13, 1.0, %v12654_v58  ;;  %vm2731_vm13 = vcmp.eq.s32.totalorder %v12669_v47, 6 }
 0x561   :  { %8583 = vmatpush3.bf16.msra.mxu1 %v10309_v3  ;;  %v8758_v3 = vpack.i.bf16 %v10677_v21, %v10945_v18  ;;  %v2030_v18 = vpop.permute.xlu1 %2029 }
 0x562   :  { %v2422_v35 = vmax.f32 %v2420_v0, %v2421_v13 }
 0x564   :  { %8744 = vperm.xlu0 %8711, %v12657_v6   ;;  %v2423_v14 = vrot.slane %v2422_v35, 1 }
 0x565   :  { %v2103_v61 = vpop.permute.xlu1 %2102 }
 0x566   :  { %v2424_v9 = vmax.f32 %v2422_v35, %v2423_v14 }
 0x568   :  { %8754 = vperm.xlu0 %8711, %v12658_v48   ;;  %vm2425_vm15 = vcmp.eq.f32.partialorder %v2405_v2, %v2424_v9  ;;  %vm2426_vm0 = vcmp.eq.f32.partialorder %v2406_v55, %v2424_v9  ;;  %vm2427_vm1 = vcmp.eq.f32.partialorder %v2407_v25, %v2424_v9  ;;  %vm2428_vm6 = vcmp.eq.f32.partialorder %v2408_v20, %v2424_v9 }
 0x569   :  { %vm2429_vm7 = vcmp.eq.f32.partialorder %v2409_v39, %v2424_v9  ;;  %v2430_v1 = vsel %vm2425_vm15, %v10506_v33, 40.0  ;;  %v2432_v52 = vsel %vm2427_vm1, %v10508_v32, 40.0  ;;  %v2431_v7 = vsel %vm2426_vm0, %v10510_v54, 40.0 }
 0x56a   :  { %v2433_v28 = vsel %vm2428_vm6, %v10512_v15, 40.0  ;;  %v2434_v10 = vsel %vm2429_vm7, %v10514_v63, 40.0  ;;  %v2435_v26 = vsel %vm1898_vm5, %v2430_v1, inf  ;;  %v2437_v23 = vsel %vm1898_vm5, %v2432_v52, inf }
 0x56b   :  { %v2438_v11 = vsel %vm1898_vm5, %v2433_v28, inf  ;;  %v2439_v25 = vsel %vm1898_vm5, %v2434_v10, inf  ;;  %v2436_v39 = vsel %vm1898_vm5, %v2431_v7, inf  ;;  %v12659_v55 = vpack.i.bf16 %v10753_v38, %v10750_v43 }
 0x56c   :  { %8764 = vperm.xlu0 %8711, %v8763_v60   ;;  %v2440_v20 = vmin.f32 %v2435_v26, %v2439_v25  ;;  %v2442_v13 = vmin.f32 %v2437_v23, %v2438_v11  ;;  %v8798_v38 = vpack.i.bf16 %v10933_v62, %v10939_v36  ;;  %v12664_v62 = vpack.i.bf16 %v10609_v31, %v10606_v29 }
 0x56d   :  { %vm2473_vm15 = vcmp.eq.s32.totalorder %v12669_v47, 0  ;;  %vm2559_vm1 = vcmp.eq.s32.totalorder %v12669_v47, 2  ;;  %vm2602_vm7 = vcmp.eq.s32.totalorder %v12669_v47, 3 }
 0x56e   :  { %v2441_v2 = vmin.f32 %v2440_v20, %v2436_v39  ;;  %v7863_v6 = vsel %vm2473_vm15, 1.0, %v12654_v58  ;;  %v7867_v14 = vsel %vm2559_vm1, 1.0, %v12654_v58  ;;  %v7869_v52 = vsel %vm2602_vm7, 1.0, %v12654_v58 }
 0x56f   :  { %vm2774_vm15 = vcmp.eq.s32.totalorder %v12669_v47, 7 }
 0x570   :  { %8769 = vperm.xlu0 %8711, %v12659_v55   ;;  %v2443_v12 = vmin.f32 %v2441_v2, %v2442_v13 }
 0x572   :  { %v2444_v24 = vrot.slane %v2443_v12, 4 }
 0x574   :  { %8779 = vperm.xlu0 %8711, %v12660_v27   ;;  %v2445_v42 = vmin.f32 %v2443_v12, %v2444_v24  ;;  %v7875_v12 = vsel %vm2731_vm13, 1.0, %v12654_v58  ;;  %vm3007_vm13 = vcmask 64512  }
 0x576   :  { %v2446_v43 = vrot.slane %v2445_v42, 2 }
 0x578   :  { %8794 = vperm.xlu0 %8711, %v12661_v46   ;;  %v2447_v51 = vmin.f32 %v2445_v42, %v2446_v43  ;;  %v7877_v43 = vsel %vm2774_vm15, 1.0, %v12654_v58 }
 0x57a   :  { %v2448_v53 = vrot.slane %v2447_v51, 1 }
 0x57c   :  { %8799 = vperm.xlu0 %8711, %v8798_v38   ;;  %v2449_v8 = vmin.f32 %v2447_v51, %v2448_v53 }
 0x57e   :  { %2467 = vperm.xlu1 %8712, %v2449_v8   ;;  %vm2454_vm8 = vcmp.eq.f32.partialorder %v10514_v63, %v2449_v8  ;;  %vm2452_vm9 = vcmp.eq.f32.partialorder %v10508_v32, %v2449_v8  ;;  %vm2453_vm10 = vcmp.eq.f32.partialorder %v10512_v15, %v2449_v8  ;;  %v12667_v63 = vpack.i.bf16 %v10942_v37, %v10936_v45  ;;  %v9039_v15 = vld [vmem:[%s12629_s2 + $0x4f4] ss:$8 sps:$4 sm:$0xff]   ;;  %v2249_v45 = vpop.permute.xlu0 %2248 }
 0x57f   :  { %v7861_v44 = vsel %vm2454_vm8, 1.0, %v12654_v58  ;;  %v7859_v29 = vsel %vm2452_vm9, 1.0, %v12654_v58  ;;  %v7860_v31 = vsel %vm2453_vm10, 1.0, %v12654_v58  ;;  %vm2450_vm11 = vcmp.eq.f32.partialorder %v10506_v33, %v2449_v8  ;;  %3109 = vmatprep.subr.bf16.mxu1 %v9039_v15  ;;  %v9045_v15 = vld [vmem:[%s12629_s2 + $0x4d4] ss:$8 sps:$4 sm:$0xff]  }
 0x580   :  { %v8783_v57 = vpack.i.bf16 %v7861_v44, %v12666_v30  ;;  %vm2451_vm12 = vcmp.eq.f32.partialorder %v10510_v54, %v2449_v8  ;;  %v8803_v21 = vpack.i.bf16 %v7860_v31, %v7859_v29  ;;  %v7857_v41 = vsel %vm2450_vm11, 1.0, %v12654_v58  ;;  %v12668_v54 = vld [vmem:[#allocation11_spill] sm:$0xff] }
 0x581   :  { %v7858_v22 = vsel %vm2451_vm12, 1.0, %v12654_v58  ;;  %v11042_v5 = vcvt.s32.f32 %v12668_v54  ;;  %vm2645_vm9 = vcmp.eq.s32.totalorder %v12669_v47, 4  ;;  %vm2688_vm11 = vcmp.eq.s32.totalorder %v12669_v47, 5  ;;  %v9037_v29 = vld [vmem:[%s12629_s2 + $0x4f0] ss:$8 sps:$4 sm:$0xff]  }
 0x582   :  { %2829 = vperm.xlu1 %8712, %v9552_v59   ;;  %v8808_v32 = vpack.i.bf16 %v7858_v22, %v7857_v41  ;;  %v7871_v26 = vsel %vm2645_vm9, 1.0, %v12654_v58  ;;  %v7873_v20 = vsel %vm2688_vm11, 1.0, %v12654_v58  ;;  %v9042_v41 = vld [vmem:[%s12629_s2 + $0x4e4] ss:$8 sps:$4 sm:$0xff]   ;;  %vm2478_vm1 = vcmp.eq.s32.totalorder %v12668_v54, 0 }
 0x583   :  { %vm2032_vm14 = vcmp.eq.f32.partialorder %v11042_v5, %v2030_v18  ;;  %vm1959_vm0 = vcmp.eq.f32.partialorder %v11042_v5, %v1957_v19  ;;  %vm2105_vm6 = vcmp.eq.f32.partialorder %v11042_v5, %v2103_v61  ;;  %vm2178_vm8 = vcmp.eq.f32.partialorder %v11042_v5, %v2176_v17 }
 0x584   :  { %v7826_v0 = vsel %vm2032_vm14, 1.0, %v12654_v58  ;;  %v7820_v35 = vsel %vm1959_vm0, 1.0, %v12654_v58  ;;  %v7832_v48 = vsel %vm2105_vm6, 1.0, %v12654_v58  ;;  %vm2251_vm10 = vcmp.eq.f32.partialorder %v11042_v5, %v2249_v45 }
 0x585   :  { %v2519_v60 = vmul.f32 %v7865_v16, %v7826_v0  ;;  %v7838_v7 = vsel %vm2178_vm8, 1.0, %v12654_v58  ;;  %v2476_v28 = vmul.f32 %v7863_v6, %v7820_v35  ;;  %v2562_v10 = vmul.f32 %v7867_v14, %v7832_v48  ;;  %v9048_v0 = vld [vmem:[%s12629_s2 + $0x4c4] ss:$8 sps:$4 sm:$0xff]  }
 0x586   :  { %8719 = vperm.xlu1 %8712, %v12662_v4   ;;  %v7844_v23 = vsel %vm2251_vm10, 1.0, %v12654_v58  ;;  %v2605_v25 = vmul.f32 %v7869_v52, %v7838_v7  ;;  %vm2521_vm6 = vcmp.eq.s32.totalorder %v12668_v54, 1  ;;  %v12674_v19 = vmov 0  }
 0x587   :  { %v2520_v11 = vadd.f32 %v2519_v60, %v2476_v28  ;;  %v2648_v2 = vmul.f32 %v7871_v26, %v7844_v23  ;;  %v11116_v18 = vsel %vm2521_vm6, 1.0, %v12654_v58  ;;  %vm2564_vm7 = vcmp.eq.s32.totalorder %v12668_v54, 2  ;;  %v9046_v23 = vld [vmem:[%s12629_s2 + $0x4c0] ss:$8 sps:$4 sm:$0xff]  }
 0x588   :  { %vm2650_vm8 = vcmp.eq.s32.totalorder %v12668_v54, 4  ;;  %vm2607_vm9 = vcmp.eq.s32.totalorder %v12668_v54, 3  ;;  %vm2693_vm10 = vcmp.eq.s32.totalorder %v12668_v54, 5  ;;  %vm2736_vm11 = vcmp.eq.s32.totalorder %v12668_v54, 6 }
 0x589   :  { %v2563_v55 = vadd.f32 %v2562_v10, %v2520_v11  ;;  %v7868_v60 = vsel %vm2564_vm7, 1.0, %v12654_v58  ;;  %v11146_v52 = vsel %vm2650_vm8, 1.0, %v12654_v58  ;;  %v11151_v7 = vsel %vm2607_vm9, 1.0, %v12654_v58 }
 0x58a   :  { %8729 = vperm.xlu1 %8712, %v12663_v40   ;;  %v11158_v10 = vsel %vm2693_vm10, 1.0, %v12654_v58 }
 0x58b   :  { %v2606_v24 = vadd.f32 %v2605_v25, %v2563_v55 }
 0x58d   :  { %v2649_v50 = vadd.f32 %v2648_v2, %v2606_v24  ;;  %v9051_v2 = vld [vmem:[%s12629_s2 + $0x4b4] ss:$8 sps:$4 sm:$0xff]  }
 0x58e   :  { %8739 = vperm.xlu1 %8712, %v8738_v56   ;;  %v12670_v56 = vld [vmem:[#allocation12_spill] sm:$0xff] }
 0x592   :  { %8749 = vperm.xlu1 %8712, %v12664_v62   ;;  %v12671_v62 = vmax.f32 %v12670_v56, 0.0 }
 0x596   :  { %8759 = vperm.xlu1 %8712, %v8758_v3  }
 0x59a   :  { %8774 = vperm.xlu1 %8712, %v12665_v34   ;;  %v12672_v34 = vld [vmem:[#allocation13_spill] sm:$0xff] }
 0x59b   :  { %v12673_v30 = vmax.f32 %v12672_v34, 0.0 }
 0x59d   :  { %v2322_v9 = vpop.permute.xlu1 %2321 }
 0x59e   :  { %8784 = vperm.xlu1 %8712, %v8783_v57   ;;  %vm2324_vm12 = vcmp.eq.f32.partialorder %v11042_v5, %v2322_v9 }
 0x59f   :  { %v7850_v39 = vsel %vm2324_vm12, 1.0, %v12654_v58  ;;  %vm2779_vm12 = vcmp.eq.s32.totalorder %v12668_v54, 7 }
 0x5a0   :  { %v2691_v42 = vmul.f32 %v7873_v20, %v7850_v39  ;;  %v11170_v20 = vsel %vm2736_vm11, 1.0, %v12654_v58  ;;  %v11175_v55 = vsel %vm2779_vm12, 1.0, %v12654_v58  ;;  %vm4379_vm12 = vcmask 261120  }
 0x5a2   :  { %8789 = vperm.xlu1 %8712, %v12667_v63   ;;  %v2692_v51 = vadd.f32 %v2691_v42, %v2649_v50 }
 0x5a6   :  { %8804 = vperm.xlu1 %8712, %v8803_v21  }
 0x5aa   :  { %8809 = vperm.xlu1 %8712, %v8808_v32   ;;  %v9040_v32 = vld [vmem:[%s12629_s2 + $0x4e0] ss:$8 sps:$4 sm:$0xff]  }
 0x5cb   :  { %v2395_v36 = vpop.permute.xlu0 %2394 }
 0x5cc   :  { %vm2397_vm14 = vcmp.eq.f32.partialorder %v11042_v5, %v2395_v36 }
 0x5cd   :  { %v7856_v27 = vsel %vm2397_vm14, 1.0, %v12654_v58 }
 0x5ce   :  { %v2734_v46 = vmul.f32 %v7875_v12, %v7856_v27 }
 0x5cf   :  { %v2825_v37 = vpop.permute.xlu0 %2824 }
 0x5d0   :  { %v2735_v59 = vadd.f32 %v2734_v46, %v2692_v51  ;;  %v2847_v3 = vmul.f32 %v2825_v37, %v12671_v62  ;;  %v7864_v37 = vsel %vm2478_vm1, 1.0, %v12654_v58 }
 0x5d3   :  { %v11046_v49 = vpop.permute.xlu0 %8714 }
 0x5d4   :  { %v8717_v17 = vunpack.i.h.bf16 %v11046_v49  ;;  %v8716_v45 = vunpack.i.l.bf16 %v11046_v49  ;;  %v9043_v49 = vld [vmem:[%s12629_s2 + $0x4d0] ss:$8 sps:$4 sm:$0xff]  }
 0x5d6   :  { %v2553_v6 = vmul.f32 %v8717_v17, %v11116_v18  ;;  %v2510_v35 = vmul.f32 %v8716_v45, %v7864_v37 }
 0x5d7   :  { %v11062_v1 = vpop.permute.xlu0 %8724 }
 0x5d8   :  { %v8727_v14 = vunpack.i.h.bf16 %v11062_v1  ;;  %v8726_v48 = vunpack.i.l.bf16 %v11062_v1 }
 0x5da   :  { %v2509_v12 = vmul.f32 %v8727_v14, %v7864_v37  ;;  %v2508_v27 = vmul.f32 %v8726_v48, %v7864_v37 }
 0x5db   :  { %v11074_v13 = vpop.permute.xlu0 %8734 }
 0x5dc   :  { %v8737_v28 = vunpack.i.h.bf16 %v11074_v13  ;;  %v8736_v1 = vunpack.i.l.bf16 %v11074_v13  ;;  %v2558_v13 = vadd.f32 %v2553_v6, %v2510_v35 }
 0x5de   :  { %v2594_v54 = vmul.f32 %v8737_v28, %v7868_v60  ;;  %v2682_v51 = vmul.f32 %v8736_v1, %v11146_v52 }
 0x5df   :  { %v11080_v53 = vpop.permute.xlu0 %8744 }
 0x5e0   :  { %v8747_v11 = vunpack.i.h.bf16 %v11080_v53  ;;  %v8746_v24 = vunpack.i.l.bf16 %v11080_v53 }
 0x5e2   :  { %v2507_v53 = vmul.f32 %v8747_v11, %v7864_v37 }
 0x5e3   :  { %v11091_v31 = vpop.permute.xlu0 %8754 }
 0x5e4   :  { %v8756_v34 = vunpack.i.l.bf16 %v11091_v31 }
 0x5e7   :  { %v11118_v61 = vpop.permute.xlu0 %8764 }
 0x5e8   :  { %v8767_v17 = vunpack.i.h.bf16 %v11118_v61 }
 0x5eb   :  { %v11165_v25 = vpop.permute.xlu0 %8769 }
 0x5ec   :  { %v8772_v35 = vunpack.i.h.bf16 %v11165_v25 }
 0x5f9   :  { %v2468_v38 = vpop.permute.xlu1 %2467 }
 0x5fa   :  { %vm2470_vm0 = vcmp.eq.f32.partialorder %v11042_v5, %v2468_v38 }
 0x5fb   :  { %v7862_v8 = vsel %vm2470_vm0, 1.0, %v12654_v58 }
 0x5fc   :  { %v2777_v4 = vmul.f32 %v7877_v43, %v7862_v8  ;;  %v8757_v8 = vunpack.i.h.bf16 %v11091_v31  ;;  %v9052_v31 = vld [vmem:[%s12629_s2 + $0x4a0] ss:$8 sps:$4 sm:$0xff]  }
 0x5fd   :  { %v2830_v40 = vpop.permute.xlu1 %2829 }
 0x5fe   :  { %v2778_v44 = vadd.f32 %v2777_v4, %v2735_v59  ;;  %v2848_v57 = vmul.f32 %v2830_v40, %v12673_v30  ;;  %v9049_v4 = vld [vmem:[%s12629_s2 + $0x4b0] ss:$8 sps:$4 sm:$0xff]   ;;  %v8766_v30 = vunpack.i.l.bf16 %v11118_v61  ;;  %v8771_v61 = vunpack.i.l.bf16 %v11165_v25 }
 0x600   :  { %v2852_v63 = vpack.c.bf16 %v2778_v44, %v2778_v44  ;;  %v2853_v21 = vpack.c.bf16 %v2848_v57, %v2847_v3  ;;  %v9054_v3 = vld [vmem:[%s12629_s2 + $0x4a4] ss:$8 sps:$4 sm:$0xff]   ;;  %v2506_v44 = vmul.f32 %v8746_v24, %v7864_v37  ;;  %v2593_v6 = vmul.f32 %v8766_v30, %v7868_v60 }
 0x601   :  { %v11096_v22 = vpop.permute.xlu1 %8719 }
 0x602   :  { %8573 = vmatpush3.bf16.msra.mxu0 %v2853_v21  ;;  %8585 = vmatmul.mubr.msk.bf16.vlgmr.msra.gmra.mxu1 %vm339_vm3, %v2852_v63  ;;  %v8721_v16 = vunpack.i.l.bf16 %v11096_v22  ;;  %v8722_v50 = vunpack.i.h.bf16 %v11096_v22 }
 0x603   :  { %8588 = vmatprep.subr.bf16.mxu0 %v12654_v58  ;;  %3110 = vmatpush1.bf16.msra.mxu1 %v9037_v29 }
 0x604   :  { %3111 = vmatprep.subr.bf16.mxu1 %v9042_v41  ;;  %3141 = vmatprep.mubr.bf16.mxu1 %v12674_v19  ;;  %v2596_v39 = vmul.f32 %v8721_v16, %v7868_v60  ;;  %v2639_v21 = vmul.f32 %v8722_v50, %v11151_v7  ;;  %v2635_v50 = vmul.f32 %v8771_v61, %v11151_v7 }
 0x605   :  { %8575 = vmatmul.mubr.msk.bf16.vlgmr.msra.gmra.mxu0 %vm339_vm3, %v2852_v63  ;;  %v11112_v36 = vpop.permute.xlu1 %8729  ;;  %v8780_v63 = vpop.permute.xlu0 %8779 }
 0x606   :  { %8594 = vmatprep.mubr.msk.bf16.mxu0 %vm9640_vm2, %v12654_v58  ;;  %v8731_v26 = vunpack.i.l.bf16 %v11112_v36  ;;  %v8732_v46 = vunpack.i.h.bf16 %v11112_v36  ;;  %v2601_v40 = vadd.f32 %v2596_v39, %v2558_v13  ;;  %v8782_v28 = vunpack.i.h.bf16 %v8780_v63 }
 0x607   :  { %3112 = vmatpush1.bf16.msra.mxu1 %v9040_v32  ;;  %v2680_v13 = vmul.f32 %v8767_v17, %v11146_v52 }
 0x608   :  { %3113 = vmatprep.subr.bf16.mxu1 %v9045_v15  ;;  %v2551_v59 = vmul.f32 %v8731_v26, %v11116_v18  ;;  %v2552_v41 = vmul.f32 %v8732_v46, %v11116_v18  ;;  %v2638_v15 = vmul.f32 %v8757_v8, %v11151_v7  ;;  %v2644_v37 = vadd.f32 %v2639_v21, %v2601_v40 }
 0x609   :  { %v11138_v9 = vpop.permute.xlu1 %8739  ;;  %v8795_v25 = vpop.permute.xlu0 %8794 }
 0x60a   :  { %v8741_v56 = vunpack.i.l.bf16 %v11138_v9  ;;  %v8742_v22 = vunpack.i.h.bf16 %v11138_v9  ;;  %v2556_v45 = vadd.f32 %v2551_v59, %v2508_v27  ;;  %v2637_v9 = vmul.f32 %v8756_v34, %v11151_v7 }
 0x60b   :  { %3114 = vmatpush1.bf16.msra.mxu1 %v9043_v49  ;;  %v2557_v1 = vadd.f32 %v2552_v41, %v2509_v12  ;;  %v2687_v24 = vadd.f32 %v2682_v51, %v2644_v37  ;;  %v2636_v12 = vmul.f32 %v8772_v35, %v11151_v7  ;;  %v8797_v34 = vunpack.i.h.bf16 %v8795_v25 }
 0x60c   :  { %3115 = vmatprep.subr.bf16.mxu1 %v9048_v0  ;;  %v2595_v49 = vmul.f32 %v8741_v56, %v7868_v60  ;;  %v2725_v26 = vmul.f32 %v8742_v22, %v11158_v10  ;;  %v2599_v11 = vadd.f32 %v2594_v54, %v2556_v45  ;;  %v2679_v54 = vmul.f32 %v8782_v28, %v11146_v52 }
 0x60d   :  { %v8750_v42 = vpop.permute.xlu1 %8749  ;;  %v8796_v30 = vunpack.i.l.bf16 %v8795_v25  ;;  %v8800_v21 = vpop.permute.xlu0 %8799 }
 0x60e   :  { %v8752_v43 = vunpack.i.h.bf16 %v8750_v42  ;;  %v8751_v38 = vunpack.i.l.bf16 %v8750_v42  ;;  %v2600_v27 = vadd.f32 %v2595_v49, %v2557_v1  ;;  %v2730_v8 = vadd.f32 %v2725_v26, %v2687_v24 }
 0x60f   :  { %3116 = vmatpush1.bf16.msra.mxu1 %v9046_v23  ;;  %v8781_v23 = vunpack.i.l.bf16 %v8780_v63  ;;  %v2642_v51 = vadd.f32 %v2637_v9, %v2599_v11 }
 0x610   :  { %v2550_v62 = vmul.f32 %v8752_v43, %v11116_v18  ;;  %3117 = vmatprep.subr.bf16.mxu1 %v9051_v2  ;;  %v2549_v57 = vmul.f32 %v8751_v38, %v11116_v18  ;;  %v9057_v18 = vld [vmem:[%s12629_s2 + $0x494] ss:$8 sps:$4 sm:$0xff]  }
 0x611   :  { %v8760_v29 = vpop.permute.xlu1 %8759 }
 0x612   :  { %v8762_v32 = vunpack.i.h.bf16 %v8760_v29  ;;  %v2555_v36 = vadd.f32 %v2550_v62, %v2507_v53  ;;  %v8761_v0 = vunpack.i.l.bf16 %v8760_v29  ;;  %v2554_v14 = vadd.f32 %v2549_v57, %v2506_v44 }
 0x613   :  { %3118 = vmatpush1.bf16.msra.mxu1 %v9049_v4  ;;  %v2678_v53 = vmul.f32 %v8781_v23, %v11146_v52 }
 0x614   :  { %v2592_v16 = vmul.f32 %v8762_v32, %v7868_v60  ;;  %3119 = vmatprep.subr.bf16.mxu1 %v9054_v3  ;;  %v2598_v39 = vadd.f32 %v2593_v6, %v2555_v36  ;;  %v9055_v60 = vld [vmem:[%s12629_s2 + $0x490] ss:$8 sps:$4 sm:$0xff]   ;;  %v2768_v42 = vmul.f32 %v8761_v0, %v11170_v20  ;;  %v2643_v3 = vadd.f32 %v2638_v15, %v2600_v27 }
 0x615   :  { %v8775_v48 = vpop.permute.xlu1 %8774  ;;  %v2685_v36 = vadd.f32 %v2680_v13, %v2642_v51  ;;  %v2721_v0 = vmul.f32 %v8796_v30, %v11158_v10  ;;  %v8801_v6 = vunpack.i.l.bf16 %v8800_v21 }
 0x616   :  { %v2597_v2 = vadd.f32 %v2592_v16, %v2554_v14  ;;  %v8777_v46 = vunpack.i.h.bf16 %v8775_v48  ;;  %v8776_v43 = vunpack.i.l.bf16 %v8775_v48  ;;  %v2641_v40 = vadd.f32 %v2636_v12, %v2598_v39 }
 0x617   :  { %3120 = vmatpush1.bf16.msra.mxu1 %v9052_v31  ;;  %v2773_v62 = vadd.f32 %v2768_v42, %v2730_v8  ;;  %v2722_v16 = vmul.f32 %v8797_v34, %v11158_v10  ;;  %v9060_v8 = vld [vmem:[%s12629_s2 + $0x484] ss:$8 sps:$4 sm:$0xff]  }
 0x618   :  { %3121 = vmatprep.subr.bf16.mxu1 %v9057_v18  ;;  %v2640_v56 = vadd.f32 %v2635_v50, %v2597_v2  ;;  %v2724_v57 = vmul.f32 %v8777_v46, %v11158_v10  ;;  %v2723_v29 = vmul.f32 %v8776_v43, %v11158_v10  ;;  %v2684_v31 = vadd.f32 %v2679_v54, %v2641_v40 }
 0x619   :  { %v8785_v38 = vpop.permute.xlu1 %8784  ;;  %v8802_v18 = vunpack.i.h.bf16 %v8800_v21  ;;  %v2764_v10 = vmul.f32 %v8801_v6, %v11170_v20 }
 0x61a   :  { %v8787_v59 = vunpack.i.h.bf16 %v8785_v38  ;;  %v8786_v4 = vunpack.i.l.bf16 %v8785_v38  ;;  %v2683_v45 = vadd.f32 %v2678_v53, %v2640_v56  ;;  %v2728_v61 = vadd.f32 %v2723_v29, %v2685_v36 }
 0x61b   :  { %3122 = vmatpush1.bf16.msra.mxu1 %v9055_v60  ;;  %v2727_v1 = vadd.f32 %v2722_v16, %v2684_v31  ;;  %v2765_v2 = vmul.f32 %v8802_v18, %v11170_v20  ;;  %v9061_v31 = vld [vmem:[%s12631_s4 + $0x148] sm:$0xff]   ;;  %v9066_v16 = vld [vmem:[%s12631_s4 + $0x120] sm:$0xff]   ;;  %v9068_v18 = vld [vmem:[%s12631_s4 + $0x110] sm:$0xff]  }
 0x61c   :  { %v2811_v44 = vmul.f32 %v8787_v59, %v11175_v55  ;;  %v2681_v7 = vmul.f32 %v8786_v4, %v11146_v52  ;;  %v2726_v28 = vadd.f32 %v2721_v0, %v2683_v45  ;;  %v9058_v59 = vld [vmem:[%s12629_s2 + $0x480] ss:$8 sps:$4 sm:$0xff]   ;;  %3123 = vmatprep.subr.bf16.mxu1 %v9060_v8  ;;  %v9067_v0 = vld [vmem:[%s12631_s4 + $0x118] sm:$0xff]  }
 0x61d   :  { %v8790_v63 = vpop.permute.xlu1 %8789  ;;  %v2770_v42 = vadd.f32 %v2765_v2, %v2727_v1 }
 0x61e   :  { %v2816_v41 = vadd.f32 %v2811_v44, %v2773_v62  ;;  %v2686_v22 = vadd.f32 %v2681_v7, %v2643_v3  ;;  %v8792_v32 = vunpack.i.h.bf16 %v8790_v63  ;;  %v8791_v17 = vunpack.i.l.bf16 %v8790_v63 }
 0x61f   :  { %v2769_v12 = vadd.f32 %v2764_v10, %v2726_v28  ;;  %3124 = vmatpush1.bf16.msra.mxu1 %v9058_v59 }
 0x620   :  { %v2767_v15 = vmul.f32 %v8792_v32, %v11170_v20  ;;  %v2729_v37 = vadd.f32 %v2724_v57, %v2686_v22  ;;  %v2766_v52 = vmul.f32 %v8791_v17, %v11170_v20  ;;  %v2947_v49 = vpack.c.bf16 %v2816_v41, %v2816_v41  ;;  %8624 = vmatprep.subr.bf16.mxu1 %v12654_v58 }
 0x621   :  { %v8805_v35 = vpop.permute.xlu1 %8804 }
 0x622   :  { %v8807_v14 = vunpack.i.h.bf16 %v8805_v35  ;;  %v8806_v48 = vunpack.i.l.bf16 %v8805_v35  ;;  %v2952_v9 = vsel %vm1576_vm4, %v2947_v49, 0  ;;  %v2771_v26 = vadd.f32 %v2766_v52, %v2728_v61  ;;  %v9064_v52 = vld [vmem:[%s12631_s4 + $0x130] sm:$0xff]   ;;  %v9065_v49 = vld [vmem:[%s12631_s4 + $0x128] sm:$0xff]  }
 0x623   :  { %v2772_v23 = vadd.f32 %v2767_v15, %v2729_v37  ;;  %8589 = vmatpush3.bf16.msra.mxu0 %v2952_v9  ;;  %v9062_v15 = vld [vmem:[%s12631_s4 + $0x140] sm:$0xff]   ;;  %v9063_v37 = vld [vmem:[%s12631_s4 + $0x138] sm:$0xff]  }
 0x624   :  { %v2810_v11 = vmul.f32 %v8807_v14, %v11175_v55  ;;  %v2809_v39 = vmul.f32 %v8806_v48, %v11175_v55  ;;  %8590 = vmatprep.subr.bf16.mxu0 %v12654_v58  ;;  %v7899_v9 = vld [vmem:[%s12633_s6 + $0x1] ss:$0 sm:$0xff] }
 0x625   :  { %v8810_v60 = vpop.permute.xlu1 %8809 }
 0x626   :  { %v2815_v13 = vadd.f32 %v2810_v11, %v2772_v23  ;;  %v2814_v25 = vadd.f32 %v2809_v39, %v2771_v26  ;;  %v8812_v27 = vunpack.i.h.bf16 %v8810_v60  ;;  %v8811_v24 = vunpack.i.l.bf16 %v8810_v60 }
 0x628   :  { %v2808_v50 = vmul.f32 %v8812_v27, %v11175_v55  ;;  %v2807_v46 = vmul.f32 %v8811_v24, %v11175_v55  ;;  %v2946_v43 = vpack.c.bf16 %v2815_v13, %v2814_v25 }
 0x62a   :  { %v2813_v38 = vadd.f32 %v2808_v50, %v2770_v42  ;;  %v2812_v54 = vadd.f32 %v2807_v46, %v2769_v12  ;;  %8591 = vmatpush3.bf16.msra.mxu0 %v2946_v43  ;;  %v7909_v50 = vld [vmem:[%s12633_s6 + $0x4] ss:$0 sm:$0xff] }
 0x62b   :  { %8592 = vmatprep.subr.bf16.mxu0 %v12654_v58 }
 0x62c   :  { %v2945_v20 = vpack.c.bf16 %v2813_v38, %v2812_v54 }
 0x62e   :  { %8593 = vmatpush3.bf16.msra.mxu0 %v2945_v20 }
 0x62f   :  { %8598 = vmatprep.subr.bf16.mxu0 %v12654_v58 }
 0x6c2   :  { %v2938_v55 = vpop.f32.mrf.mxu1 }
 0x6c3   :  { %v2944_v4 = vpack.c.bf16 %v2938_v55, %v2938_v55 }
 0x6c4   :  { %v8586_v53 = vpop.f32.mrf.mxu1 }
 0x6c5   :  { %v11246_v40 = vpop.f32.mrf.mxu0  ;;  %8595 = vmatmul.mubr.msk.bf16.vlgmr.msra.gmra.mxu0 %vm339_vm3, %v2944_v4 }
 0x6c6   :  { %v3028_v56 = vpack.c.bf16 %v11246_v40, %v11246_v40  ;;  %v2941_v51 = vpop.f32.mrf.mxu1  ;;  %8600 = vmatprep.mubr.msk.bf16.mxu0 %vm9640_vm2, %v12654_v58 }
 0x6c7   :  { %v8576_v62 = vpop.f32.mrf.mxu0  ;;  %v9069_v51 = vld [vmem:[%s12629_s2 + $0x570] ss:$8 sps:$4 sm:$0xff]  }
 0x6c8   :  { %v8587_v3 = vpop.f32.mrf.mxu1  ;;  %3142 = vmatmul.mubr.bf16.vlgmr.msra.gmra.mxu1 %v3028_v56  ;;  %v9071_v62 = vld [vmem:[%s12629_s2 + $0x574] ss:$8 sps:$4 sm:$0xff]  }
 0x6c9   :  { %v2899_v44 = vpop.f32.mrf.mxu0  ;;  %8626 = vmatprep.mubr.msk.bf16.mxu1 %vm9640_vm2, %v12654_v58 }
 0x6ca   :  { %v9074_v44 = vld [vmem:[%s12629_s2 + $0x564] ss:$8 sps:$4 sm:$0xff]  }
 0x6cb   :  { %v8577_v7 = vpop.f32.mrf.mxu0 }
 0x785   :  { %v11255_v34 = vpop.f32.mrf.mxu0 }
 0x786   :  { %v3008_v30 = vsel %vm3007_vm13, %v11255_v34, 0.0  ;;  %v3151_v45 = vpack.c.bf16 %v11255_v34, %v11255_v34 }
 0x787   :  { %3009 = vadd.xlane.f32.xlu0 %v3008_v30  ;;  %v8596_v57 = vpop.f32.mrf.mxu0  ;;  %v9072_v30 = vld [vmem:[%s12629_s2 + $0x560] ss:$8 sps:$4 sm:$0xff]  }
 0x788   :  { %v3143_v29 = vpop.f32.mrf.mxu1 }
 0x789   :  { %v3152_v63 = vpack.c.bf16 %v3143_v29, %v3143_v29  ;;  %v2991_v21 = vpop.f32.mrf.mxu0  ;;  %v9077_v29 = vld [vmem:[%s12629_s2 + $0x554] ss:$8 sps:$4 sm:$0xff]  }
 0x78a   :  { %v3145_v41 = vpop.f32.mrf.mxu1 }
 0x78b   :  { %v3157_v22 = vsel %vm1576_vm4, %v3152_v63, 0  ;;  %v8597_v32 = vpop.f32.mrf.mxu0 }
 0x78c   :  { %v3147_v17 = vpop.f32.mrf.mxu1  ;;  %8599 = vmatpush3.bf16.msra.mxu0 %v3157_v22  ;;  %v9080_v32 = vld [vmem:[%s12629_s2 + $0x544] ss:$8 sps:$4 sm:$0xff]  }
 0x78d   :  { %8604 = vmatprep.subr.bf16.mxu0 %v12654_v58 }
 0x78e   :  { %v3148_v36 = vpop.f32.mrf.mxu1 }
 0x78f   :  { %8601 = vmatmul.mubr.msk.bf16.vlgmr.msra.gmra.mxu0 %vm3007_vm13, %v3151_v45 }
 0x790   :  { %8620 = vmatprep.mubr.msk.bf16.mxu0 %vm9640_vm2, %v12654_v58  ;;  %8605 = vmatpush3.bf16.msra.mxu0 %v9061_v31  ;;  %v9083_v31 = vld [vmem:[%s12629_s2 + $0x534] ss:$8 sps:$4 sm:$0xff]  }
 0x791   :  { %8606 = vmatprep.subr.bf16.mxu0 %v12654_v58 }
 0x794   :  { %8607 = vmatpush3.bf16.msra.mxu0 %v9062_v15 }
 0x795   :  { %8608 = vmatprep.subr.bf16.mxu0 %v12654_v58 }
 0x798   :  { %8609 = vmatpush3.bf16.msra.mxu0 %v9063_v37  ;;  %v9081_v37 = vld [vmem:[%s12629_s2 + $0x530] ss:$8 sps:$4 sm:$0xff]  }
 0x799   :  { %8610 = vmatprep.subr.bf16.mxu0 %v12654_v58 }
 0x79c   :  { %8611 = vmatpush3.bf16.msra.mxu0 %v9064_v52 }
 0x79d   :  { %8612 = vmatprep.subr.bf16.mxu0 %v12654_v58 }
 0x7a0   :  { %8613 = vmatpush3.bf16.msra.mxu0 %v9065_v49  ;;  %v9086_v49 = vld [vmem:[%s12629_s2 + $0x524] ss:$8 sps:$4 sm:$0xff]  }
 0x7a1   :  { %8614 = vmatprep.subr.bf16.mxu0 %v12654_v58 }
 0x7a4   :  { %8615 = vmatpush3.bf16.msra.mxu0 %v9066_v16 }
 0x7a5   :  { %8616 = vmatprep.subr.bf16.mxu0 %v12654_v58 }
 0x7a8   :  { %8617 = vmatpush3.bf16.msra.mxu0 %v9067_v0  ;;  %v9084_v0 = vld [vmem:[%s12629_s2 + $0x520] ss:$8 sps:$4 sm:$0xff]  }
 0x7a9   :  { %8618 = vmatprep.subr.bf16.mxu0 %v12654_v58 }
 0x7ac   :  { %8619 = vmatpush3.bf16.msra.mxu0 %v9068_v18  ;;  %v9089_v18 = vld [vmem:[%s12629_s2 + $0x514] ss:$8 sps:$4 sm:$0xff]  }
 0x7ad   :  { %8630 = vmatprep.subr.bf16.mxu0 %v12654_v58 }
 0x810   :  { %v3010_v6 = vpop.xlane.xlu0 %3009 }
 0x811   :  { %v3011_v35 = vmax.f32 %v3010_v6, 1.0 }
 0x813   :  { %9553 = vrcp.f32 %v3011_v35 }
 0x820   :  { %v9554_v61 = vpop.eup %9553 }
 0x84f   :  { %v3193_v14 = vpop.f32.mrf.mxu0 }
 0x850   :  { %v3199_v48 = vmul.f32 %v9554_v61, %v3193_v14  ;;  %v9087_v14 = vld [vmem:[%s12629_s2 + $0x510] ss:$8 sps:$4 sm:$0xff]  }
 0x851   :  { %v8602_v28 = vpop.f32.mrf.mxu0 }
 0x852   :  { %v3200_v1 = vadd.f32 %v3199_v48, %v3145_v41  ;;  %v9075_v41 = vld [vmem:[%s12629_s2 + $0x550] ss:$8 sps:$4 sm:$0xff]  }
 0x853   :  { %v3196_v26 = vpop.f32.mrf.mxu0 }
 0x854   :  { %v3208_v23 = vadd.f32 %v7899_v9, %v3200_v1 }
 0x855   :  { %v8603_v11 = vpop.f32.mrf.mxu0 }
 0x856   :  { %v11301_v39 = vmax.f32 %v3208_v23, 0.0 }
 0x858   :  { %v3226_v2 = vpack.c.bf16 %v11301_v39, %v11301_v39 }
 0x85a   :  { %8621 = vmatmul.mubr.bf16.vlgmr.msra.gmra.mxu0 %v3226_v2 }
 0x85b   :  { %8632 = vmatprep.mubr.msk.bf16.mxu0 %vm9640_vm2, %v12654_v58 }
 0x91a   :  { %v3309_v10 = vpop.f32.mrf.mxu0 }
 0x91b   :  { %v3315_v60 = vpack.c.bf16 %v3309_v10, %v3309_v10  ;;  %3317 = vrot.lane.b32.xlu1 %v3309_v10, %s9641_s16 }
 0x91c   :  { %v8622_v13 = vpop.f32.mrf.mxu0 }
 0x91d   :  { %v3321_v25 = vsel %vm1576_vm4, %v3315_v60, 0 }
 0x91e   :  { %v3312_v27 = vpop.f32.mrf.mxu0  ;;  %8625 = vmatpush3.bf16.msra.mxu1 %v3321_v25 }
 0x91f   :  { %3565 = vmatprep.subr.bf16.mxu1 %v9071_v62 }
 0x920   :  { %v8623_v24 = vpop.f32.mrf.mxu0 }
 0x921   :  { %8627 = vmatmul.mubr.msk.bf16.vlgmr.msra.gmra.mxu1 %vm3007_vm13, %v3151_v45  ;;  %v9078_v45 = vld [vmem:[%s12629_s2 + $0x540] ss:$8 sps:$4 sm:$0xff]   ;;  %v9092_v24 = vld [vmem:[%s12629_s2 + $0x504] ss:$8 sps:$4 sm:$0xff]  }
 0x922   :  { %3597 = vmatprep.mubr.bf16.mxu1 %v12674_v19  ;;  %3566 = vmatpush1.bf16.msra.mxu1 %v9069_v51 }
 0x923   :  { %3567 = vmatprep.subr.bf16.mxu1 %v9074_v44 }
 0x926   :  { %3568 = vmatpush1.bf16.msra.mxu1 %v9072_v30 }
 0x927   :  { %3569 = vmatprep.subr.bf16.mxu1 %v9077_v29  ;;  %v9095_v29 = vld [vmem:[%s12631_s4 + $0x178] sm:$0xff]  }
 0x92a   :  { %3570 = vmatpush1.bf16.msra.mxu1 %v9075_v41  ;;  %v9098_v41 = vld [vmem:[%s12631_s4 + $0x160] sm:$0xff]  }
 0x92b   :  { %3571 = vmatprep.subr.bf16.mxu1 %v9080_v32  ;;  %v9100_v32 = vld [vmem:[%s12631_s4 + $0x150] sm:$0xff]  }
 0x92e   :  { %3572 = vmatpush1.bf16.msra.mxu1 %v9078_v45 }
 0x92f   :  { %3573 = vmatprep.subr.bf16.mxu1 %v9083_v31 }
 0x932   :  { %3574 = vmatpush1.bf16.msra.mxu1 %v9081_v37  ;;  %v7931_v37 = vld [vmem:[%s12633_s6 + $0x2] ss:$0 sm:$0xff] }
 0x933   :  { %3575 = vmatprep.subr.bf16.mxu1 %v9086_v49 }
 0x936   :  { %3576 = vmatpush1.bf16.msra.mxu1 %v9084_v0 }
 0x937   :  { %3577 = vmatprep.subr.bf16.mxu1 %v9089_v18 }
 0x93a   :  { %3578 = vmatpush1.bf16.msra.mxu1 %v9087_v14 }
 0x93b   :  { %3579 = vmatprep.subr.bf16.mxu1 %v9092_v24 }
 0x98d   :  { %v3318_v42 = vpop.permute.xlu1 %3317 }
 0x9e1   :  { %v3357_v12 = vpop.f32.mrf.mxu1 }
 0x9e2   :  { %v3358_v46 = vadd.f32 %v3357_v12, %v3318_v42  ;;  %v9090_v42 = vld [vmem:[%s12629_s2 + $0x500] ss:$8 sps:$4 sm:$0xff]  }
 0x9e3   :  { %v8628_v43 = vpop.f32.mrf.mxu1  ;;  %3580 = vmatpush1.bf16.msra.mxu1 %v9090_v42 }
 0x9e4   :  { %v3370_v38 = vadd.f32 %v7909_v50, %v3358_v46  ;;  %8656 = vmatprep.subr.bf16.mxu1 %v12654_v58 }
 0x9e5   :  { %v3360_v54 = vpop.f32.mrf.mxu1 }
 0x9e6   :  { %v3372_v20 = vsel %vm1898_vm5, %v3370_v38, -inf  ;;  %9555 = vtanh.f32 %v3370_v38 }
 0x9e7   :  { %v3373_v8 = vrot.slane %v3372_v20, 4  ;;  %v8629_v59 = vpop.f32.mrf.mxu1 }
 0x9e9   :  { %v3374_v55 = vmax.f32 %v3372_v20, %v3373_v8 }
 0x9eb   :  { %v3375_v4 = vrot.slane %v3374_v55, 2 }
 0x9ed   :  { %v3376_v53 = vmax.f32 %v3374_v55, %v3375_v4 }
 0x9ef   :  { %v3377_v56 = vrot.slane %v3376_v53, 1 }
 0x9f1   :  { %v3378_v3 = vmax.f32 %v3376_v53, %v3377_v56 }
 0x9f3   :  { %v9556_v7 = vpop.eup %9555  ;;  %vm3379_vm3 = vcmp.eq.f32.partialorder %v3370_v38, %v3378_v3 }
 0x9f4   :  { %v3380_v57 = vsel %vm3379_vm3, %v10506_v33, 8.0  ;;  %3433 = vperm.xlu1 %8712, %v9556_v7   ;;  %vm7142_vm3 = vcmask 531456  }
 0x9f5   :  { %v3381_v63 = vsel %vm1898_vm5, %v3380_v57, inf }
 0x9f6   :  { %v3382_v21 = vrot.slane %v3381_v63, 4 }
 0x9f8   :  { %v3383_v22 = vmin.f32 %v3381_v63, %v3382_v21  ;;  %v9096_v63 = vld [vmem:[%s12631_s4 + $0x170] sm:$0xff]   ;;  %v9097_v21 = vld [vmem:[%s12631_s4 + $0x168] sm:$0xff]  }
 0x9fa   :  { %v3384_v17 = vrot.slane %v3383_v22, 2 }
 0x9fc   :  { %v3385_v36 = vmin.f32 %v3383_v22, %v3384_v17  ;;  %v9099_v22 = vld [vmem:[%s12631_s4 + $0x158] sm:$0xff]  }
 0x9fe   :  { %v3386_v15 = vrot.slane %v3385_v36, 1 }
 0xa00   :  { %v3387_v52 = vmin.f32 %v3385_v36, %v3386_v15 }
 0xa02   :  { %vm3388_vm14 = vcmp.eq.f32.partialorder %v10506_v33, %v3387_v52 }
 0xa03   :  { %v7910_v16 = vsel %vm3388_vm14, 1.0, %v12654_v58  ;;  %vm7572_vm14 = vcmask 523264  }
 0xa04   :  { %vm3399_vm15 = vcmp.gt.f32.partialorder %v7910_v16, 0.0 }
 0xa05   :  { %v3400_v6 = vsel %vm3399_vm15, -inf, %v3370_v38 }
 0xa06   :  { %v3401_v35 = vsel %vm1898_vm5, %v3400_v6, -inf }
 0xa07   :  { %v3402_v61 = vrot.slane %v3401_v35, 4 }
 0xa09   :  { %v3403_v48 = vmax.f32 %v3401_v35, %v3402_v61 }
 0xa0b   :  { %v3404_v9 = vrot.slane %v3403_v48, 2 }
 0xa0d   :  { %v3405_v28 = vmax.f32 %v3403_v48, %v3404_v9 }
 0xa0f   :  { %v3406_v1 = vrot.slane %v3405_v28, 1 }
 0xa11   :  { %v3407_v26 = vmax.f32 %v3405_v28, %v3406_v1 }
 0xa13   :  { %vm3408_vm0 = vcmp.eq.f32.partialorder %v3400_v6, %v3407_v26 }
 0xa14   :  { %v3409_v23 = vsel %vm3408_vm0, %v10506_v33, 8.0 }
 0xa15   :  { %v3410_v11 = vsel %vm1898_vm5, %v3409_v23, inf }
 0xa16   :  { %v3411_v2 = vrot.slane %v3410_v11, 4 }
 0xa18   :  { %v3412_v10 = vmin.f32 %v3410_v11, %v3411_v2  ;;  %v7941_v2 = vld [vmem:[%s12633_s6 + $0x5] ss:$0 sm:$0xff] }
 0xa1a   :  { %v3413_v60 = vrot.slane %v3412_v10, 2 }
 0xa1c   :  { %v3414_v13 = vmin.f32 %v3412_v10, %v3413_v60 }
 0xa1e   :  { %v3415_v25 = vrot.slane %v3414_v13, 1 }
 0xa20   :  { %v3416_v27 = vmin.f32 %v3414_v13, %v3415_v25 }
 0xa22   :  { %vm3417_vm1 = vcmp.eq.f32.partialorder %v10506_v33, %v3416_v27 }
 0xa23   :  { %v7912_v12 = vsel %vm3417_vm1, 1.0, %v12654_v58 }
 0xa24   :  { %v11372_v50 = vadd.f32 %v7912_v12, %v7910_v16 }
 0xa26   :  { %3439 = vperm.xlu1 %8712, %v11372_v50   ;;  %vm3443_vm8 = vcmp.gt.f32.partialorder %v11372_v50, 0.0  ;;  %v9103_v50 = vld [vmem:[%s12631_s4 + $0x70] sm:$0xff]  }
 0xa27   :  { %v3444_v1 = vsel %vm3443_vm8, 1, %v12674_v19 }
 0xa2a   :  { %3393 = vperm.xlu1 %8712, %v3387_v52  }
 0xa2e   :  { %3422 = vperm.xlu1 %8712, %v3416_v27  }
 0xa6f   :  { %v3434_v46 = vpop.permute.xlu1 %3433 }
 0xa70   :  { %v3436_v43 = vmul.f32 %v3434_v46, %v11301_v39 }
 0xaa1   :  { %v3440_v38 = vpop.permute.xlu1 %3439 }
 0xaa2   :  { %v11377_v54 = vmul.f32 %v3440_v38, %v3436_v43 }
 0xaa4   :  { %v3484_v20 = vpack.c.bf16 %v11377_v54, %v11377_v54 }
 0xaa5   :  { %v3394_v8 = vpop.permute.xlu1 %3393 }
 0xaa6   :  { %3598 = vmatmul.mubr.bf16.vlgmr.msra.gmra.mxu1 %v3484_v20  ;;  %vm3396_vm6 = vcmp.eq.f32.partialorder %v11042_v5, %v3394_v8  ;;  %v9101_v8 = vld [vmem:[%s12631_s4 + $0x78] sm:$0xff]  }
 0xaa7   :  { %8658 = vmatprep.mubr.msk.bf16.mxu1 %vm9640_vm2, %v12654_v58  ;;  %v7911_v55 = vsel %vm3396_vm6, 1.0, %v12654_v58 }
 0xaa9   :  { %v3423_v59 = vpop.permute.xlu1 %3422 }
 0xaaa   :  { %vm3425_vm7 = vcmp.eq.f32.partialorder %v11042_v5, %v3423_v59  ;;  %v9093_v5 = vld [vmem:[%s12631_s4 + $0x188] sm:$0xff]   ;;  %v9102_v59 = vld [vmem:[%s12631_s4 + $0x38] sm:$0xff]  }
 0xaab   :  { %v7913_v39 = vsel %vm3425_vm7, 1.0, %v12654_v58 }
 0xaac   :  { %v3429_v4 = vadd.f32 %v7913_v39, %v7911_v55 }
 0xaae   :  { %v3463_v53 = vmul.f32 %v3429_v4, %v11255_v34  ;;  %v9094_v34 = vld [vmem:[%s12631_s4 + $0x180] sm:$0xff]   ;;  %v9104_v4 = vld [vmem:[%s12631_s4 + $0x30] sm:$0xff]  }
 0xab0   :  { %v3464_v56 = vsel %vm3007_vm13, %v3463_v53, 0.0  ;;  %v3607_v30 = vpack.c.bf16 %v3463_v53, %v3463_v53  ;;  %v9105_v53 = vld [vmem:[%s12631_s4 + $0x68] sm:$0xff]  }
 0xab1   :  { %3465 = vadd.xlane.f32.xlu1 %v3464_v56 }
 0xb3a   :  { %v3466_v17 = vpop.xlane.xlu1 %3465 }
 0xb3b   :  { %v3467_v45 = vmax.f32 %v3466_v17, 1.0  ;;  %v9113_v17 = vld [vmem:[%s12631_s4 + $0x48] sm:$0xff]  }
 0xb3d   :  { %9557 = vrcp.f32 %v3467_v45  ;;  %v9114_v45 = vld [vmem:[%s12631_s4 + $0x8] sm:$0xff]  }
 0xb4a   :  { %v9558_v36 = vpop.eup %9557 }
 0xb66   :  { %v3599_v51 = vpop.f32.mrf.mxu1 }
 0xb67   :  { %v3608_v62 = vpack.c.bf16 %v3599_v51, %v3599_v51 }
 0xb68   :  { %v3601_v3 = vpop.f32.mrf.mxu1 }
 0xb69   :  { %v3613_v44 = vsel %vm1576_vm4, %v3608_v62, 0 }
 0xb6a   :  { %v3603_v7 = vpop.f32.mrf.mxu1  ;;  %8631 = vmatpush3.bf16.msra.mxu0 %v3613_v44 }
 0xb6b   :  { %8636 = vmatprep.subr.bf16.mxu0 %v12654_v58 }
 0xb6c   :  { %v3604_v57 = vpop.f32.mrf.mxu1 }
 0xb6d   :  { %8633 = vmatmul.mubr.msk.bf16.vlgmr.msra.gmra.mxu0 %vm3007_vm13, %v3607_v30  ;;  %v9107_v57 = vld [vmem:[%s12631_s4 + $0x60] sm:$0xff]  }
 0xb6e   :  { %8637 = vmatpush3.bf16.msra.mxu0 %v9093_v5  ;;  %8652 = vmatprep.mubr.msk.bf16.mxu0 %vm9640_vm2, %v12654_v58 }
 0xb6f   :  { %8638 = vmatprep.subr.bf16.mxu0 %v12654_v58 }
 0xb72   :  { %8639 = vmatpush3.bf16.msra.mxu0 %v9094_v34 }
 0xb73   :  { %8640 = vmatprep.subr.bf16.mxu0 %v12654_v58 }
 0xb76   :  { %8641 = vmatpush3.bf16.msra.mxu0 %v9095_v29  ;;  %v9108_v29 = vld [vmem:[%s12631_s4 + $0x20] sm:$0xff]  }
 0xb77   :  { %8642 = vmatprep.subr.bf16.mxu0 %v12654_v58 }
 0xb7a   :  { %8643 = vmatpush3.bf16.msra.mxu0 %v9096_v63 }
 0xb7b   :  { %8644 = vmatprep.subr.bf16.mxu0 %v12654_v58 }
 0xb7e   :  { %8645 = vmatpush3.bf16.msra.mxu0 %v9097_v21  ;;  %v9109_v21 = vld [vmem:[%s12631_s4 + $0x58] sm:$0xff]  }
 0xb7f   :  { %8646 = vmatprep.subr.bf16.mxu0 %v12654_v58 }
 0xb82   :  { %8647 = vmatpush3.bf16.msra.mxu0 %v9098_v41  ;;  %v9110_v41 = vld [vmem:[%s12631_s4 + $0x18] sm:$0xff]  }
 0xb83   :  { %8648 = vmatprep.subr.bf16.mxu0 %v12654_v58 }
 0xb86   :  { %8649 = vmatpush3.bf16.msra.mxu0 %v9099_v22 }
 0xb87   :  { %8650 = vmatprep.subr.bf16.mxu0 %v12654_v58 }
 0xb8a   :  { %8651 = vmatpush3.bf16.msra.mxu0 %v9100_v32  ;;  %v9112_v32 = vld [vmem:[%s12631_s4 + $0x10] sm:$0xff]  }
 0xb8b   :  { %8662 = vmatprep.subr.bf16.mxu0 %v12654_v58 }
 0xc2d   :  { %v3649_v31 = vpop.f32.mrf.mxu0 }
 0xc2e   :  { %v3655_v15 = vmul.f32 %v9558_v36, %v3649_v31  ;;  %v9115_v36 = vld [vmem:[%s12631_s4 + $0x40] sm:$0xff]  }
 0xc2f   :  { %v8634_v52 = vpop.f32.mrf.mxu0  ;;  %v9116_v31 = vld [vmem:[%s12631_s4] sm:$0xff]  }
 0xc30   :  { %v3656_v49 = vadd.f32 %v3655_v15, %v3601_v3  ;;  %v9106_v3 = vld [vmem:[%s12631_s4 + $0x28] sm:$0xff]   ;;  %v9117_v15 = vld [vmem:[%s12631_s4 + $0xb8] sm:$0xff]  }
 0xc31   :  { %v3652_v16 = vpop.f32.mrf.mxu0  ;;  %v9119_v52 = vld [vmem:[%s12631_s4 + $0xa8] sm:$0xff]  }
 0xc32   :  { %v3664_v0 = vadd.f32 %v7931_v37, %v3656_v49  ;;  %v9118_v37 = vld [vmem:[%s12631_s4 + $0xb0] sm:$0xff]   ;;  %v9120_v49 = vld [vmem:[%s12631_s4 + $0xa0] sm:$0xff]   ;;  %v9121_v16 = vld [vmem:[%s12631_s4 + $0x98] sm:$0xff]  }
 0xc33   :  { %v8635_v18 = vpop.f32.mrf.mxu0 }
 0xc34   :  { %v11429_v6 = vmax.f32 %v3664_v0, 0.0  ;;  %v3456_v18 = vrot.slane %v11377_v54, 4 }
 0xc36   :  { %v3682_v35 = vpack.c.bf16 %v11429_v6, %v11429_v6 }
 0xc38   :  { %8653 = vmatmul.mubr.bf16.vlgmr.msra.gmra.mxu0 %v3682_v35  ;;  %v2994_v35 = vrot.slane %v11246_v40, 4 }
 0xc39   :  { %8678 = vmatprep.mubr.msk.bf16.mxu0 %vm9640_vm2, %v12654_v58  ;;  %8663 = vmatpush3.bf16.msra.mxu0 %v9117_v15  ;;  %v9130_v15 = vld [vmem:[%s12630_s3 + $0x144] ss:$152 sps:$4 sm:$0xff]  }
 0xc3a   :  { %8664 = vmatprep.subr.bf16.mxu0 %v12654_v58 }
 0xc3d   :  { %8665 = vmatpush3.bf16.msra.mxu0 %v9118_v37 }
 0xc3e   :  { %8666 = vmatprep.subr.bf16.mxu0 %v12654_v58 }
 0xc41   :  { %8667 = vmatpush3.bf16.msra.mxu0 %v9119_v52  ;;  %v3917_v52 = vld [vmem:[%s12633_s6 + $0x6] sm:$0x1] }
 0xc42   :  { %8668 = vmatprep.subr.bf16.mxu0 %v12654_v58 }
 0xc45   :  { %8669 = vmatpush3.bf16.msra.mxu0 %v9120_v49 }
 0xc46   :  { %8670 = vmatprep.subr.bf16.mxu0 %v12654_v58 }
 0xc49   :  { %8671 = vmatpush3.bf16.msra.mxu0 %v9121_v16 }
 0xc4a   :  { %8672 = vmatprep.subr.bf16.mxu0 %v12654_v58 }
 0xcf8   :  { %v3765_v61 = vpop.f32.mrf.mxu0 }
 0xcf9   :  { %v3771_v14 = vpack.c.bf16 %v3765_v61, %v3765_v61  ;;  %3773 = vrot.lane.b32.xlu0 %v3765_v61, %s9641_s16 }
 0xcfa   :  { %v8654_v48 = vpop.f32.mrf.mxu0 }
 0xcfb   :  { %v3777_v9 = vsel %vm1576_vm4, %v3771_v14, 0  ;;  %v3457_v14 = vadd.f32 %v3456_v18, %v11377_v54  ;;  %v3001_v48 = vadd.f32 %v2994_v35, %v11246_v40 }
 0xcfc   :  { %v3768_v28 = vpop.f32.mrf.mxu0  ;;  %8657 = vmatpush3.bf16.msra.mxu1 %v3777_v9 }
 0xcfd   :  { %3446 = vperm.xlu0 %8711, %v3444_v1   ;;  %8355 = vmatprep.subr.bf16.mxu1 %v9101_v8  ;;  %v3458_v28 = vrot.slane %v3457_v14, 2  ;;  %v3002_v1 = vrot.slane %v3001_v48, 2 }
 0xcfe   :  { %v8655_v26 = vpop.f32.mrf.mxu0 }
 0xcff   :  { %8659 = vmatmul.mubr.msk.bf16.vlgmr.msra.gmra.mxu1 %vm3007_vm13, %v3607_v30  ;;  %vm7146_vm13 = vcmask 1040384  }
 0xd00   :  { %8356 = vmatpush3.bf16.msra.mxu1 %v9102_v59 }
 0xd01   :  { %8357 = vmatprep.subr.bf16.mxu1 %v9103_v50 }
 0xd04   :  { %8358 = vmatpush3.bf16.msra.mxu1 %v9104_v4 }
 0xd05   :  { %8359 = vmatprep.subr.bf16.mxu1 %v9105_v53 }
 0xd08   :  { %8360 = vmatpush3.bf16.msra.mxu1 %v9106_v3 }
 0xd09   :  { %8361 = vmatprep.subr.bf16.mxu1 %v9107_v57 }
 0xd0c   :  { %8362 = vmatpush3.bf16.msra.mxu1 %v9108_v29 }
 0xd0d   :  { %8363 = vmatprep.subr.bf16.mxu1 %v9109_v21 }
 0xd10   :  { %8364 = vmatpush3.bf16.msra.mxu1 %v9110_v41 }
 0xd6b   :  { %v3774_v23 = vpop.permute.xlu0 %3773 }
 0xd78   :  { %v3447_v0 = vpop.permute.xlu0 %3446 }
 0xd79   :  { %vm3448_vm10 = vcmp.eq.s32.totalorder %v3447_v0, 1 }
 0xd7a   :  { %v3449_v61 = vsel %vm3448_vm10, %v11377_v54, -inf }
 0xd7b   :  { %v3450_v9 = vrot.slane %v3449_v61, 4 }
 0xd7d   :  { %v3451_v26 = vmax.f32 %v3449_v61, %v3450_v9  ;;  %v9133_v9 = vld [vmem:[%s12630_s3 + $0x4] ss:$152 sps:$4 sm:$0xff]  }
 0xdbf   :  { %v3813_v11 = vpop.f32.mrf.mxu1 }
 0xdc0   :  { %v3814_v10 = vadd.f32 %v3813_v11, %v3774_v23  ;;  %v2995_v11 = vmax.f32 %v11246_v40, %v2994_v35 }
 0xdc1   :  { %v8660_v60 = vpop.f32.mrf.mxu1 }
 0xdc2   :  { %v3826_v13 = vadd.f32 %v7941_v2, %v3814_v10  ;;  %v3459_v2 = vadd.f32 %v3458_v28, %v3457_v14  ;;  %v3003_v10 = vadd.f32 %v3002_v1, %v3001_v48  ;;  %v3452_v60 = vrot.slane %v3451_v26, 2  ;;  %v9128_v14 = vld [vmem:[%s12630_s3 + $0x140] ss:$152 sps:$4 sm:$0xff]   ;;  %v9136_v28 = vld [vmem:[%s12630_s3 + $0x14] ss:$152 sps:$4 sm:$0xff]  }
 0xdc3   :  { %v3816_v25 = vpop.f32.mrf.mxu1  ;;  %v9131_v1 = vld [vmem:[%s12630_s3] ss:$152 sps:$4 sm:$0xff]  }
 0xdc4   :  { %v3827_v27 = vsel %vm3443_vm8, %v3826_v13, -inf  ;;  %9559 = vtanh.f32 %v3826_v13  ;;  %v3004_v54 = vrot.slane %v3003_v10, 1 }
 0xdc5   :  { %v3828_v24 = vsel %vm1898_vm5, %v3827_v27, -inf  ;;  %v8661_v42 = vpop.f32.mrf.mxu1 }
 0xdc6   :  { %v3829_v12 = vrot.slane %v3828_v24, 4  ;;  %v3460_v42 = vrot.slane %v3459_v2, 1  ;;  %v3005_v4 = vadd.f32 %v3004_v54, %v3003_v10  ;;  %v9145_v54 = vld [vmem:[%s12630_s3 + $0xc] ss:$152 sps:$4 sm:$0xff]  }
 0xdc8   :  { %v3830_v46 = vmax.f32 %v3828_v24, %v3829_v12  ;;  %v3461_v50 = vadd.f32 %v3460_v42, %v3459_v2  ;;  %v4072_v2 = vld [vmem:[%s12633_s6 + $0x7] sm:$0x1]  ;;  %v9140_v42 = vld [vmem:[%s12630_s3 + $0x150] ss:$152 sps:$4 sm:$0xff]  }
 0xdca   :  { %v3831_v43 = vrot.slane %v3830_v46, 2 }
 0xdcc   :  { %v3832_v38 = vmax.f32 %v3830_v46, %v3831_v43  ;;  %v3453_v46 = vmax.f32 %v3451_v26, %v3452_v60  ;;  %v9134_v26 = vld [vmem:[%s12630_s3 + $0x10] ss:$152 sps:$4 sm:$0xff]  }
 0xdce   :  { %v3833_v20 = vrot.slane %v3832_v38, 1  ;;  %v3454_v40 = vrot.slane %v3453_v46, 1 }
 0xdd0   :  { %v3834_v55 = vmax.f32 %v3832_v38, %v3833_v20 }
 0xdd1   :  { %v9560_v39 = vpop.eup %9559 }
 0xdd2   :  { %vm3835_vm4 = vcmp.eq.f32.partialorder %v3827_v27, %v3834_v55  ;;  %3850 = vperm.xlu0 %8711, %v9560_v39   ;;  %v2996_v27 = vrot.slane %v2995_v11, 2 }
 0xdd3   :  { %v3836_v56 = vsel %vm3835_vm4, %v10506_v33, 8.0 }
 0xdd4   :  { %v3837_v51 = vsel %vm1898_vm5, %v3836_v56, inf  ;;  %v2997_v20 = vmax.f32 %v2995_v11, %v2996_v27  ;;  %v9142_v11 = vld [vmem:[%s12630_s3 + $0x154] ss:$152 sps:$4 sm:$0xff]  }
 0xdd5   :  { %v3838_v62 = vrot.slane %v3837_v51, 4 }
 0xdd6   :  { %v2998_v53 = vrot.slane %v2997_v20, 1 }
 0xdd7   :  { %v3839_v44 = vmin.f32 %v3837_v51, %v3838_v62  ;;  %v3462_v51 = vmul.f32 0.5, %v3461_v50  ;;  %v3455_v62 = vmax.f32 %v3453_v46, %v3454_v40  ;;  %v9148_v46 = vld [vmem:[%s12630_s3 + $0x24] ss:$152 sps:$4 sm:$0xff]   ;;  %v9149_v50 = vld [vmem:[%s12630_s3 + $0x148] ss:$152 sps:$4 sm:$0xff]  }
 0xdd8   :  { %v9152_v40 = vld [vmem:[%s12630_s3 + $0x160] ss:$152 sps:$4 sm:$0xff]  }
 0xdd9   :  { %v3840_v7 = vrot.slane %v3839_v44, 2 }
 0xddb   :  { %v3841_v5 = vmin.f32 %v3839_v44, %v3840_v7  ;;  %v3006_v44 = vmul.f32 0.125, %v3005_v4  ;;  %v9155_v4 = vld [vmem:[%s12630_s3 + $0x18] ss:$152 sps:$4 sm:$0xff]  }
 0xddd   :  { %v3842_v30 = vrot.slane %v3841_v5, 1 }
 0xddf   :  { %v3843_v34 = vmin.f32 %v3841_v5, %v3842_v30  ;;  %v2999_v5 = vmax.f32 %v2997_v20, %v2998_v53  ;;  %v9146_v20 = vld [vmem:[%s12630_s3 + $0x20] ss:$152 sps:$4 sm:$0xff]   ;;  %v9158_v53 = vld [vmem:[%s12630_s3 + $0x30] ss:$152 sps:$4 sm:$0xff]  }
 0xde1   :  { %vm3844_vm5 = vcmp.eq.f32.partialorder %v10506_v33, %v3843_v34  ;;  %v9111_v33 = vld [vmem:[%s12631_s4 + $0x50] sm:$0xff]   ;;  %v3881_v34 = vadd.f32 %v3462_v51, %v3006_v44  ;;  %v3879_v29 = vadd.f32 %v3455_v62, %v2999_v5  ;;  %v9172_v44 = vld [vmem:[%s12630_s3 + $0x44] ss:$152 sps:$4 sm:$0xff]   ;;  %v9170_v5 = vld [vmem:[%s12630_s3 + $0x40] ss:$152 sps:$4 sm:$0xff]  }
 0xde2   :  { %v7942_v63 = vsel %vm3844_vm5, 1.0, %v12654_v58  ;;  %8365 = vmatprep.subr.bf16.mxu1 %v9111_v33  ;;  %v9161_v51 = vld [vmem:[%s12630_s3 + $0x158] ss:$152 sps:$4 sm:$0xff]  }
 0xde3   :  { %3856 = vperm.xlu1 %8712, %v7942_v63   ;;  %vm3860_vm9 = vcmp.gt.f32.partialorder %v7942_v63, 0.0  ;;  %8366 = vmatpush3.bf16.msra.mxu1 %v9112_v32  ;;  %v9122_v32 = vld [vmem:[%s12631_s4 + $0x90] sm:$0xff]  }
 0xde4   :  { %v3861_v22 = vsel %vm3860_vm9, 1, %v12674_v19  ;;  %8367 = vmatprep.subr.bf16.mxu1 %v9113_v17  ;;  %8673 = vmatpush3.bf16.msra.mxu0 %v9122_v32  ;;  %v9123_v17 = vld [vmem:[%s12631_s4 + $0x88] sm:$0xff]  }
 0xde5   :  { %3863 = vperm.xlu0 %8711, %v3861_v22   ;;  %8674 = vmatprep.subr.bf16.mxu0 %v12654_v58  ;;  %v9164_v62 = vld [vmem:[%s12630_s3 + $0x170] ss:$152 sps:$4 sm:$0xff]  }
 0xde6   :  { %v9184_v32 = vld [vmem:[%s12632_s5 + $0xe8] sm:$0xff]  }
 0xde7   :  { %8368 = vmatpush3.bf16.msra.mxu1 %v9114_v45  ;;  %v9124_v45 = vld [vmem:[%s12631_s4 + $0x80] sm:$0xff]  }
 0xde8   :  { %8369 = vmatprep.subr.bf16.mxu1 %v9115_v36  ;;  %8675 = vmatpush3.bf16.msra.mxu0 %v9123_v17  ;;  %v9125_v36 = vld [vmem:[%s12630_s3 + $0x130] ss:$152 sps:$4 sm:$0xff]   ;;  %v9185_v17 = vld [vmem:[%s12632_s5 + $0x38] sm:$0xff]  }
 0xde9   :  { %8676 = vmatprep.subr.bf16.mxu0 %v12654_v58 }
 0xdeb   :  { %8370 = vmatpush3.bf16.msra.mxu1 %v9116_v31  ;;  %v9127_v31 = vld [vmem:[%s12630_s3 + $0x134] ss:$152 sps:$4 sm:$0xff]  }
 0xdec   :  { %8677 = vmatpush3.bf16.msra.mxu0 %v9124_v45  ;;  %4395 = vmatprep.subr.bf16.mxu1 %v9127_v31  ;;  %v9186_v45 = vld [vmem:[%s12632_s5 + $0xa8] sm:$0xff]   ;;  %v9188_v31 = vld [vmem:[%s12632_s5 + $0xe0] sm:$0xff]  }
 0xded   :  { %4477 = vmatprep.subr.bf16.mxu0 %v9130_v15  ;;  %v9189_v15 = vld [vmem:[%s12632_s5 + $0x30] sm:$0xff]  }
 0xe4d   :  { %v3851_v23 = vpop.permute.xlu0 %3850 }
 0xe4e   :  { %v3853_v13 = vmul.f32 %v3851_v23, %v11429_v6  ;;  %v9139_v23 = vld [vmem:[%s12630_s3 + $0x13c] ss:$152 sps:$4 sm:$0xff]  }
 0xe5e   :  { %v3857_v25 = vpop.permute.xlu1 %3856 }
 0xe5f   :  { %v3859_v24 = vmul.f32 %v3857_v25, %v3853_v13 }
 0xe60   :  { %v3864_v12 = vpop.permute.xlu0 %3863 }
 0xe61   :  { %v3873_v43 = vrot.slane %v3859_v24, 4  ;;  %vm3865_vm11 = vcmp.eq.s32.totalorder %v3864_v12, 1 }
 0xe62   :  { %v3866_v38 = vsel %vm3865_vm11, %v3859_v24, -inf }
 0xe63   :  { %v3874_v8 = vadd.f32 %v3873_v43, %v3859_v24  ;;  %v3867_v59 = vrot.slane %v3866_v38, 4  ;;  %v9137_v24 = vld [vmem:[%s12630_s3 + $0x138] ss:$152 sps:$4 sm:$0xff]  }
 0xe65   :  { %v3875_v55 = vrot.slane %v3874_v8, 2  ;;  %v3868_v39 = vmax.f32 %v3866_v38, %v3867_v59  ;;  %v9143_v38 = vld [vmem:[%s12630_s3 + $0x8] ss:$152 sps:$4 sm:$0xff]   ;;  %v9154_v59 = vld [vmem:[%s12630_s3 + $0x164] ss:$152 sps:$4 sm:$0xff]  }
 0xe67   :  { %v3876_v6 = vadd.f32 %v3875_v55, %v3874_v8  ;;  %v3869_v56 = vrot.slane %v3868_v39, 2  ;;  %v9151_v8 = vld [vmem:[%s12630_s3 + $0x14c] ss:$152 sps:$4 sm:$0xff]   ;;  %v9157_v55 = vld [vmem:[%s12630_s3 + $0x1c] ss:$152 sps:$4 sm:$0xff]  }
 0xe69   :  { %v3870_v3 = vmax.f32 %v3868_v39, %v3869_v56  ;;  %v3877_v7 = vrot.slane %v3876_v6, 1  ;;  %v9160_v39 = vld [vmem:[%s12630_s3 + $0x34] ss:$152 sps:$4 sm:$0xff]  }
 0xe6a   :  { %v9166_v56 = vld [vmem:[%s12630_s3 + $0x174] ss:$152 sps:$4 sm:$0xff]  }
 0xe6b   :  { %v3871_v30 = vrot.slane %v3870_v3, 1  ;;  %v3878_v57 = vadd.f32 %v3877_v7, %v3876_v6  ;;  %v9163_v6 = vld [vmem:[%s12630_s3 + $0x15c] ss:$152 sps:$4 sm:$0xff]   ;;  %v9167_v7 = vld [vmem:[%s12630_s3 + $0x28] ss:$152 sps:$4 sm:$0xff]  }
 0xe6d   :  { %v3872_v63 = vmax.f32 %v3870_v3, %v3871_v30  ;;  %v3882_v21 = vadd.f32 %v3881_v34, %v3878_v57  ;;  %v9169_v3 = vld [vmem:[%s12630_s3 + $0x2c] ss:$152 sps:$4 sm:$0xff]   ;;  %v9179_v57 = vld [vmem:[%s12632_s5 + $0xf8] sm:$0xff]   ;;  %v9173_v34 = vld [vmem:[%s12630_s3 + $0x168] ss:$152 sps:$4 sm:$0xff]  }
 0xe6e   :  { %v9175_v30 = vld [vmem:[%s12630_s3 + $0x16c] ss:$152 sps:$4 sm:$0xff]  }
 0xe6f   :  { %v3880_v41 = vadd.f32 %v3879_v29, %v3872_v63  ;;  %v3916_v22 = vpack.c.bf16 %v3882_v21, %v3882_v21  ;;  %v9178_v29 = vld [vmem:[%s12630_s3 + $0x3c] ss:$152 sps:$4 sm:$0xff]  }
 0xe70   :  { %v9180_v63 = vld [vmem:[%s12632_s5 + $0xb8] sm:$0xff]   ;;  %v9181_v21 = vld [vmem:[%s12632_s5 + $0xf0] sm:$0xff]  }
 0xe71   :  { %4046 = vmatprep.mubr.bf16.mxu1 %v3916_v22  ;;  %v3915_v33 = vpack.c.bf16 %v3880_v41, %v3880_v41  ;;  %v9176_v41 = vld [vmem:[%s12630_s3 + $0x38] ss:$152 sps:$4 sm:$0xff]  }
 0xe72   :  { %v9182_v22 = vld [vmem:[%s12632_s5 + $0xb0] sm:$0xff]  }
 0xe73   :  { %4047 = vmatmul.mubr.bf16.vlgmr.msra.gmra.mxu1 %v3915_v33  ;;  %v9183_v33 = vld [vmem:[%s12632_s5 + $0x78] sm:$0xff]  }
 0xe74   :  { %4415 = vmatprep.mubr.bf16.mxu1 %v12674_v19  ;;  %4396 = vmatpush1.bf16.msra.mxu1 %v9125_v36  ;;  %v9187_v36 = vld [vmem:[%s12632_s5 + $0x70] sm:$0xff]  }
 0xe75   :  { %4397 = vmatprep.subr.bf16.mxu1 %v9133_v9  ;;  %v9200_v9 = vld [vmem:[%s12632_s5 + $0xc8] sm:$0xff]  }
 0xe78   :  { %4398 = vmatpush1.bf16.msra.mxu1 %v9131_v1  ;;  %v9202_v1 = vld [vmem:[%s12632_s5 + $0x88] sm:$0xff]  }
 0xe79   :  { %4436 = vmatprep.subr.bf16.mxu1 %v9139_v23  ;;  %v9204_v23 = vld [vmem:[%s12632_s5 + $0xc0] sm:$0xff]  }
 0xf33   :  { %v8371_v37 = vpop.f32.mrf.mxu1 }
 0xf35   :  { %v8372_v49 = vpop.f32.mrf.mxu1 }
 0xf36   :  { %v8373_v16 = vadd.f32 %v8372_v49, %v8371_v37  ;;  %v9190_v37 = vld [vmem:[%s12632_s5 + $0xa0] sm:$0xff]   ;;  %v9192_v49 = vld [vmem:[%s12632_s5 + $0xd8] sm:$0xff]  }
 0xf37   :  { %v8374_v0 = vpop.f32.mrf.mxu1 }
 0xf38   :  { %v4049_v18 = vadd.f32 %v8373_v16, %v3917_v52  ;;  %v9191_v52 = vld [vmem:[%s12632_s5 + $0x68] sm:$0xff]   ;;  %v9194_v0 = vld [vmem:[%s12632_s5 + $0x98] sm:$0xff]  }
 0xf39   :  { %v8375_v35 = vpop.f32.mrf.mxu1  ;;  %v9193_v16 = vld [vmem:[%s12632_s5 + $0x28] sm:$0xff]  }
 0xf3a   :  { %v4054_v61 = vmax.f32 %v4049_v18, 0.0  ;;  %v9195_v18 = vld [vmem:[%s12632_s5 + $0x60] sm:$0xff]   ;;  %v9196_v35 = vld [vmem:[%s12632_s5 + $0xd0] sm:$0xff]  }
 0xf3c   :  { %v4071_v48 = vpack.c.bf16 %v4054_v61, %v4054_v61  ;;  %v9197_v61 = vld [vmem:[%s12632_s5 + $0x20] sm:$0xff]  }
 0xf3e   :  { %8679 = vmatmul.mubr.bf16.vlgmr.msra.gmra.mxu0 %v4071_v48  ;;  %v9199_v48 = vld [vmem:[%s12632_s5 + $0x58] sm:$0xff]  }
 0xf3f   :  { %4478 = vmatpush1.bf16.msra.mxu0 %v9128_v14  ;;  %4497 = vmatprep.mubr.bf16.mxu0 %v12674_v19  ;;  %v9198_v14 = vld [vmem:[%s12632_s5 + $0x90] sm:$0xff]  }
 0xf40   :  { %4479 = vmatprep.subr.bf16.mxu0 %v9136_v28  ;;  %v9201_v28 = vld [vmem:[%s12632_s5 + $0x18] sm:$0xff]  }
 0xf43   :  { %4480 = vmatpush1.bf16.msra.mxu0 %v9134_v26  ;;  %v9203_v26 = vld [vmem:[%s12632_s5 + $0x50] sm:$0xff]  }
 0xf44   :  { %4559 = vmatprep.subr.bf16.mxu0 %v9142_v11  ;;  %v9205_v11 = vld [vmem:[%s12632_s5 + $0x10] sm:$0xff]  }
 0xffe   :  { %v4155_v10 = vpop.f32.mrf.mxu0 }
 0xfff   :  { %v4156_v60 = vadd.f32 %v4155_v10, %v4072_v2  ;;  %v9206_v2 = vld [vmem:[%s12632_s5 + $0x80] sm:$0xff]   ;;  %v9207_v10 = vld [vmem:[%s12632_s5 + $0x48] sm:$0xff]  }
0x1000   :  { %v8680_v13 = vpop.f32.mrf.mxu0 }
0x1001   :  { %v4161_v25 = vmax.f32 %v4156_v60, 0.0  ;;  %v9208_v60 = vld [vmem:[%s12632_s5 + $0x1f8] sm:$0xff]   ;;  %v9209_v13 = vld [vmem:[%s12632_s5 + $0x8] sm:$0xff]  }
0x1002   :  { %v4158_v27 = vpop.f32.mrf.mxu0 }
0x1003   :  { %v11583_v12 = vpack.c.bf16 %v4161_v25, %v4161_v25  ;;  %v9211_v25 = vld [vmem:[%s12632_s5 + $0x40] sm:$0xff]  }
0x1004   :  { %v8681_v43 = vpop.f32.mrf.mxu0  ;;  %v9213_v27 = vld [vmem:[%s12632_s5] sm:$0xff]  }
0x1005   :  { %8003 = vmatmul.mubr.msk.bf16.vlgmr.msra.gmra.mxu1 %vm4379_vm12, %v11583_v12  ;;  %8005 = vmatmul.mubr.msk.bf16.vlgmr.msra.gmra.mxu0 %vm4379_vm12, %v11583_v12 }
0x1006   :  { %4437 = vmatpush1.bf16.msra.mxu1 %v9137_v24  ;;  %4560 = vmatpush1.bf16.msra.mxu0 %v9140_v42  ;;  %v9215_v24 = vld [vmem:[%s12632_s5 + $0x178] sm:$0xff]  }
0x1007   :  { %4438 = vmatprep.subr.bf16.mxu1 %v9145_v54  ;;  %4561 = vmatprep.subr.bf16.mxu0 %v9148_v46 }
0x1008   :  { %4456 = vmatprep.mubr.bf16.mxu1 %v12674_v19  ;;  %4579 = vmatprep.mubr.bf16.mxu0 %v12674_v19 }
0x100a   :  { %4439 = vmatpush1.bf16.msra.mxu1 %v9143_v38  ;;  %4562 = vmatpush1.bf16.msra.mxu0 %v9146_v20 }
0x100b   :  { %4518 = vmatprep.subr.bf16.mxu1 %v9151_v8  ;;  %4641 = vmatprep.subr.bf16.mxu0 %v9154_v59 }
0x100d   :  { %8004 = vmatmul.mubr.msk.bf16.vlgmr.msra.gmra.mxu1 %vm4379_vm12, %v11583_v12  ;;  %8007 = vmatmul.mubr.msk.bf16.vlgmr.msra.gmra.mxu0 %vm4379_vm12, %v11583_v12 }
0x100e   :  { %4519 = vmatpush1.bf16.msra.mxu1 %v9149_v50  ;;  %4642 = vmatpush1.bf16.msra.mxu0 %v9152_v40 }
0x100f   :  { %4520 = vmatprep.subr.bf16.mxu1 %v9157_v55  ;;  %4643 = vmatprep.subr.bf16.mxu0 %v9160_v39 }
0x1010   :  { %4538 = vmatprep.mubr.bf16.mxu1 %v12674_v19  ;;  %4661 = vmatprep.mubr.bf16.mxu0 %v12674_v19 }
0x1012   :  { %4521 = vmatpush1.bf16.msra.mxu1 %v9155_v4  ;;  %4644 = vmatpush1.bf16.msra.mxu0 %v9158_v53 }
0x1013   :  { %4600 = vmatprep.subr.bf16.mxu1 %v9163_v6  ;;  %4723 = vmatprep.subr.bf16.mxu0 %v9166_v56 }
0x1015   :  { %8006 = vmatmul.mubr.msk.bf16.vlgmr.msra.gmra.mxu1 %vm4379_vm12, %v11583_v12  ;;  %8009 = vmatmul.mubr.msk.bf16.vlgmr.msra.gmra.mxu0 %vm4379_vm12, %v11583_v12 }
0x1016   :  { %4601 = vmatpush1.bf16.msra.mxu1 %v9161_v51  ;;  %4724 = vmatpush1.bf16.msra.mxu0 %v9164_v62 }
0x1017   :  { %4602 = vmatprep.subr.bf16.mxu1 %v9169_v3  ;;  %4725 = vmatprep.subr.bf16.mxu0 %v9172_v44 }
0x1018   :  { %4620 = vmatprep.mubr.bf16.mxu1 %v12674_v19  ;;  %4743 = vmatprep.mubr.bf16.mxu0 %v12674_v19 }
0x101a   :  { %4603 = vmatpush1.bf16.msra.mxu1 %v9167_v7  ;;  %4726 = vmatpush1.bf16.msra.mxu0 %v9170_v5 }
0x101b   :  { %4682 = vmatprep.subr.bf16.mxu1 %v9175_v30  ;;  %8408 = vmatprep.subr.bf16.mxu0 %v9179_v57 }
0x101d   :  { %8008 = vmatmul.mubr.msk.bf16.vlgmr.msra.gmra.mxu1 %vm4379_vm12, %v11583_v12  ;;  %8011 = vmatmul.mubr.msk.bf16.vlgmr.msra.gmra.mxu0 %vm4379_vm12, %v11583_v12 }
0x101e   :  { %4683 = vmatpush1.bf16.msra.mxu1 %v9173_v34  ;;  %4702 = vmatprep.mubr.bf16.mxu1 %v12674_v19  ;;  %v9210_v34 = vld [vmem:[%s12632_s5 + $0x1b8] sm:$0xff]  }
0x101f   :  { %4684 = vmatprep.subr.bf16.mxu1 %v9178_v29  ;;  %8409 = vmatpush3.bf16.msra.mxu0 %v9180_v63 }
0x1020   :  { %8410 = vmatprep.subr.bf16.mxu0 %v9181_v21 }
0x1022   :  { %4685 = vmatpush1.bf16.msra.mxu1 %v9176_v41  ;;  %v9212_v41 = vld [vmem:[%s12632_s5 + $0x1f0] sm:$0xff]  }
0x1023   :  { %8411 = vmatpush3.bf16.msra.mxu0 %v9182_v22  ;;  %8386 = vmatprep.subr.bf16.mxu1 %v9183_v33 }
0x1024   :  { %8412 = vmatprep.subr.bf16.mxu0 %v9184_v32  ;;  %v9214_v32 = vld [vmem:[%s12632_s5 + $0x1b0] sm:$0xff]  }
0x1025   :  { %8010 = vmatmul.mubr.msk.bf16.vlgmr.msra.gmra.mxu1 %vm4379_vm12, %v11583_v12 }
0x1026   :  { %8387 = vmatpush3.bf16.msra.mxu1 %v9185_v17 }
0x1027   :  { %8413 = vmatpush3.bf16.msra.mxu0 %v9186_v45  ;;  %8388 = vmatprep.subr.bf16.mxu1 %v9187_v36 }
0x1028   :  { %8414 = vmatprep.subr.bf16.mxu0 %v9188_v31  ;;  %v9216_v31 = vld [vmem:[%s12632_s5 + $0x1e8] sm:$0xff]  }
0x102a   :  { %8389 = vmatpush3.bf16.msra.mxu1 %v9189_v15 }
0x102b   :  { %8415 = vmatpush3.bf16.msra.mxu0 %v9190_v37  ;;  %8390 = vmatprep.subr.bf16.mxu1 %v9191_v52 }
0x102c   :  { %8416 = vmatprep.subr.bf16.mxu0 %v9192_v49 }
0x102e   :  { %8391 = vmatpush3.bf16.msra.mxu1 %v9193_v16 }
0x102f   :  { %8417 = vmatpush3.bf16.msra.mxu0 %v9194_v0  ;;  %8392 = vmatprep.subr.bf16.mxu1 %v9195_v18  ;;  %v9217_v18 = vld [vmem:[%s12632_s5 + $0x138] sm:$0xff]  }
0x1030   :  { %8418 = vmatprep.subr.bf16.mxu0 %v9196_v35  ;;  %v9218_v35 = vld [vmem:[%s12632_s5 + $0x1a8] sm:$0xff]  }
0x1032   :  { %8393 = vmatpush3.bf16.msra.mxu1 %v9197_v61 }
0x1033   :  { %8419 = vmatpush3.bf16.msra.mxu0 %v9198_v14  ;;  %8394 = vmatprep.subr.bf16.mxu1 %v9199_v48 }
0x1034   :  { %8420 = vmatprep.subr.bf16.mxu0 %v9200_v9  ;;  %v9219_v9 = vld [vmem:[%s12632_s5 + $0x170] sm:$0xff]  }
0x1036   :  { %8395 = vmatpush3.bf16.msra.mxu1 %v9201_v28  ;;  %v9220_v28 = vld [vmem:[%s12632_s5 + $0x1e0] sm:$0xff]  }
0x1037   :  { %8421 = vmatpush3.bf16.msra.mxu0 %v9202_v1  ;;  %8396 = vmatprep.subr.bf16.mxu1 %v9203_v26  ;;  %v9221_v26 = vld [vmem:[%s12632_s5 + $0x130] sm:$0xff]  }
0x1038   :  { %8422 = vmatprep.subr.bf16.mxu0 %v9204_v23  ;;  %v9222_v23 = vld [vmem:[%s12632_s5 + $0x1a0] sm:$0xff]  }
0x103a   :  { %8397 = vmatpush3.bf16.msra.mxu1 %v9205_v11 }
0x103b   :  { %8423 = vmatpush3.bf16.msra.mxu0 %v9206_v2  ;;  %8398 = vmatprep.subr.bf16.mxu1 %v9207_v10  ;;  %v9223_v2 = vld [vmem:[%s12632_s5 + $0x168] sm:$0xff]   ;;  %v9224_v10 = vld [vmem:[%s12632_s5 + $0x1d8] sm:$0xff]  }
0x103c   :  { %8452 = vmatprep.subr.bf16.mxu0 %v9208_v60 }
0x103e   :  { %8399 = vmatpush3.bf16.msra.mxu1 %v9209_v13 }
0x103f   :  { %8400 = vmatprep.subr.bf16.mxu1 %v9211_v25 }
0x1042   :  { %8401 = vmatpush3.bf16.msra.mxu1 %v9213_v27  ;;  %v9225_v27 = vld [vmem:[%s12632_s5 + $0x128] sm:$0xff]  }
0x1043   :  { %8430 = vmatprep.subr.bf16.mxu1 %v9215_v24  ;;  %v9226_v24 = vld [vmem:[%s12632_s5 + $0x198] sm:$0xff]  }
0x10c5   :  { %v11784_v42 = vpop.f32.mrf.mxu1  ;;  %v4499_v12 = vpop.f32.mrf.mxu0 }
0x10c7   :  { %v11786_v54 = vpop.f32.mrf.mxu1  ;;  %v4501_v46 = vpop.f32.mrf.mxu0 }
0x10c9   :  { %v4421_v43 = vpop.f32.mrf.mxu1  ;;  %v4503_v38 = vpop.f32.mrf.mxu0 }
0x10ca   :  { %v9228_v43 = vld [vmem:[%s12632_s5 + $0x1d0] sm:$0xff]   ;;  %v9229_v38 = vld [vmem:[%s12632_s5 + $0x120] sm:$0xff]  }
0x10cb   :  { %v4422_v20 = vpop.f32.mrf.mxu1  ;;  %v4504_v8 = vpop.f32.mrf.mxu0 }
0x10cc   :  { %v9230_v20 = vld [vmem:[%s12632_s5 + $0x190] sm:$0xff]   ;;  %v9231_v8 = vld [vmem:[%s12632_s5 + $0x158] sm:$0xff]  }
0x10cd   :  { %v4458_v59 = vpop.f32.mrf.mxu1  ;;  %v11788_v50 = vpop.f32.mrf.mxu0 }
0x10cf   :  { %v4460_v40 = vpop.f32.mrf.mxu1  ;;  %v4583_v55 = vpop.f32.mrf.mxu0 }
0x10d1   :  { %v4462_v39 = vpop.f32.mrf.mxu1  ;;  %v4585_v4 = vpop.f32.mrf.mxu0 }
0x10d2   :  { %v9235_v39 = vld [vmem:[%s12632_s5 + $0x150] sm:$0xff]   ;;  %v9236_v4 = vld [vmem:[%s12632_s5 + $0x1c0] sm:$0xff]  }
0x10d3   :  { %v4463_v53 = vpop.f32.mrf.mxu1  ;;  %v4586_v6 = vpop.f32.mrf.mxu0 }
0x10d4   :  { %v9237_v53 = vld [vmem:[%s12632_s5 + $0x110] sm:$0xff]   ;;  %v9238_v6 = vld [vmem:[%s12632_s5 + $0x180] sm:$0xff]  }
0x10d5   :  { %v11790_v56 = vpop.f32.mrf.mxu1  ;;  %v4663_v51 = vpop.f32.mrf.mxu0 }
0x10d6   :  { %v4760_v62 = vmul.f32 %v4663_v51, %v4499_v12 }
0x10d7   :  { %v4542_v3 = vpop.f32.mrf.mxu1  ;;  %v4665_v44 = vpop.f32.mrf.mxu0 }
0x10d8   :  { %v4761_v7 = vmul.f32 %v4665_v44, %v4501_v46  ;;  %v4896_v29 = vpack.c.bf16 %v4760_v62, %v4760_v62  ;;  %v9227_v46 = vld [vmem:[%s12632_s5 + $0x160] sm:$0xff]   ;;  %v9239_v62 = vld [vmem:[%s12632_s5 + $0x148] sm:$0xff]  }
0x10d9   :  { %v4544_v5 = vpop.f32.mrf.mxu1  ;;  %v4667_v30 = vpop.f32.mrf.mxu0 }
0x10da   :  { %v4897_v57 = vpack.c.bf16 %v4761_v7, %v4761_v7  ;;  %v9241_v7 = vld [vmem:[%s12632_s5 + $0x140] sm:$0xff]  }
0x10db   :  { %v4545_v63 = vpop.f32.mrf.mxu1  ;;  %v4668_v21 = vpop.f32.mrf.mxu0 }
0x10dc   :  { %5359 = vmatprep.mubr.bf16.mxu0 %v4897_v57  ;;  %v9243_v57 = vld [vmem:[%s12631_s4 + $0xc8] sm:$0xff]   ;;  %v9250_v63 = vld [vmem:[%s12630_s3 + $0x184] ss:$152 sps:$4 sm:$0xff]  }
0x10dd   :  { %v4622_v22 = vpop.f32.mrf.mxu1  ;;  %v11798_v33 = vpop.f32.mrf.mxu0  ;;  %5360 = vmatmul.mubr.bf16.vlgmr.msra.gmra.mxu0 %v4896_v29  ;;  %v9247_v29 = vld [vmem:[%s12630_s3 + $0x17c] ss:$152 sps:$4 sm:$0xff]  }
0x10de   :  { %8453 = vmatpush3.bf16.msra.mxu0 %v9210_v34  ;;  %v4758_v17 = vmul.f32 %v4622_v22, %v4458_v59  ;;  %v9232_v59 = vld [vmem:[%s12632_s5 + $0x1c8] sm:$0xff]   ;;  %v4764_v51 = vmul.f32 %v11798_v33, %v11788_v50  ;;  %v9242_v50 = vld [vmem:[%s12632_s5 + $0x100] sm:$0xff]  }
0x10df   :  { %v4624_v45 = vpop.f32.mrf.mxu1  ;;  %v4747_v36 = vpop.f32.mrf.mxu0  ;;  %8454 = vmatprep.subr.bf16.mxu0 %v9212_v41  ;;  %v9244_v34 = vld [vmem:[%s12631_s4 + $0xc0] sm:$0xff]  }
0x10e0   :  { %v4759_v15 = vmul.f32 %v4624_v45, %v4460_v40  ;;  %v4765_v37 = vmul.f32 %v4747_v36, %v4583_v55  ;;  %v4894_v61 = vpack.c.bf16 %v4758_v17, %v4758_v17  ;;  %v9233_v40 = vld [vmem:[%s12632_s5 + $0x118] sm:$0xff]   ;;  %v9234_v55 = vld [vmem:[%s12632_s5 + $0x188] sm:$0xff]   ;;  %v4900_v44 = vpack.c.bf16 %v4764_v51, %v4764_v51 }
0x10e1   :  { %v4626_v52 = vpop.f32.mrf.mxu1  ;;  %v4749_v49 = vpop.f32.mrf.mxu0  ;;  %v9257_v51 = vld [vmem:[%s12630_s3 + $0x188] ss:$152 sps:$4 sm:$0xff]  }
0x10e2   :  { %v4895_v16 = vpack.c.bf16 %v4759_v15, %v4759_v15  ;;  %v4901_v0 = vpack.c.bf16 %v4765_v37, %v4765_v37  ;;  %8455 = vmatpush3.bf16.msra.mxu0 %v9214_v32  ;;  %v4902_v52 = vld [vmem:[%s12633_s6 + $0x9] sm:$0x1] }
0x10e3   :  { %v4627_v14 = vpop.f32.mrf.mxu1  ;;  %v4750_v48 = vpop.f32.mrf.mxu0  ;;  %8456 = vmatprep.subr.bf16.mxu0 %v9216_v31 }
0x10e4   :  { %5319 = vmatprep.mubr.bf16.mxu1 %v4895_v16  ;;  %5439 = vmatprep.mubr.bf16.mxu0 %v4901_v0 }
0x10e5   :  { %v4704_v1 = vpop.f32.mrf.mxu1  ;;  %5320 = vmatmul.mubr.bf16.vlgmr.msra.gmra.mxu1 %v4894_v61 }
0x10e6   :  { %8431 = vmatpush3.bf16.msra.mxu1 %v9217_v18  ;;  %8457 = vmatpush3.bf16.msra.mxu0 %v9218_v35  ;;  %v4762_v5 = vmul.f32 %v4704_v1, %v11790_v56  ;;  %v9245_v56 = vld [vmem:[%s12630_s3 + $0x178] ss:$152 sps:$4 sm:$0xff]  }
0x10e7   :  { %v4706_v11 = vpop.f32.mrf.mxu1  ;;  %8432 = vmatprep.subr.bf16.mxu1 %v9219_v9  ;;  %8458 = vmatprep.subr.bf16.mxu0 %v9220_v28 }
0x10e8   :  { %v4763_v60 = vmul.f32 %v4706_v11, %v4542_v3  ;;  %v9240_v3 = vld [vmem:[%s12632_s5 + $0x108] sm:$0xff]   ;;  %v4898_v30 = vpack.c.bf16 %v4762_v5, %v4762_v5  ;;  %v9263_v5 = vld [vmem:[%s12630_s3 + $0x58] ss:$152 sps:$4 sm:$0xff]  }
0x10e9   :  { %v4708_v13 = vpop.f32.mrf.mxu1 }
0x10ea   :  { %v4899_v25 = vpack.c.bf16 %v4763_v60, %v4763_v60  ;;  %8433 = vmatpush3.bf16.msra.mxu1 %v9221_v26  ;;  %8459 = vmatpush3.bf16.msra.mxu0 %v9222_v23  ;;  %v4752_v60 = vld [vmem:[%s12633_s6 + $0x8] sm:$0x1] }
0x10eb   :  { %v4709_v12 = vpop.f32.mrf.mxu1  ;;  %8434 = vmatprep.subr.bf16.mxu1 %v9223_v2  ;;  %8460 = vmatprep.subr.bf16.mxu0 %v9224_v10  ;;  %v4753_v13 = vadd.f32 %v4752_v60, %v11784_v42  ;;  %v9256_v42 = vld [vmem:[%s12630_s3 + $0x54] ss:$152 sps:$4 sm:$0xff]   ;;  %v9308_v60 = vld [vmem:[%s12629_s2 + $0x5e0] ss:$8 sps:$4 sm:$0xff]  }
0x10ec   :  { %5399 = vmatprep.mubr.bf16.mxu1 %v4899_v25  ;;  %v9248_v12 = vld [vmem:[%s12630_s3 + $0x180] ss:$152 sps:$4 sm:$0xff]  }
0x10ed   :  { %v4754_v25 = vmax.f32 %v4753_v13, 0.0  ;;  %v9320_v13 = vld [vmem:[%s12629_s2 + $0x6e0] ss:$8 sps:$4 sm:$0xff]  }
0x10ee   :  { %8435 = vmatpush3.bf16.msra.mxu1 %v9225_v27  ;;  %8461 = vmatpush3.bf16.msra.mxu0 %v9226_v24 }
0x10ef   :  { %8436 = vmatprep.subr.bf16.mxu1 %v9227_v46  ;;  %8462 = vmatprep.subr.bf16.mxu0 %v9228_v43  ;;  %v9253_v43 = vld [vmem:[%s12630_s3 + $0x4c] ss:$152 sps:$4 sm:$0xff]  }
0x10f2   :  { %8437 = vmatpush3.bf16.msra.mxu1 %v9229_v38  ;;  %8463 = vmatpush3.bf16.msra.mxu0 %v9230_v20  ;;  %v9251_v38 = vld [vmem:[%s12630_s3 + $0x48] ss:$152 sps:$4 sm:$0xff]  }
0x10f3   :  { %8438 = vmatprep.subr.bf16.mxu1 %v9231_v8  ;;  %8464 = vmatprep.subr.bf16.mxu0 %v9232_v59  ;;  %v9254_v20 = vld [vmem:[%s12630_s3 + $0x50] ss:$152 sps:$4 sm:$0xff]   ;;  %v9259_v8 = vld [vmem:[%s12630_s3 + $0x18c] ss:$152 sps:$4 sm:$0xff]  }
0x10f4   :  { %v9262_v59 = vld [vmem:[%s12630_s3 + $0x194] ss:$152 sps:$4 sm:$0xff]  }
0x10f6   :  { %8439 = vmatpush3.bf16.msra.mxu1 %v9233_v40  ;;  %8465 = vmatpush3.bf16.msra.mxu0 %v9234_v55  ;;  %v5459_v40 = vld [vmem:[%s12633_s6 + $0xa] sm:$0x1] }
0x10f7   :  { %8440 = vmatprep.subr.bf16.mxu1 %v9235_v39  ;;  %8466 = vmatprep.subr.bf16.mxu0 %v9236_v4 }
0x10fa   :  { %8441 = vmatpush3.bf16.msra.mxu1 %v9237_v53  ;;  %8467 = vmatpush3.bf16.msra.mxu0 %v9238_v6 }
0x10fb   :  { %8442 = vmatprep.subr.bf16.mxu1 %v9239_v62  ;;  %5652 = vmatprep.subr.bf16.mxu0 %v9247_v29  ;;  %v9260_v62 = vld [vmem:[%s12630_s3 + $0x190] ss:$152 sps:$4 sm:$0xff]  }
0x10fc   :  { %v9269_v29 = vld [vmem:[%s12630_s3 + $0x198] ss:$152 sps:$4 sm:$0xff]  }
0x10fd   :  { %5440 = vmatmul.mubr.bf16.vlgmr.msra.gmra.mxu0 %v4900_v44  ;;  %v9265_v44 = vld [vmem:[%s12630_s3 + $0x5c] ss:$152 sps:$4 sm:$0xff]  }
0x10fe   :  { %8443 = vmatpush3.bf16.msra.mxu1 %v9240_v3  ;;  %5672 = vmatprep.mubr.bf16.mxu0 %v12674_v19 }
0x10ff   :  { %8444 = vmatprep.subr.bf16.mxu1 %v9241_v7  ;;  %5653 = vmatpush1.bf16.msra.mxu0 %v9245_v56  ;;  %v9268_v7 = vld [vmem:[%s12630_s3 + $0x64] ss:$152 sps:$4 sm:$0xff]   ;;  %v4755_v56 = vld [vmem:[%s12633_s6 + $0xb] sm:$0x1] }
0x1100   :  { %5654 = vmatprep.subr.bf16.mxu0 %v9253_v43  ;;  %v9334_v43 = vld [vmem:[%s12629_s2 + $0x6c4] ss:$8 sps:$4 sm:$0xff]  }
0x1102   :  { %8445 = vmatpush3.bf16.msra.mxu1 %v9242_v50 }
0x1103   :  { %8682 = vmatprep.subr.bf16.mxu1 %v12654_v58  ;;  %5655 = vmatpush1.bf16.msra.mxu0 %v9251_v38  ;;  %v9332_v38 = vld [vmem:[%s12629_s2 + $0x6c0] ss:$8 sps:$4 sm:$0xff]  }
0x1104   :  { %5734 = vmatprep.subr.bf16.mxu0 %v9259_v8  ;;  %v9340_v8 = vld [vmem:[%s12629_s2 + $0x6b4] ss:$8 sps:$4 sm:$0xff]  }
0x1105   :  { %5400 = vmatmul.mubr.bf16.vlgmr.msra.gmra.mxu1 %v4898_v30  ;;  %v9266_v30 = vld [vmem:[%s12630_s3 + $0x60] ss:$152 sps:$4 sm:$0xff]  }
0x1106   :  { %8686 = vmatprep.mubr.msk.bf16.mxu1 %vm9640_vm2, %v12654_v58  ;;  %8683 = vmatpush3.bf16.msra.mxu1 %v9243_v57  ;;  %v9271_v57 = vld [vmem:[%s12630_s3 + $0x19c] ss:$152 sps:$4 sm:$0xff]  }
0x1107   :  { %8684 = vmatprep.subr.bf16.mxu1 %v12654_v58 }
0x110a   :  { %8685 = vmatpush3.bf16.msra.mxu1 %v9244_v34  ;;  %v9274_v34 = vld [vmem:[%s12630_s3 + $0x1a4] ss:$152 sps:$4 sm:$0xff]  }
0x110b   :  { %5693 = vmatprep.subr.bf16.mxu1 %v9250_v63  ;;  %v9272_v63 = vld [vmem:[%s12630_s3 + $0x1a0] ss:$152 sps:$4 sm:$0xff]  }
0x119d   :  { %v8424_v21 = vpop.f32.mrf.mxu0 }
0x119f   :  { %v8425_v41 = vpop.f32.mrf.mxu0 }
0x11a0   :  { %v8426_v35 = vadd.f32 %v8425_v41, %v8424_v21  ;;  %v4756_v21 = vadd.f32 %v4755_v56, %v11786_v54  ;;  %v9277_v41 = vld [vmem:[%s12630_s3 + $0x6c] ss:$152 sps:$4 sm:$0xff]   ;;  %v9275_v54 = vld [vmem:[%s12630_s3 + $0x68] ss:$152 sps:$4 sm:$0xff]   ;;  %v9364_v56 = vld [vmem:[%s12629_s2 + $0x774] ss:$8 sps:$4 sm:$0xff]  }
0x11a1   :  { %v8427_v22 = vpop.f32.mrf.mxu0 }
0x11a2   :  { %v9280_v22 = vld [vmem:[%s12630_s3 + $0x74] ss:$152 sps:$4 sm:$0xff]  }
0x11a3   :  { %v8428_v33 = vpop.f32.mrf.mxu0 }
0x11a4   :  { %v9278_v33 = vld [vmem:[%s12630_s3 + $0x70] ss:$152 sps:$4 sm:$0xff]  }
0x11a5   :  { %v8402_v32 = vpop.f32.mrf.mxu1 }
0x11a7   :  { %v8403_v17 = vpop.f32.mrf.mxu1 }
0x11a8   :  { %v8404_v37 = vadd.f32 %v8403_v17, %v8402_v32  ;;  %v4757_v32 = vmax.f32 %v4756_v21, 0.0  ;;  %v9283_v17 = vld [vmem:[%s12630_s3 + $0x1ac] ss:$152 sps:$4 sm:$0xff]   ;;  %v9361_v21 = vld [vmem:[%s12629_s2 + $0x654] ss:$8 sps:$4 sm:$0xff]  }
0x11a9   :  { %v8405_v45 = vpop.f32.mrf.mxu1 }
0x11aa   :  { %v5322_v0 = vadd.f32 %v8404_v37, %v4902_v52  ;;  %v9286_v45 = vld [vmem:[%s12630_s3 + $0x1b4] ss:$152 sps:$4 sm:$0xff]   ;;  %v9292_v52 = vld [vmem:[%s12630_s3 + $0x84] ss:$152 sps:$4 sm:$0xff]  }
0x11ab   :  { %v8406_v36 = vpop.f32.mrf.mxu1  ;;  %v9289_v37 = vld [vmem:[%s12630_s3 + $0x7c] ss:$152 sps:$4 sm:$0xff]  }
0x11ac   :  { %v5362_v14 = vadd.f32 %v8426_v35, %v5322_v0  ;;  %v9281_v36 = vld [vmem:[%s12630_s3 + $0x1a8] ss:$152 sps:$4 sm:$0xff]   ;;  %v9295_v0 = vld [vmem:[%s12630_s3 + $0x1bc] ss:$152 sps:$4 sm:$0xff]   ;;  %v9293_v35 = vld [vmem:[%s12630_s3 + $0x1b8] ss:$152 sps:$4 sm:$0xff]  }
0x11bd   :  { %v8468_v31 = vpop.f32.mrf.mxu0 }
0x11bf   :  { %v8469_v15 = vpop.f32.mrf.mxu0 }
0x11c0   :  { %v8470_v28 = vadd.f32 %v8469_v15, %v8468_v31  ;;  %v9284_v31 = vld [vmem:[%s12630_s3 + $0x1b0] ss:$152 sps:$4 sm:$0xff]   ;;  %v5865_v15 = vpack.c.bf16 %v4757_v32, %v4757_v32  ;;  %v9376_v32 = vld [vmem:[%s12629_s2 + $0x754] ss:$8 sps:$4 sm:$0xff]  }
0x11c1   :  { %v8471_v49 = vpop.f32.mrf.mxu0 }
0x11c2   :  { %v9287_v49 = vld [vmem:[%s12630_s3 + $0x78] ss:$152 sps:$4 sm:$0xff]  }
0x11c3   :  { %v8472_v16 = vpop.f32.mrf.mxu0 }
0x11c4   :  { %v9290_v16 = vld [vmem:[%s12630_s3 + $0x80] ss:$152 sps:$4 sm:$0xff]  }
0x11c5   :  { %v8446_v18 = vpop.f32.mrf.mxu1 }
0x11c7   :  { %v8447_v61 = vpop.f32.mrf.mxu1 }
0x11c8   :  { %v8448_v48 = vadd.f32 %v8447_v61, %v8446_v18  ;;  %v9298_v18 = vld [vmem:[%s12630_s3 + $0x1c4] ss:$152 sps:$4 sm:$0xff]   ;;  %v9296_v61 = vld [vmem:[%s12630_s3 + $0x1c0] ss:$152 sps:$4 sm:$0xff]  }
0x11c9   :  { %v8449_v9 = vpop.f32.mrf.mxu1 }
0x11ca   :  { %v5402_v1 = vadd.f32 %v8448_v48, %v5362_v14  ;;  %v9301_v14 = vld [vmem:[%s12630_s3 + $0x8c] ss:$152 sps:$4 sm:$0xff]   ;;  %v9299_v9 = vld [vmem:[%s12630_s3 + $0x88] ss:$152 sps:$4 sm:$0xff]  }
0x11cb   :  { %v8450_v26 = vpop.f32.mrf.mxu1  ;;  %v9304_v48 = vld [vmem:[%s12630_s3 + $0x94] ss:$152 sps:$4 sm:$0xff]  }
0x11cc   :  { %v5442_v23 = vadd.f32 %v8470_v28, %v5402_v1  ;;  %v9302_v28 = vld [vmem:[%s12630_s3 + $0x90] ss:$152 sps:$4 sm:$0xff]   ;;  %v9307_v1 = vld [vmem:[%s12629_s2 + $0x5f4] ss:$8 sps:$4 sm:$0xff]  }
0x11cd   :  { %v9316_v26 = vld [vmem:[%s12629_s2 + $0x6f4] ss:$8 sps:$4 sm:$0xff]  }
0x11ce   :  { %v8076_v11 = vmul.f32 -1.442695, %v5442_v23  ;;  %v9305_v23 = vld [vmem:[%s12629_s2 + $0x5f0] ss:$8 sps:$4 sm:$0xff]  }
0x11d0   :  { %9561 = vpow2.f32 %v8076_v11  ;;  %v9314_v11 = vld [vmem:[%s12629_s2 + $0x6f0] ss:$8 sps:$4 sm:$0xff]  }
0x11dd   :  { %v9562_v2 = vpop.eup %9561 }
0x11de   :  { %v5450_v10 = vadd.f32 1.0, %v9562_v2  ;;  %v9310_v2 = vld [vmem:[%s12629_s2 + $0x5e4] ss:$8 sps:$4 sm:$0xff]  }
0x11e0   :  { %9563 = vrcp.f32 %v5450_v10  ;;  %v9322_v10 = vld [vmem:[%s12629_s2 + $0x6e4] ss:$8 sps:$4 sm:$0xff]  }
0x11ed   :  { %v9564_v27 = vpop.eup %9563 }
0x11ee   :  { %v5453_v24 = vmul.f32 %v9564_v27, %v4754_v25  ;;  %v9313_v25 = vld [vmem:[%s12629_s2 + $0x5d4] ss:$8 sps:$4 sm:$0xff]  }
0x11ef   :  { %v9328_v27 = vld [vmem:[%s12629_s2 + $0x6d4] ss:$8 sps:$4 sm:$0xff]  }
0x11f0   :  { %v5458_v46 = vpack.c.bf16 %v5453_v24, %v5453_v24  ;;  %v9311_v24 = vld [vmem:[%s12629_s2 + $0x5d0] ss:$8 sps:$4 sm:$0xff]  }
0x11f2   :  { %8687 = vmatmul.mubr.msk.bf16.vlgmr.msra.gmra.mxu1 %vm4379_vm12, %v5458_v46  ;;  %v9319_v46 = vld [vmem:[%s12629_s2 + $0x5c4] ss:$8 sps:$4 sm:$0xff]  }
0x11f3   :  { %5694 = vmatpush1.bf16.msra.mxu1 %v9248_v12  ;;  %5713 = vmatprep.mubr.bf16.mxu1 %v12674_v19  ;;  %v9326_v12 = vld [vmem:[%s12629_s2 + $0x6d0] ss:$8 sps:$4 sm:$0xff]  }
0x11f4   :  { %5695 = vmatprep.subr.bf16.mxu1 %v9256_v42  ;;  %v9317_v42 = vld [vmem:[%s12629_s2 + $0x5c0] ss:$8 sps:$4 sm:$0xff]  }
0x11f7   :  { %5696 = vmatpush1.bf16.msra.mxu1 %v9254_v20  ;;  %v9325_v20 = vld [vmem:[%s12629_s2 + $0x5b4] ss:$8 sps:$4 sm:$0xff]  }
0x11f8   :  { %5775 = vmatprep.subr.bf16.mxu1 %v9262_v59  ;;  %v9323_v59 = vld [vmem:[%s12629_s2 + $0x5b0] ss:$8 sps:$4 sm:$0xff]  }
0x12b2   :  { %v5509_v55 = vpop.f32.mrf.mxu1 }
0x12b3   :  { %v5510_v39 = vadd.f32 %v5509_v55, %v5459_v40  ;;  %v9338_v40 = vld [vmem:[%s12629_s2 + $0x6b0] ss:$8 sps:$4 sm:$0xff]   ;;  %v9331_v55 = vld [vmem:[%s12629_s2 + $0x5a4] ss:$8 sps:$4 sm:$0xff]  }
0x12b4   :  { %v8688_v4 = vpop.f32.mrf.mxu1 }
0x12b5   :  { %v5515_v53 = vmax.f32 %v5510_v39, 0.0  ;;  %v9346_v39 = vld [vmem:[%s12629_s2 + $0x6a4] ss:$8 sps:$4 sm:$0xff]   ;;  %v9329_v4 = vld [vmem:[%s12629_s2 + $0x5a0] ss:$8 sps:$4 sm:$0xff]  }
0x12b6   :  { %v5512_v6 = vpop.f32.mrf.mxu1 }
0x12b7   :  { %v5536_v3 = vpack.c.bf16 %v5515_v53, %v5515_v53  ;;  %v9344_v53 = vld [vmem:[%s12629_s2 + $0x6a0] ss:$8 sps:$4 sm:$0xff]   ;;  %v9337_v6 = vld [vmem:[%s12629_s2 + $0x594] ss:$8 sps:$4 sm:$0xff]  }
0x12b8   :  { %v8689_v50 = vpop.f32.mrf.mxu1 }
0x12b9   :  { %8100 = vmatmul.mubr.msk.bf16.vlgmr.msra.gmra.mxu0 %vm4379_vm12, %v5536_v3  ;;  %8101 = vmatmul.mubr.msk.bf16.vlgmr.msra.gmra.mxu1 %vm4379_vm12, %v5536_v3  ;;  %v9341_v50 = vld [vmem:[%s12629_s2 + $0x580] ss:$8 sps:$4 sm:$0xff]  }
0x12ba   :  { %5735 = vmatpush1.bf16.msra.mxu0 %v9257_v51  ;;  %5776 = vmatpush1.bf16.msra.mxu1 %v9260_v62  ;;  %v9352_v51 = vld [vmem:[%s12629_s2 + $0x694] ss:$8 sps:$4 sm:$0xff]   ;;  %v9335_v62 = vld [vmem:[%s12629_s2 + $0x590] ss:$8 sps:$4 sm:$0xff]  }
0x12bb   :  { %5736 = vmatprep.subr.bf16.mxu0 %v9265_v44  ;;  %5777 = vmatprep.subr.bf16.mxu1 %v9268_v7  ;;  %v9343_v44 = vld [vmem:[%s12629_s2 + $0x584] ss:$8 sps:$4 sm:$0xff]  }
0x12bc   :  { %5754 = vmatprep.mubr.bf16.mxu0 %v12674_v19  ;;  %5795 = vmatprep.mubr.bf16.mxu1 %v12674_v19  ;;  %v9358_v7 = vld [vmem:[%s12629_s2 + $0x684] ss:$8 sps:$4 sm:$0xff]  }
0x12be   :  { %5737 = vmatpush1.bf16.msra.mxu0 %v9263_v5  ;;  %5778 = vmatpush1.bf16.msra.mxu1 %v9266_v30  ;;  %v9356_v5 = vld [vmem:[%s12629_s2 + $0x680] ss:$8 sps:$4 sm:$0xff]   ;;  %v9349_v30 = vld [vmem:[%s12629_s2 + $0x674] ss:$8 sps:$4 sm:$0xff]  }
0x12bf   :  { %5816 = vmatprep.subr.bf16.mxu0 %v9271_v57  ;;  %5981 = vmatprep.subr.bf16.mxu1 %v9274_v34  ;;  %v9347_v57 = vld [vmem:[%s12629_s2 + $0x670] ss:$8 sps:$4 sm:$0xff]   ;;  %v9355_v34 = vld [vmem:[%s12629_s2 + $0x664] ss:$8 sps:$4 sm:$0xff]  }
0x12c1   :  { %8102 = vmatmul.mubr.msk.bf16.vlgmr.msra.gmra.mxu0 %vm4379_vm12, %v5536_v3  ;;  %8103 = vmatmul.mubr.msk.bf16.vlgmr.msra.gmra.mxu1 %vm4379_vm12, %v5536_v3 }
0x12c2   :  { %5817 = vmatpush1.bf16.msra.mxu0 %v9269_v29  ;;  %5982 = vmatpush1.bf16.msra.mxu1 %v9272_v63  ;;  %v9362_v29 = vld [vmem:[%s12629_s2 + $0x770] ss:$8 sps:$4 sm:$0xff]   ;;  %v9353_v63 = vld [vmem:[%s12629_s2 + $0x660] ss:$8 sps:$4 sm:$0xff]  }
0x12c3   :  { %5818 = vmatprep.subr.bf16.mxu0 %v9277_v41  ;;  %5983 = vmatprep.subr.bf16.mxu1 %v9280_v22  ;;  %v9370_v41 = vld [vmem:[%s12629_s2 + $0x764] ss:$8 sps:$4 sm:$0xff]   ;;  %v9368_v22 = vld [vmem:[%s12629_s2 + $0x760] ss:$8 sps:$4 sm:$0xff]  }
0x12c4   :  { %5836 = vmatprep.mubr.bf16.mxu0 %v12674_v19  ;;  %6001 = vmatprep.mubr.bf16.mxu1 %v12674_v19 }
0x12c6   :  { %5819 = vmatpush1.bf16.msra.mxu0 %v9275_v54  ;;  %5984 = vmatpush1.bf16.msra.mxu1 %v9278_v33  ;;  %v9359_v54 = vld [vmem:[%s12629_s2 + $0x650] ss:$8 sps:$4 sm:$0xff]   ;;  %v9367_v33 = vld [vmem:[%s12629_s2 + $0x644] ss:$8 sps:$4 sm:$0xff]  }
0x12c7   :  { %6022 = vmatprep.subr.bf16.mxu0 %v9283_v17  ;;  %6063 = vmatprep.subr.bf16.mxu1 %v9286_v45  ;;  %v9374_v17 = vld [vmem:[%s12629_s2 + $0x750] ss:$8 sps:$4 sm:$0xff]   ;;  %v9365_v45 = vld [vmem:[%s12629_s2 + $0x640] ss:$8 sps:$4 sm:$0xff]  }
0x12c9   :  { %8104 = vmatmul.mubr.msk.bf16.vlgmr.msra.gmra.mxu0 %vm4379_vm12, %v5536_v3  ;;  %8125 = vmatmul.mubr.msk.bf16.vlgmr.msra.gmra.mxu1 %vm4379_vm12, %v5865_v15  ;;  %v9350_v3 = vld [vmem:[%s12629_s2 + $0x690] ss:$8 sps:$4 sm:$0xff]  }
0x12ca   :  { %6023 = vmatpush1.bf16.msra.mxu0 %v9281_v36  ;;  %6064 = vmatpush1.bf16.msra.mxu1 %v9284_v31  ;;  %v9373_v36 = vld [vmem:[%s12629_s2 + $0x634] ss:$8 sps:$4 sm:$0xff]   ;;  %v9382_v31 = vld [vmem:[%s12629_s2 + $0x744] ss:$8 sps:$4 sm:$0xff]  }
0x12cb   :  { %6024 = vmatprep.subr.bf16.mxu0 %v9289_v37  ;;  %6065 = vmatprep.subr.bf16.mxu1 %v9292_v52  ;;  %v9371_v37 = vld [vmem:[%s12629_s2 + $0x630] ss:$8 sps:$4 sm:$0xff]   ;;  %v9379_v52 = vld [vmem:[%s12629_s2 + $0x624] ss:$8 sps:$4 sm:$0xff]  }
0x12cc   :  { %6042 = vmatprep.mubr.bf16.mxu0 %v12674_v19  ;;  %6083 = vmatprep.mubr.bf16.mxu1 %v12674_v19 }
0x12ce   :  { %6025 = vmatpush1.bf16.msra.mxu0 %v9287_v49  ;;  %6066 = vmatpush1.bf16.msra.mxu1 %v9290_v16  ;;  %v9388_v49 = vld [vmem:[%s12629_s2 + $0x734] ss:$8 sps:$4 sm:$0xff]   ;;  %v9386_v16 = vld [vmem:[%s12629_s2 + $0x730] ss:$8 sps:$4 sm:$0xff]  }
0x12cf   :  { %6104 = vmatprep.subr.bf16.mxu0 %v9295_v0  ;;  %6145 = vmatprep.subr.bf16.mxu1 %v9298_v18  ;;  %v9377_v0 = vld [vmem:[%s12629_s2 + $0x620] ss:$8 sps:$4 sm:$0xff]   ;;  %v9385_v18 = vld [vmem:[%s12629_s2 + $0x614] ss:$8 sps:$4 sm:$0xff]  }
0x12d1   :  { %8126 = vmatmul.mubr.msk.bf16.vlgmr.msra.gmra.mxu0 %vm4379_vm12, %v5865_v15  ;;  %8127 = vmatmul.mubr.msk.bf16.vlgmr.msra.gmra.mxu1 %vm4379_vm12, %v5865_v15 }
0x12d2   :  { %6105 = vmatpush1.bf16.msra.mxu0 %v9293_v35  ;;  %6146 = vmatpush1.bf16.msra.mxu1 %v9296_v61  ;;  %v9394_v35 = vld [vmem:[%s12629_s2 + $0x724] ss:$8 sps:$4 sm:$0xff]   ;;  %v9392_v61 = vld [vmem:[%s12629_s2 + $0x720] ss:$8 sps:$4 sm:$0xff]  }
0x12d3   :  { %6106 = vmatprep.subr.bf16.mxu0 %v9301_v14  ;;  %6147 = vmatprep.subr.bf16.mxu1 %v9304_v48  ;;  %v9383_v14 = vld [vmem:[%s12629_s2 + $0x610] ss:$8 sps:$4 sm:$0xff]   ;;  %v9391_v48 = vld [vmem:[%s12629_s2 + $0x604] ss:$8 sps:$4 sm:$0xff]  }
0x12d4   :  { %6124 = vmatprep.mubr.bf16.mxu0 %v12674_v19  ;;  %6165 = vmatprep.mubr.bf16.mxu1 %v12674_v19 }
0x12d6   :  { %6107 = vmatpush1.bf16.msra.mxu0 %v9299_v9  ;;  %6148 = vmatpush1.bf16.msra.mxu1 %v9302_v28  ;;  %v9397_v9 = vld [vmem:[%s12629_s2 + $0x714] ss:$8 sps:$4 sm:$0xff]   ;;  %v9395_v28 = vld [vmem:[%s12629_s2 + $0x710] ss:$8 sps:$4 sm:$0xff]  }
0x12d7   :  { %7155 = vmatprep.subr.bf16.mxu0 %v9307_v1  ;;  %7196 = vmatprep.subr.bf16.mxu1 %v9316_v26  ;;  %v9389_v1 = vld [vmem:[%s12629_s2 + $0x600] ss:$8 sps:$4 sm:$0xff]   ;;  %v9400_v26 = vld [vmem:[%s12629_s2 + $0x7f4] ss:$8 sps:$4 sm:$0xff]  }
0x12d9   :  { %8128 = vmatmul.mubr.msk.bf16.vlgmr.msra.gmra.mxu0 %vm4379_vm12, %v5865_v15  ;;  %8129 = vmatmul.mubr.msk.bf16.vlgmr.msra.gmra.mxu1 %vm4379_vm12, %v5865_v15  ;;  %v9380_v15 = vld [vmem:[%s12629_s2 + $0x740] ss:$8 sps:$4 sm:$0xff]  }
0x12da   :  { %7156 = vmatpush1.bf16.msra.mxu0 %v9305_v23  ;;  %7197 = vmatpush1.bf16.msra.mxu1 %v9314_v11  ;;  %v9403_v23 = vld [vmem:[%s12629_s2 + $0x704] ss:$8 sps:$4 sm:$0xff]   ;;  %v9401_v11 = vld [vmem:[%s12629_s2 + $0x700] ss:$8 sps:$4 sm:$0xff]  }
0x12db   :  { %7157 = vmatprep.subr.bf16.mxu0 %v9310_v2  ;;  %7198 = vmatprep.subr.bf16.mxu1 %v9322_v10  ;;  %v9412_v2 = vld [vmem:[%s12629_s2 + $0x8f4] ss:$8 sps:$4 sm:$0xff]  }
0x12de   :  { %7158 = vmatpush1.bf16.msra.mxu0 %v9308_v60  ;;  %7199 = vmatpush1.bf16.msra.mxu1 %v9320_v13  ;;  %v6196_v13 = vsub.s32 4, %v12669_v47 }
0x12df   :  { %7159 = vmatprep.subr.bf16.mxu0 %v9313_v25  ;;  %7200 = vmatprep.subr.bf16.mxu1 %v9328_v27  ;;  %v6204_v25 = vsub.s32 6, %v12669_v47 }
0x12e2   :  { %7160 = vmatpush1.bf16.msra.mxu0 %v9311_v24  ;;  %7201 = vmatpush1.bf16.msra.mxu1 %v9326_v12  ;;  %v12255_v12 = vld [vmem:[%s12633_s6 + $0x10] sm:$0xff] }
0x12e3   :  { %7161 = vmatprep.subr.bf16.mxu0 %v9319_v46  ;;  %7202 = vmatprep.subr.bf16.mxu1 %v9334_v43 }
0x12e6   :  { %7162 = vmatpush1.bf16.msra.mxu0 %v9317_v42  ;;  %7203 = vmatpush1.bf16.msra.mxu1 %v9332_v38  ;;  %v6197_v42 = vrot.slane %v12255_v12, %v6196_v13  ;;  %v6205_v38 = vrot.slane %v12255_v12, %v6204_v25 }
0x12e7   :  { %7163 = vmatprep.subr.bf16.mxu0 %v9325_v20  ;;  %7204 = vmatprep.subr.bf16.mxu1 %v9340_v8 }
0x12ea   :  { %7164 = vmatpush1.bf16.msra.mxu0 %v9323_v59  ;;  %7205 = vmatpush1.bf16.msra.mxu1 %v9338_v40 }
0x12eb   :  { %7165 = vmatprep.subr.bf16.mxu0 %v9331_v55  ;;  %7206 = vmatprep.subr.bf16.mxu1 %v9346_v39 }
0x12ee   :  { %7166 = vmatpush1.bf16.msra.mxu0 %v9329_v4  ;;  %7207 = vmatpush1.bf16.msra.mxu1 %v9344_v53  ;;  %v12264_v4 = vsub.s32 0, %v12669_v47 }
0x12ef   :  { %7167 = vmatprep.subr.bf16.mxu0 %v9337_v6  ;;  %7208 = vmatprep.subr.bf16.mxu1 %v9352_v51  ;;  %v12271_v51 = vld [vmem:[%s12633_s6 + $0x19] sm:$0xff] }
0x12f2   :  { %7168 = vmatpush1.bf16.msra.mxu0 %v9335_v62  ;;  %7209 = vmatpush1.bf16.msra.mxu1 %v9350_v3  ;;  %v12274_v62 = vsub.s32 1, %v12669_v47 }
0x12f3   :  { %7169 = vmatprep.subr.bf16.mxu0 %v9343_v44  ;;  %7210 = vmatprep.subr.bf16.mxu1 %v9358_v7  ;;  %v6239_v7 = vrot.slane %v12271_v51, %v12264_v4 }
0x12f6   :  { %7170 = vmatpush1.bf16.msra.mxu0 %v9341_v50  ;;  %7211 = vmatpush1.bf16.msra.mxu1 %v9356_v5  ;;  %v6181_v50 = vrot.slane %v12255_v12, %v12264_v4 }
0x12f7   :  { %7171 = vmatprep.subr.bf16.mxu0 %v9349_v30  ;;  %7212 = vmatprep.subr.bf16.mxu1 %v9364_v56 }
0x12fa   :  { %7172 = vmatpush2.bf16.msra.mxu0 %v9347_v57  ;;  %7213 = vmatpush2.bf16.msra.mxu1 %v9362_v29  ;;  %v6185_v57 = vrot.slane %v12255_v12, %v12274_v62 }
0x12fb   :  { %7173 = vmatprep.subr.bf16.mxu0 %v9355_v34  ;;  %7214 = vmatprep.subr.bf16.mxu1 %v9370_v41  ;;  %v6243_v34 = vrot.slane %v12271_v51, %v12274_v62  ;;  %v6188_v41 = vsub.s32 2, %v12669_v47 }
0x12fe   :  { %7174 = vmatpush2.bf16.msra.mxu0 %v9353_v63  ;;  %7215 = vmatpush2.bf16.msra.mxu1 %v9368_v22  ;;  %v6192_v22 = vsub.s32 3, %v12669_v47 }
0x12ff   :  { %7175 = vmatprep.subr.bf16.mxu0 %v9361_v21  ;;  %7216 = vmatprep.subr.bf16.mxu1 %v9376_v32 }
0x1302   :  { %7176 = vmatpush2.bf16.msra.mxu0 %v9359_v54  ;;  %7217 = vmatpush2.bf16.msra.mxu1 %v9374_v17  ;;  %v6200_v17 = vsub.s32 5, %v12669_v47 }
0x1303   :  { %7177 = vmatprep.subr.bf16.mxu0 %v9367_v33  ;;  %7218 = vmatprep.subr.bf16.mxu1 %v9382_v31 }
0x1306   :  { %7178 = vmatpush2.bf16.msra.mxu0 %v9365_v45  ;;  %7219 = vmatpush2.bf16.msra.mxu1 %v9380_v15 }
0x1307   :  { %7179 = vmatprep.subr.bf16.mxu0 %v9373_v36  ;;  %7220 = vmatprep.subr.bf16.mxu1 %v9388_v49  ;;  %v6255_v49 = vrot.slane %v12271_v51, %v6196_v13 }
0x130a   :  { %7180 = vmatpush2.bf16.msra.mxu0 %v9371_v37  ;;  %7221 = vmatpush2.bf16.msra.mxu1 %v9386_v16  ;;  %v6189_v16 = vrot.slane %v12255_v12, %v6188_v41 }
0x130b   :  { %7181 = vmatprep.subr.bf16.mxu0 %v9379_v52  ;;  %7222 = vmatprep.subr.bf16.mxu1 %v9394_v35  ;;  %v6247_v52 = vrot.slane %v12271_v51, %v6188_v41 }
0x130e   :  { %7182 = vmatpush2.bf16.msra.mxu0 %v9377_v0  ;;  %7223 = vmatpush2.bf16.msra.mxu1 %v9392_v61  ;;  %v6193_v0 = vrot.slane %v12255_v12, %v6192_v22  ;;  %v6201_v61 = vrot.slane %v12255_v12, %v6200_v17 }
0x130f   :  { %7183 = vmatprep.subr.bf16.mxu0 %v9385_v18  ;;  %7224 = vmatprep.subr.bf16.mxu1 %v9397_v9  ;;  %v6251_v9 = vrot.slane %v12271_v51, %v6192_v22 }
0x1312   :  { %7184 = vmatpush2.bf16.msra.mxu0 %v9383_v14  ;;  %7225 = vmatpush2.bf16.msra.mxu1 %v9395_v28  ;;  %v6259_v28 = vrot.slane %v12271_v51, %v6200_v17 }
0x1313   :  { %7185 = vmatprep.subr.bf16.mxu0 %v9391_v48  ;;  %7226 = vmatprep.subr.bf16.mxu1 %v9403_v23  ;;  %v9398_v48 = vld [vmem:[%s12629_s2 + $0x7f0] ss:$8 sps:$4 sm:$0xff]  }
0x1316   :  { %7186 = vmatpush2.bf16.msra.mxu0 %v9389_v1  ;;  %7227 = vmatpush2.bf16.msra.mxu1 %v9401_v11  ;;  %v9406_v11 = vld [vmem:[%s12629_s2 + $0x7e4] ss:$8 sps:$4 sm:$0xff]  }
0x1317   :  { %7237 = vmatprep.subr.bf16.mxu0 %v9400_v26  ;;  %7278 = vmatprep.subr.bf16.mxu1 %v9412_v2 }
0x1379   :  { %v5674_v10 = vpop.f32.mrf.mxu0  ;;  %v5715_v60 = vpop.f32.mrf.mxu1 }
0x137a   :  { %v6223_v21 = vadd.f32 %v6181_v50, %v5674_v10  ;;  %v6225_v13 = vadd.f32 %v6189_v16, %v5715_v60  ;;  %v9409_v60 = vld [vmem:[%s12629_s2 + $0x7d4] ss:$8 sps:$4 sm:$0xff]  }
0x137b   :  { %v5676_v27 = vpop.f32.mrf.mxu0  ;;  %v5717_v24 = vpop.f32.mrf.mxu1 }
0x137c   :  { %v6224_v32 = vadd.f32 %v6185_v57, %v5676_v27  ;;  %v6226_v27 = vadd.f32 %v6193_v0, %v5717_v24 }
0x137d   :  { %v5678_v46 = vpop.f32.mrf.mxu0  ;;  %v5719_v43 = vpop.f32.mrf.mxu1 }
0x137e   :  { %v6208_v46 = vsub.s32 7, %v12669_v47  ;;  %v9407_v47 = vld [vmem:[%s12629_s2 + $0x7d0] ss:$8 sps:$4 sm:$0xff]  }
0x137f   :  { %v5679_v20 = vpop.f32.mrf.mxu0  ;;  %v5720_v8 = vpop.f32.mrf.mxu1 }
0x1381   :  { %v5756_v59 = vpop.f32.mrf.mxu0  ;;  %v5797_v40 = vpop.f32.mrf.mxu1 }
0x1382   :  { %v6227_v55 = vadd.f32 %v6197_v42, %v5756_v59  ;;  %v12261_v39 = vadd.f32 %v6205_v38, %v5797_v40  ;;  %v9404_v40 = vld [vmem:[%s12629_s2 + $0x7e0] ss:$8 sps:$4 sm:$0xff]  }
0x1383   :  { %v5758_v53 = vpop.f32.mrf.mxu0  ;;  %v12266_v6 = vpop.f32.mrf.mxu1 }
0x1384   :  { %v6228_v38 = vadd.f32 %v6201_v61, %v5758_v53  ;;  %v6209_v53 = vrot.slane %v12255_v12, %v6208_v46  ;;  %v6267_v12 = vrot.slane %v12271_v51, %v6208_v46  ;;  %v9439_v46 = vld [vmem:[%s12629_s2 + $0x784] ss:$8 sps:$4 sm:$0xff]  }
0x1385   :  { %v5760_v3 = vpop.f32.mrf.mxu0  ;;  %v5801_v44 = vpop.f32.mrf.mxu1 }
0x1387   :  { %v5761_v5 = vpop.f32.mrf.mxu0  ;;  %v5802_v30 = vpop.f32.mrf.mxu1 }
0x1388   :  { %v8130_v5 = vld [vmem:[%s12633_s6 + $0x18] ss:$0 sm:$0xff] }
0x1389   :  { %v12284_v56 = vpop.f32.mrf.mxu0  ;;  %v6003_v29 = vpop.f32.mrf.mxu1 }
0x138a   :  { %v6281_v63 = vadd.f32 %v6239_v7, %v6003_v29  ;;  %v6231_v17 = vadd.f32 %v8130_v5, %v12284_v56  ;;  %v9413_v56 = vld [vmem:[%s12629_s2 + $0x7c0] ss:$8 sps:$4 sm:$0xff]   ;;  %v9458_v5 = vld [vmem:[%s12629_s2 + $0x970] ss:$8 sps:$4 sm:$0xff]  }
0x138b   :  { %v12288_v54 = vpop.f32.mrf.mxu0  ;;  %v6005_v33 = vpop.f32.mrf.mxu1 }
0x138c   :  { %v6282_v45 = vadd.f32 %v6243_v34, %v6005_v33  ;;  %v6290_v36 = vmul.f32 %v6281_v63, %v6223_v21  ;;  %v8131_v34 = vld [vmem:[%s12633_s6 + $0x21] ss:$0 sm:$0xff]  ;;  %v9415_v33 = vld [vmem:[%s12629_s2 + $0x7c4] ss:$8 sps:$4 sm:$0xff]  }
0x138d   :  { %v5842_v31 = vpop.f32.mrf.mxu0  ;;  %v6007_v15 = vpop.f32.mrf.mxu1 }
0x138e   :  { %v6291_v37 = vmul.f32 %v6282_v45, %v6224_v32  ;;  %v6436_v1 = vpack.c.bf16 %v6290_v36, %v6290_v36  ;;  %v9418_v32 = vld [vmem:[%s12629_s2 + $0x8e4] ss:$8 sps:$4 sm:$0xff]  }
0x138f   :  { %v5843_v18 = vpop.f32.mrf.mxu0  ;;  %v6008_v35 = vpop.f32.mrf.mxu1 }
0x1390   :  { %v6437_v14 = vpack.c.bf16 %v6291_v37, %v6291_v37  ;;  %v9424_v18 = vld [vmem:[%s12629_s2 + $0x8d4] ss:$8 sps:$4 sm:$0xff]  }
0x1391   :  { %v6044_v26 = vpop.f32.mrf.mxu0  ;;  %v6085_v23 = vpop.f32.mrf.mxu1 }
0x1392   :  { %v6283_v2 = vadd.f32 %v6247_v52, %v6044_v26  ;;  %v6285_v10 = vadd.f32 %v6255_v49, %v6085_v23  ;;  %7187 = vmatprep.mubr.bf16.mxu0 %v6437_v14  ;;  %v9430_v26 = vld [vmem:[%s12629_s2 + $0x8c4] ss:$8 sps:$4 sm:$0xff]   ;;  %v9425_v23 = vld [vmem:[%s12629_s2 + $0x7a0] ss:$8 sps:$4 sm:$0xff]  }
0x1393   :  { %v6046_v43 = vpop.f32.mrf.mxu0  ;;  %v6087_v42 = vpop.f32.mrf.mxu1  ;;  %7188 = vmatmul.mubr.bf16.vlgmr.msra.gmra.mxu0 %v6436_v1  ;;  %v9427_v1 = vld [vmem:[%s12629_s2 + $0x7a4] ss:$8 sps:$4 sm:$0xff]  }
0x1394   :  { %v12305_v20 = vmul.f32 %v6285_v10, %v6227_v55  ;;  %v6284_v8 = vadd.f32 %v6251_v9, %v6046_v43  ;;  %v6286_v59 = vadd.f32 %v6259_v28, %v6087_v42  ;;  %7238 = vmatpush1.bf16.msra.mxu0 %v9398_v48  ;;  %v6292_v3 = vmul.f32 %v6283_v2, %v6225_v13  ;;  %v9419_v9 = vld [vmem:[%s12629_s2 + $0x7b0] ss:$8 sps:$4 sm:$0xff]   ;;  %v9433_v2 = vld [vmem:[%s12629_s2 + $0x794] ss:$8 sps:$4 sm:$0xff]   ;;  %v9442_v43 = vld [vmem:[%s12629_s2 + $0x8a4] ss:$8 sps:$4 sm:$0xff]  }
0x1395   :  { %v6048_v44 = vpop.f32.mrf.mxu0  ;;  %v6089_v7 = vpop.f32.mrf.mxu1  ;;  %7239 = vmatprep.subr.bf16.mxu0 %v9406_v11  ;;  %v6263_v55 = vrot.slane %v12271_v51, %v6204_v25  ;;  %v9410_v25 = vld [vmem:[%s12629_s2 + $0x8f0] ss:$8 sps:$4 sm:$0xff]   ;;  %v6230_v51 = vadd.f32 %v6209_v53, %v12266_v6  ;;  %v9416_v6 = vld [vmem:[%s12629_s2 + $0x8e0] ss:$8 sps:$4 sm:$0xff]   ;;  %v9436_v10 = vld [vmem:[%s12629_s2 + $0x8b4] ss:$8 sps:$4 sm:$0xff]  }
0x1396   :  { %v6293_v24 = vmul.f32 %v6284_v8, %v6226_v27  ;;  %v6295_v50 = vmul.f32 %v6286_v59, %v6228_v38  ;;  %v6438_v21 = vpack.c.bf16 %v6292_v3, %v6292_v3  ;;  %v9422_v28 = vld [vmem:[%s12629_s2 + $0x8d0] ss:$8 sps:$4 sm:$0xff]   ;;  %v9428_v11 = vld [vmem:[%s12629_s2 + $0x8c0] ss:$8 sps:$4 sm:$0xff]   ;;  %v9445_v8 = vld [vmem:[%s12629_s2 + $0x874] ss:$8 sps:$4 sm:$0xff]  }
0x1397   :  { %v6049_v30 = vpop.f32.mrf.mxu0  ;;  %v6090_v57 = vpop.f32.mrf.mxu1  ;;  %v9431_v13 = vld [vmem:[%s12629_s2 + $0x790] ss:$8 sps:$4 sm:$0xff]   ;;  %v9437_v42 = vld [vmem:[%s12629_s2 + $0x780] ss:$8 sps:$4 sm:$0xff]   ;;  %v9448_v59 = vld [vmem:[%s12629_s2 + $0x894] ss:$8 sps:$4 sm:$0xff]  }
0x1398   :  { %v6439_v29 = vpack.c.bf16 %v6293_v24, %v6293_v24  ;;  %v6441_v63 = vpack.c.bf16 %v6295_v50, %v6295_v50  ;;  %7240 = vmatpush1.bf16.msra.mxu0 %v9404_v40  ;;  %v9434_v27 = vld [vmem:[%s12629_s2 + $0x8b0] ss:$8 sps:$4 sm:$0xff]   ;;  %v9440_v38 = vld [vmem:[%s12629_s2 + $0x8a0] ss:$8 sps:$4 sm:$0xff]   ;;  %v9451_v44 = vld [vmem:[%s12629_s2 + $0x864] ss:$8 sps:$4 sm:$0xff]  }
0x1399   :  { %v6126_v41 = vpop.f32.mrf.mxu0  ;;  %v6167_v22 = vpop.f32.mrf.mxu1  ;;  %7241 = vmatprep.subr.bf16.mxu0 %v9409_v60  ;;  %v9443_v40 = vld [vmem:[%s12629_s2 + $0x870] ss:$8 sps:$4 sm:$0xff]   ;;  %v9454_v7 = vld [vmem:[%s12629_s2 + $0x884] ss:$8 sps:$4 sm:$0xff]   ;;  %v9449_v60 = vld [vmem:[%s12629_s2 + $0x860] ss:$8 sps:$4 sm:$0xff]  }
0x139a   :  { %v6287_v45 = vadd.f32 %v6263_v55, %v6126_v41  ;;  %v6289_v36 = vadd.f32 %v8131_v34, %v6167_v22  ;;  %7228 = vmatprep.mubr.bf16.mxu1 %v6439_v29  ;;  %7269 = vmatprep.mubr.bf16.mxu0 %v6441_v63  ;;  %v9446_v3 = vld [vmem:[%s12629_s2 + $0x890] ss:$8 sps:$4 sm:$0xff]   ;;  %v9452_v24 = vld [vmem:[%s12629_s2 + $0x880] ss:$8 sps:$4 sm:$0xff]   ;;  %v9457_v50 = vld [vmem:[%s12629_s2 + $0x854] ss:$8 sps:$4 sm:$0xff]  }
0x139b   :  { %v6128_v31 = vpop.f32.mrf.mxu0  ;;  %v12338_v15 = vpop.f32.mrf.mxu1  ;;  %7229 = vmatmul.mubr.bf16.vlgmr.msra.gmra.mxu1 %v6438_v21  ;;  %v9460_v55 = vld [vmem:[%s12629_s2 + $0x974] ss:$8 sps:$4 sm:$0xff]   ;;  %v9455_v53 = vld [vmem:[%s12629_s2 + $0x850] ss:$8 sps:$4 sm:$0xff]   ;;  %v9463_v30 = vld [vmem:[%s12629_s2 + $0x844] ss:$8 sps:$4 sm:$0xff]  }
0x139c   :  { %v12341_v37 = vmul.f32 %v6287_v45, %v12261_v39  ;;  %v12343_v52 = vmul.f32 %v6289_v36, %v6231_v17  ;;  %v6288_v49 = vadd.f32 %v6267_v12, %v6128_v31  ;;  %7242 = vmatpush1.bf16.msra.mxu0 %v9407_v47  ;;  %7279 = vmatpush1.bf16.msra.mxu1 %v9410_v25  ;;  %v9421_v39 = vld [vmem:[%s12629_s2 + $0x7b4] ss:$8 sps:$4 sm:$0xff]   ;;  %v9466_v57 = vld [vmem:[%s12629_s2 + $0x964] ss:$8 sps:$4 sm:$0xff]   ;;  %v9461_v34 = vld [vmem:[%s12629_s2 + $0x840] ss:$8 sps:$4 sm:$0xff]  }
0x139d   :  { %v6130_v16 = vpop.f32.mrf.mxu0  ;;  %v6171_v0 = vpop.f32.mrf.mxu1  ;;  %7243 = vmatprep.subr.bf16.mxu0 %v9415_v33  ;;  %7280 = vmatprep.subr.bf16.mxu1 %v9418_v32  ;;  %v9464_v29 = vld [vmem:[%s12629_s2 + $0x960] ss:$8 sps:$4 sm:$0xff]   ;;  %v9469_v63 = vld [vmem:[%s12629_s2 + $0x834] ss:$8 sps:$4 sm:$0xff]   ;;  %v9467_v25 = vld [vmem:[%s12629_s2 + $0x830] ss:$8 sps:$4 sm:$0xff]  }
0x139e   :  { %v6297_v35 = vmul.f32 %v6288_v49, %v6230_v51  ;;  %v9472_v47 = vld [vmem:[%s12629_s2 + $0x954] ss:$8 sps:$4 sm:$0xff]   ;;  %v9470_v12 = vld [vmem:[%s12629_s2 + $0x950] ss:$8 sps:$4 sm:$0xff]   ;;  %v9475_v21 = vld [vmem:[%s12629_s2 + $0x824] ss:$8 sps:$4 sm:$0xff]  }
0x139f   :  { %v6131_v61 = vpop.f32.mrf.mxu0  ;;  %v6172_v14 = vpop.f32.mrf.mxu1  ;;  %v9478_v41 = vld [vmem:[%s12629_s2 + $0x944] ss:$8 sps:$4 sm:$0xff]   ;;  %v9473_v22 = vld [vmem:[%s12629_s2 + $0x820] ss:$8 sps:$4 sm:$0xff]   ;;  %v9481_v32 = vld [vmem:[%s12629_s2 + $0x814] ss:$8 sps:$4 sm:$0xff]  }
0x13a0   :  { %v6443_v48 = vpack.c.bf16 %v6297_v35, %v6297_v35  ;;  %7244 = vmatpush1.bf16.msra.mxu0 %v9413_v56  ;;  %7281 = vmatpush1.bf16.msra.mxu1 %v9416_v6  ;;  %v9476_v33 = vld [vmem:[%s12629_s2 + $0x940] ss:$8 sps:$4 sm:$0xff]   ;;  %v9484_v17 = vld [vmem:[%s12629_s2 + $0x934] ss:$8 sps:$4 sm:$0xff]   ;;  %v9479_v36 = vld [vmem:[%s12629_s2 + $0x810] ss:$8 sps:$4 sm:$0xff]  }
0x13a1   :  { %7245 = vmatprep.subr.bf16.mxu0 %v9421_v39  ;;  %7282 = vmatprep.subr.bf16.mxu1 %v9424_v18  ;;  %v6435_v45 = vld [vmem:[%s12629_s2 + $0x9c0] sm:$0x11]  ;;  %v9482_v51 = vld [vmem:[%s12629_s2 + $0x930] ss:$8 sps:$4 sm:$0xff]   ;;  %v7148_v6 = vsel %vm7146_vm13, 65535, %v12674_v19 }
0x13a2   :  { %7310 = vmatprep.mubr.bf16.mxu1 %v6443_v48  ;;  %v9487_v31 = vld [vmem:[%s12629_s2 + $0x804] ss:$8 sps:$4 sm:$0xff]   ;;  %v8269_v56 = vcombine.high %v6435_v45, %v6435_v45  ;;  %v9485_v16 = vld [vmem:[%s12629_s2 + $0x800] ss:$8 sps:$4 sm:$0xff]   ;;  %v8268_v39 = vcombine.low %v6435_v45, %v6435_v45  ;;  %v9493_v18 = vld [vmem:[%s12629_s2 + $0x914] ss:$8 sps:$4 sm:$0xff]   ;;  %v6440_v48 = vpack.c.bf16 %v12305_v20, %v12305_v20 }
0x13a3   :  { %v9490_v49 = vld [vmem:[%s12629_s2 + $0x924] ss:$8 sps:$4 sm:$0xff]   ;;  %v9488_v0 = vld [vmem:[%s12629_s2 + $0x920] ss:$8 sps:$4 sm:$0xff]   ;;  %v9491_v61 = vld [vmem:[%s12629_s2 + $0x910] ss:$8 sps:$4 sm:$0xff]  }
0x13a4   :  { %7246 = vmatpush1.bf16.msra.mxu0 %v9419_v9  ;;  %7283 = vmatpush1.bf16.msra.mxu1 %v9422_v28  ;;  %v7153_v35 = vand.u32 %v8269_v56, %v7148_v6  ;;  %v7150_v14 = vand.u32 %v8268_v39, %v7148_v6  ;;  %v9498_v9 = vld [vmem:[%s12629_s2 + $0x904] ss:$8 sps:$4 sm:$0xff]   ;;  %v9501_v28 = vld [vmem:[%s12629_s2 + $0x9b4] ss:$8 sps:$4 sm:$0xff]   ;;  %v9499_v20 = vld [vmem:[%s12629_s2 + $0x9b0] ss:$8 sps:$4 sm:$0xff]  }
0x13a5   :  { %7247 = vmatprep.subr.bf16.mxu0 %v9427_v1  ;;  %7284 = vmatprep.subr.bf16.mxu1 %v9430_v26  ;;  %v9496_v1 = vld [vmem:[%s12629_s2 + $0x900] ss:$8 sps:$4 sm:$0xff]   ;;  %v9504_v26 = vld [vmem:[%s12629_s2 + $0x9a4] ss:$8 sps:$4 sm:$0xff]  }
0x13a8   :  { %7248 = vmatpush1.bf16.msra.mxu0 %v9425_v23  ;;  %7285 = vmatpush1.bf16.msra.mxu1 %v9428_v11  ;;  %v9502_v23 = vld [vmem:[%s12629_s2 + $0x9a0] ss:$8 sps:$4 sm:$0xff]   ;;  %v6442_v11 = vpack.c.bf16 %v12341_v37, %v12341_v37 }
0x13a9   :  { %7249 = vmatprep.subr.bf16.mxu0 %v9433_v2  ;;  %7286 = vmatprep.subr.bf16.mxu1 %v9436_v10  ;;  %v9507_v2 = vld [vmem:[%s12629_s2 + $0x994] ss:$8 sps:$4 sm:$0xff]   ;;  %v9510_v10 = vld [vmem:[%s12629_s2 + $0x984] ss:$8 sps:$4 sm:$0xff]   ;;  %v9508_v37 = vld [vmem:[%s12629_s2 + $0x980] ss:$8 sps:$4 sm:$0xff]  }
0x13ac   :  { %7250 = vmatpush1.bf16.msra.mxu0 %v9431_v13  ;;  %7287 = vmatpush1.bf16.msra.mxu1 %v9434_v27  ;;  %v9511_v13 = vld [vmem:[%s12631_s4 + $0x208] sm:$0xff]  }
0x13ad   :  { %7251 = vmatprep.subr.bf16.mxu0 %v9439_v46  ;;  %7288 = vmatprep.subr.bf16.mxu1 %v9442_v43  ;;  %v9512_v27 = vld [vmem:[%s12631_s4 + $0x1c8] sm:$0xff]   ;;  %v6444_v46 = vpack.c.bf16 %v12343_v52, %v12343_v52  ;;  %v9513_v43 = vld [vmem:[%s12631_s4 + $0x200] sm:$0xff]   ;;  %v9515_v52 = vld [vmem:[%s12631_s4 + $0x1f8] sm:$0xff]  }
0x13b0   :  { %7252 = vmatpush1.bf16.msra.mxu0 %v9437_v42  ;;  %7289 = vmatpush1.bf16.msra.mxu1 %v9440_v38  ;;  %v9514_v42 = vld [vmem:[%s12631_s4 + $0x1c0] sm:$0xff]   ;;  %v9516_v38 = vld [vmem:[%s12631_s4 + $0x1b8] sm:$0xff]  }
0x13b1   :  { %7253 = vmatprep.subr.bf16.mxu0 %v9445_v8  ;;  %7290 = vmatprep.subr.bf16.mxu1 %v9448_v59  ;;  %v9517_v8 = vld [vmem:[%s12631_s4 + $0x1f0] sm:$0xff]  }
0x13b2   :  { %v9518_v59 = vld [vmem:[%s12631_s4 + $0x1b0] sm:$0xff]  }
0x13b4   :  { %7254 = vmatpush2.bf16.msra.mxu0 %v9443_v40  ;;  %7291 = vmatpush1.bf16.msra.mxu1 %v9446_v3  ;;  %v9519_v40 = vld [vmem:[%s12631_s4 + $0x1e8] sm:$0xff]  }
0x13b5   :  { %7255 = vmatprep.subr.bf16.mxu0 %v9451_v44  ;;  %7292 = vmatprep.subr.bf16.mxu1 %v9454_v7  ;;  %v9520_v3 = vld [vmem:[%s12631_s4 + $0x1a8] sm:$0xff]   ;;  %v9521_v44 = vld [vmem:[%s12631_s4 + $0x1e0] sm:$0xff]  }
0x13b6   :  { %v9522_v7 = vld [vmem:[%s12631_s4 + $0x1a0] sm:$0xff]  }
0x13b8   :  { %7256 = vmatpush2.bf16.msra.mxu0 %v9449_v60  ;;  %7293 = vmatpush1.bf16.msra.mxu1 %v9452_v24  ;;  %v9523_v60 = vld [vmem:[%s12631_s4 + $0x1d8] sm:$0xff]  }
0x13b9   :  { %7257 = vmatprep.subr.bf16.mxu0 %v9457_v50  ;;  %7294 = vmatprep.subr.bf16.mxu1 %v9460_v55  ;;  %v9524_v24 = vld [vmem:[%s12631_s4 + $0x198] sm:$0xff]   ;;  %v9525_v50 = vld [vmem:[%s12631_s4 + $0x1d0] sm:$0xff]  }
0x13ba   :  { %v9526_v55 = vld [vmem:[%s12631_s4 + $0x190] sm:$0xff]  }
0x13bc   :  { %7258 = vmatpush2.bf16.msra.mxu0 %v9455_v53  ;;  %7295 = vmatpush2.bf16.msra.mxu1 %v9458_v5  ;;  %v6445_v53 = vld [vmem:[%s12633_s6 + $0xc] sm:$0x3] }
0x13bd   :  { %7259 = vmatprep.subr.bf16.mxu0 %v9463_v30  ;;  %7296 = vmatprep.subr.bf16.mxu1 %v9466_v57  ;;  %v7135_v57 = vrot.slane %v6445_v53, %v12264_v4 }
0x13c0   :  { %7260 = vmatpush2.bf16.msra.mxu0 %v9461_v34  ;;  %7297 = vmatpush2.bf16.msra.mxu1 %v9464_v29  ;;  %v7139_v29 = vrot.slane %v6445_v53, %v12274_v62 }
0x13c1   :  { %7261 = vmatprep.subr.bf16.mxu0 %v9469_v63  ;;  %7298 = vmatprep.subr.bf16.mxu1 %v9472_v47 }
0x13c4   :  { %7262 = vmatpush2.bf16.msra.mxu0 %v9467_v25  ;;  %7299 = vmatpush2.bf16.msra.mxu1 %v9470_v12 }
0x13c5   :  { %7263 = vmatprep.subr.bf16.mxu0 %v9475_v21  ;;  %7300 = vmatprep.subr.bf16.mxu1 %v9478_v41 }
0x13c8   :  { %7264 = vmatpush2.bf16.msra.mxu0 %v9473_v22  ;;  %7301 = vmatpush2.bf16.msra.mxu1 %v9476_v33 }
0x13c9   :  { %7265 = vmatprep.subr.bf16.mxu0 %v9481_v32  ;;  %7302 = vmatprep.subr.bf16.mxu1 %v9484_v17 }
0x13cc   :  { %7266 = vmatpush2.bf16.msra.mxu0 %v9479_v36  ;;  %7303 = vmatpush2.bf16.msra.mxu1 %v9482_v51 }
0x13cd   :  { %7267 = vmatprep.subr.bf16.mxu0 %v9487_v31  ;;  %7304 = vmatprep.subr.bf16.mxu1 %v9490_v49 }
0x13d0   :  { %7268 = vmatpush2.bf16.msra.mxu0 %v9485_v16  ;;  %7305 = vmatpush2.bf16.msra.mxu1 %v9488_v0 }
0x13d1   :  { %7306 = vmatprep.subr.bf16.mxu1 %v9493_v18  ;;  %7325 = vmatprep.subr.bf16.mxu0 %v7153_v35 }
0x13d3   :  { %7270 = vmatmul.mubr.bf16.vlgmr.msra.gmra.mxu0 %v6440_v48 }
0x13d4   :  { %7307 = vmatpush2.bf16.msra.mxu1 %v9491_v61  ;;  %7326 = vmatpush1.bf16.msra.mxu0 %v7150_v14 }
0x13d5   :  { %7308 = vmatprep.subr.bf16.mxu1 %v9498_v9  ;;  %7327 = vmatprep.subr.bf16.mxu0 %v9501_v28 }
0x13d6   :  { %7351 = vmatprep.mubr.bf16.mxu0 %v12674_v19  ;;  %v9505_v19 = vld [vmem:[%s12629_s2 + $0x990] ss:$8 sps:$4 sm:$0xff]  }
0x13d8   :  { %7309 = vmatpush2.bf16.msra.mxu1 %v9496_v1  ;;  %7328 = vmatpush1.bf16.msra.mxu0 %v9499_v20 }
0x13d9   :  { %7329 = vmatprep.subr.bf16.mxu0 %v9504_v26  ;;  %8477 = vmatprep.subr.bf16.mxu1 %v9511_v13  ;;  %v9527_v26 = vld [vmem:[%s12631_s4 + $0x228] sm:$0xff]  }
0x13db   :  { %7311 = vmatmul.mubr.bf16.vlgmr.msra.gmra.mxu1 %v6442_v11  ;;  %v9529_v11 = vld [vmem:[%s12631_s4 + $0x218] sm:$0xff]  }
0x13dc   :  { %7330 = vmatpush1.bf16.msra.mxu0 %v9502_v23  ;;  %8478 = vmatpush3.bf16.msra.mxu1 %v9512_v27  ;;  %v9528_v23 = vld [vmem:[%s12631_s4 + $0x220] sm:$0xff]  }
0x13dd   :  { %7331 = vmatprep.subr.bf16.mxu0 %v9507_v2  ;;  %8479 = vmatprep.subr.bf16.mxu1 %v9513_v43  ;;  %v9530_v2 = vld [vmem:[%s12631_s4 + $0x210] sm:$0xff]   ;;  %s9642_s4 = smov [#allocation5]  }
0x13de   :  { %s7632_s5 = sshll.u32 %s9642_s4, 4  ;;  %s7633_s5 = int_to_ptr.vmem [resolvable:$true] %s7632_s5 }
0x13df   :  { %s9589_s0 = scalar_lea.vmem %s7633_s5, 16  ;;  %s9593_s21 = scalar_lea.vmem %s7633_s5, 32 }
0x13e0   :  { %7332 = vmatpush1.bf16.msra.mxu0 %v9505_v19  ;;  %8480 = vmatpush3.bf16.msra.mxu1 %v9514_v42  ;;  %p9590_p5 = scmp.ne.s32.totalorder %s7633_s5, %s9589_s0  ;;  %p9594_p6 = scmp.lt.s32.totalorder %s7633_s5, %s7633_s5 }
0x13e1   :  { %7333 = vmatprep.subr.bf16.mxu0 %v9510_v10  ;;  %8481 = vmatprep.subr.bf16.mxu1 %v9515_v52  ;;  %p9595_p7 = scmp.lt.s32.totalorder %s9593_s21, %s9589_s0 }
0x13e3   :  { %p9596_p8 = por %p9595_p7, %p9594_p6 }
0x13e4   :  { %7334 = vmatpush1.bf16.msra.mxu0 %v9508_v37  ;;  %8482 = vmatpush3.bf16.msra.mxu1 %v9516_v38 }
0x13e5   :  { %8690 = vmatprep.subr.bf16.mxu0 %v12654_v58  ;;  %8483 = vmatprep.subr.bf16.mxu1 %v9517_v8  ;;  %p9597_p9 = pnand %p9596_p8, %p9590_p5 }
0x13e7   :  { %8270 = vmatmul.mubr.msk.bf16.vlgmr.msra.gmra.mxu0 %vm7142_vm3, %v6444_v46  ;;  %v7533_v46 = vld [vmem:[%s12633_s6 + $0xe] sm:$0x1] }
0x13e8   :  { %8698 = vmatprep.mubr.msk.bf16.mxu0 %vm9640_vm2, %v12654_v58  ;;  %8484 = vmatpush3.bf16.msra.mxu1 %v9518_v59  ;;  %vm7536_vm2 = vcmask 516096  }
0x13e9   :  { %8485 = vmatprep.subr.bf16.mxu1 %v9519_v40  ;;  %8691 = vmatpush3.bf16.msra.mxu0 %v9527_v26 }
0x13ea   :  { %8692 = vmatprep.subr.bf16.mxu0 %v12654_v58 }
0x13ec   :  { %8486 = vmatpush3.bf16.msra.mxu1 %v9520_v3 }
0x13ed   :  { %8487 = vmatprep.subr.bf16.mxu1 %v9521_v44  ;;  %8693 = vmatpush3.bf16.msra.mxu0 %v9528_v23 }
0x13ee   :  { %8694 = vmatprep.subr.bf16.mxu0 %v12654_v58 }
0x13f0   :  { %8488 = vmatpush3.bf16.msra.mxu1 %v9522_v7 }
0x13f1   :  { %8489 = vmatprep.subr.bf16.mxu1 %v9523_v60  ;;  %8695 = vmatpush3.bf16.msra.mxu0 %v9529_v11 }
0x13f2   :  { %8696 = vmatprep.subr.bf16.mxu0 %v12654_v58 }
0x13f4   :  { %8490 = vmatpush3.bf16.msra.mxu1 %v9524_v24 }
0x13f5   :  { %8491 = vmatprep.subr.bf16.mxu1 %v9525_v50  ;;  %8697 = vmatpush3.bf16.msra.mxu0 %v9530_v2 }
0x13f8   :  { %8492 = vmatpush3.bf16.msra.mxu1 %v9526_v55 }
0x1453   :  { %v7189_v5 = vpop.f32.mrf.mxu0 }
0x1454   :  { %v7190_v47 = vadd.f32 %v7189_v5, %v7135_v57 }
0x1455   :  { %v7191_v30 = vpop.f32.mrf.mxu0 }
0x1456   :  { %v7192_v12 = vadd.f32 %v7191_v30, %v7139_v29 }
0x1457   :  { %v7193_v34 = vpop.f32.mrf.mxu0 }
0x1459   :  { %v7194_v63 = vpop.f32.mrf.mxu0 }
0x145b   :  { %v7230_v25 = vpop.f32.mrf.mxu1 }
0x145c   :  { %v7231_v21 = vadd.f32 %v7230_v25, %v7190_v47 }
0x145d   :  { %v7232_v41 = vpop.f32.mrf.mxu1 }
0x145e   :  { %v7233_v22 = vadd.f32 %v7232_v41, %v7192_v12 }
0x145f   :  { %v7234_v33 = vpop.f32.mrf.mxu1 }
0x1461   :  { %v7235_v32 = vpop.f32.mrf.mxu1 }
0x1493   :  { %v7271_v17 = vpop.f32.mrf.mxu0 }
0x1494   :  { %v7272_v6 = vadd.f32 %v7271_v17, %v7231_v21 }
0x1495   :  { %v7273_v45 = vpop.f32.mrf.mxu0 }
0x1496   :  { %v7274_v16 = vadd.f32 %v7273_v45, %v7233_v22 }
0x1497   :  { %v7275_v36 = vpop.f32.mrf.mxu0 }
0x1499   :  { %v7276_v51 = vpop.f32.mrf.mxu0 }
0x149b   :  { %v7312_v31 = vpop.f32.mrf.mxu1 }
0x149c   :  { %v7313_v62 = vadd.f32 %v7312_v31, %v7272_v6 }
0x149d   :  { %v7314_v49 = vpop.f32.mrf.mxu1 }
0x149e   :  { %v7315_v39 = vadd.f32 %v7314_v49, %v7274_v16 }
0x149f   :  { %v7316_v56 = vpop.f32.mrf.mxu1 }
0x14a1   :  { %v7317_v4 = vpop.f32.mrf.mxu1 }
0x14a7   :  { %v7353_v0 = vpop.f32.mrf.mxu0 }
0x14a8   :  { %v7354_v18 = vadd.f32 %v7353_v0, %v7313_v62 }
0x14a9   :  { %v7355_v35 = vpop.f32.mrf.mxu0 }
0x14aa   :  { %v7356_v61 = vadd.f32 %v7355_v35, %v7315_v39  ;;  %v7360_v14 = vmax.f32 %v7354_v18, 0.0 }
0x14ab   :  { %v7357_v48 = vpop.f32.mrf.mxu0 }
0x14ac   :  { %v7361_v9 = vmax.f32 %v7356_v61, 0.0  ;;  %v7394_v20 = vpack.c.bf16 %v7360_v14, %v7360_v14 }
0x14ad   :  { %v7358_v28 = vpop.f32.mrf.mxu0 }
0x14ae   :  { %v7395_v1 = vpack.c.bf16 %v7361_v9, %v7361_v9 }
0x14b0   :  { %7524 = vmatprep.mubr.bf16.mxu1 %v7395_v1 }
0x14b1   :  { %7525 = vmatmul.mubr.bf16.vlgmr.msra.gmra.mxu1 %v7394_v20 }
0x1571   :  { %v8493_v19 = vpop.f32.mrf.mxu1 }
0x1573   :  { %v8494_v10 = vpop.f32.mrf.mxu1 }
0x1574   :  { %v8495_v37 = vadd.f32 %v8494_v10, %v8493_v19 }
0x1575   :  { %v8496_v13 = vpop.f32.mrf.mxu1 }
0x1576   :  { %v7527_v27 = vadd.f32 %v8495_v37, %v12288_v54 }
0x1577   :  { %v8497_v43 = vpop.f32.mrf.mxu1 }
0x1578   :  { %v7532_v42 = vadd.f32 %v7527_v27, %v12338_v15 }
0x157a   :  { %v7534_v52 = vadd.f32 %v7533_v46, %v7532_v42 }
0x157c   :  { %v7535_v58 = vmax.f32 %v7534_v52, 0.0 }
0x157e   :  { %v7546_v38 = vpack.c.bf16 %v7535_v58, %v7535_v58  ;;  %7537 = vst.msk [vmem:[#allocation5] sm:$0x1] %vm7536_vm2, %v7535_v58 }
0x1580   :  { %8699 = vmatmul.mubr.msk.bf16.vlgmr.msra.gmra.mxu0 %vm7572_vm14, %v7546_v38 }
0x1581   :  { %9600 = shalt.err (!%p9597_p9)
}
0x1582   :  { %7635 = dma.vmem_to_hbm [thread:$0]  %s7633_s5, 16, %s12634_s7, [#allocation4]   ;;  %v7547_v54 = vld [vmem:[%s12633_s6 + $0xf] sm:$0x1]  ;;  %vm7624_vm15 = vcmask 0  }
0x1583   :  { %s9643_s26 = smov [#allocation6]  }
0x1584   :  { %s7642_s27 = sshll.u32 %s9643_s26, 4  ;;  %s7643_s27 = int_to_ptr.vmem [resolvable:$true] %s7642_s27 }
0x1585   :  { %s9609_s7 = scalar_lea.vmem %s7643_s27, 16  ;;  %s9613_s6 = scalar_lea.vmem %s7643_s27, 32 }
0x1586   :  { %p9610_p10 = scmp.ne.s32.totalorder %s7643_s27, %s9609_s7  ;;  %p9614_p11 = scmp.lt.s32.totalorder %s7643_s27, %s7643_s27 }
0x1587   :  { %p9615_p12 = scmp.lt.s32.totalorder %s9613_s6, %s9609_s7 }
0x1589   :  { %p9616_p13 = por %p9615_p12, %p9614_p11 }
0x158b   :  { %p9617_p0 = pnand %p9616_p13, %p9610_p10 }
0x1640   :  { %v7610_v15 = vpop.f32.mrf.mxu0 }
0x1641   :  { %v7611_v8 = vadd.f32 %v7610_v15, %v7547_v54 }
0x1642   :  { %v8700_v59 = vpop.f32.mrf.mxu0 }
0x1643   :  { %v8292_v40 = vmul.f32 -1.442695, %v7611_v8 }
0x1644   :  { %v7613_v3 = vpop.f32.mrf.mxu0 }
0x1645   :  { %9565 = vpow2.f32 %v8292_v40 }
0x1646   :  { %v8701_v44 = vpop.f32.mrf.mxu0 }
0x1652   :  { %v9566_v7 = vpop.eup %9565 }
0x1653   :  { %v7619_v60 = vadd.f32 1.0, %v9566_v7 }
0x1655   :  { %9567 = vrcp.f32 %v7619_v60 }
0x1662   :  { %v9568_v24 = vpop.eup %9567 }
0x1663   :  { %v7622_v50 = vmul.f32 6.0, %v9568_v24 }
0x1665   :  { %v8293_v55 = vadd.f32 -3.0, %v7622_v50 }
0x1667   :  { %7625 = vst.msk [vmem:[#allocation6] sm:$0x1] %vm7624_vm15, %v8293_v55 }
0x1668   :  { %9620 = shalt.err (!%p9617_p0)
}
0x1669   :  { %7645 = dma.vmem_to_hbm [thread:$0]  %s7643_s27, 16, %s12635_s8, [#allocation7]  }
0x166a   :  { %9631 = dma.done.wait [#allocation4], 16  }
0x166b   :  { %9632 = vsyncadd [#allocation4], 4294967280 }
0x166c   :  { %9633 = dma.done.wait [#allocation7], 16  }
0x166d   :  { %9634 = vsyncadd [#allocation7], 4294967280 }
0x166e   :  { %7652 = vsyncpa [#allocation3], 1 }
0x166f   :  { %7653 = vsyncpa [#allocation4], 1 }
0x1670   :  { %7654 = vsyncpa [#allocation7], 1 }

</bundles_post_ra>
